<compile_context>
chip_gen: v6e
topology: v6e:2x2x1
jax: 0.10.0
libtpu: 0.0.40
codegen_flags: <defaults>
</compile_context>

<pallas_src>
import functools

import jax
import jax.numpy as jnp
from jax.experimental import pallas as pl
from jax.experimental.pallas import tpu as pltpu

EPS = 1e-5
TILE_N = 512   # weight column tile (lane-dense, multiple of 128)


# ----------------------------------------------------------------------------
# Pallas kernel: one grid step = one (K, TILE_N) weight tile of one layer.
# ----------------------------------------------------------------------------
def _decoder_kernel(x_ref, w1_ref, b1_ref, w2_ref, b2_ref, w3_ref, b3_ref,
                    o_ref, h1_ref, h2_ref, *, t1, t2):
    i = pl.program_id(0)

    @pl.when(i < t1)
    def _layer1():  # h1[:, tile] = relu(x @ W1_tile + b1_tile)   (BN1 folded)
        y = jnp.dot(x_ref[...], w1_ref[...], preferred_element_type=jnp.float32)
        a = jnp.maximum(y + b1_ref[...], 0.0).astype(jnp.bfloat16)
        for k in range(t1):                      # static-slice store (unrolled)
            @pl.when(i == k)
            def _(a=a, k=k):
                h1_ref[:, k * TILE_N:(k + 1) * TILE_N] = a

    @pl.when((i >= t1) & (i < t1 + t2))
    def _layer2():  # h2[:, tile] = relu(h1 @ W2_tile + b2_tile)  (BN2 folded)
        y = jnp.dot(h1_ref[...], w2_ref[...], preferred_element_type=jnp.float32)
        a = jnp.maximum(y + b2_ref[...], 0.0).astype(jnp.bfloat16)
        for k in range(t2):
            @pl.when(i == t1 + k)
            def _(a=a, k=k):
                h2_ref[:, k * TILE_N:(k + 1) * TILE_N] = a

    @pl.when(i >= t1 + t2)
    def _layer3():  # out tile = h2 @ W3_tile + b3_tile
        y = jnp.dot(h2_ref[...], w3_ref[...], preferred_element_type=jnp.float32)
        o_ref[...] = (y + b3_ref[...]).astype(o_ref.dtype)


# ----------------------------------------------------------------------------
# Wrapper
# ----------------------------------------------------------------------------
def point_cloud_decoder(x, params, num_points):
    B, _ = x.shape
    (w1, b1), (w2, b2), (w3, b3) = params
    K1, N1 = w1.shape            # (embedding_dim, 1024)
    K2, N2 = w2.shape            # (1024, 2048)
    K3, N3 = w3.shape            # (2048, padded num_points*3)
    assert N1 % TILE_N == 0 and N2 % TILE_N == 0 and N3 % TILE_N == 0
    t1, t2, t3 = N1 // TILE_N, N2 // TILE_N, N3 // TILE_N
    grid = (t1 + t2 + t3,)

    # Column-tile index maps.  Once a layer is finished its index goes constant,
    # so its (already resident) weight tile is never re-fetched; every weight
    # byte crosses HBM exactly once.
    def w1_idx(i):
        return (0, jnp.minimum(i, t1 - 1))

    def w2_idx(i):
        return (0, jnp.clip(i - t1, 0, t2 - 1))

    def w3_idx(i):
        return (0, jnp.clip(i - t1 - t2, 0, t3 - 1))

    xb = x.astype(jnp.bfloat16)  # MXU-native; halves the (tiny) input DMA

    flops = 2 * B * (K1 * N1 + K2 * N2 + K3 * N3)
    bytes_accessed = (xb.size * 2
                      + sum(int(a.size) * a.dtype.itemsize
                            for a in (w1, b1, w2, b2, w3, b3))
                      + B * N3 * 4)

    out = pl.pallas_call(
        functools.partial(_decoder_kernel, t1=t1, t2=t2),
        out_shape=jax.ShapeDtypeStruct((B, N3), jnp.float32),
        grid_spec=pltpu.PrefetchScalarGridSpec(
            num_scalar_prefetch=0,
            grid=grid,
            in_specs=[
                pl.BlockSpec((B, K1), lambda i: (0, 0)),      # x: fetched once
                pl.BlockSpec((K1, TILE_N), w1_idx),           # W1 column tile
                pl.BlockSpec((1, TILE_N), w1_idx),            # b1 tile
                pl.BlockSpec((K2, TILE_N), w2_idx),           # W2 column tile
                pl.BlockSpec((1, TILE_N), w2_idx),            # b2 tile
                pl.BlockSpec((K3, TILE_N), w3_idx),           # W3 column tile
                pl.BlockSpec((1, TILE_N), w3_idx),            # b3 tile
            ],
            out_specs=pl.BlockSpec((B, TILE_N), w3_idx),
            scratch_shapes=[
                pltpu.VMEM((B, N1), jnp.bfloat16),            # h1 (B, 1024)
                pltpu.VMEM((B, N2), jnp.bfloat16),            # h2 (B, 2048)
            ],
        ),
        compiler_params=pltpu.CompilerParams(
            # layer i+1 reads layer i's VMEM-resident activations -> sequential
            dimension_semantics=("arbitrary",),
        ),
        cost_estimate=pl.CostEstimate(flops=flops, transcendentals=0,
                                      bytes_accessed=bytes_accessed),
    )(xb, w1, b1.reshape(1, -1), w2, b2.reshape(1, -1), w3, b3.reshape(1, -1))

    return out[:, :num_points * 3].reshape(B, num_points, 3)


# ----------------------------------------------------------------------------
# Parameter setup (plain JAX glue)
# ----------------------------------------------------------------------------
def _init_linear(key, fan_in, fan_out):
    kw, kb = jax.random.split(key)
    bound = 1.0 / (fan_in ** 0.5)
    w = jax.random.uniform(kw, (fan_in, fan_out), jnp.float32, -bound, bound)
    b = jax.random.uniform(kb, (fan_out,), jnp.float32, -bound, bound)
    return w, b


def _fold_bn(w, b, gamma, beta, mean, var):
    """Fold eval-mode BatchNorm1d into the preceding Linear."""
    scale = gamma / jnp.sqrt(var + EPS)
    return w * scale[None, :], (b - mean) * scale + beta


def _fold_bn_default(w, b):
    c = w.shape[1]
    ones = jnp.ones((c,), jnp.float32)
    zeros = jnp.zeros((c,), jnp.float32)
    return _fold_bn(w, b, ones, zeros, zeros, ones)


def make_params(key, embedding_dim=512, num_points=2048):
    k1, k2, k3 = jax.random.split(key, 3)
    w1, b1 = _fold_bn_default(*_init_linear(k1, embedding_dim, 1024))   # fc1+bn1
    w2, b2 = _fold_bn_default(*_init_linear(k2, 1024, 2048))            # fc2+bn2
    w3, b3 = _init_linear(k3, 2048, num_points * 3)                     # fc3

    # Pad fc3's output columns to a multiple of TILE_N so the column-tiled
    # grid divides evenly; padding is sliced off after the kernel.
    n3 = num_points * 3
    n3p = ((n3 + TILE_N - 1) // TILE_N) * TILE_N
    if n3p != n3:
        w3 = jnp.pad(w3, ((0, 0), (0, n3p - n3)))
        b3 = jnp.pad(b3, (0, n3p - n3))

    # Stream weights in bf16 (network is weight-DMA bound); biases stay f32.
    bf16 = lambda a: a.astype(jnp.bfloat16)
    return ((bf16(w1), b1), (bf16(w2), b2), (bf16(w3), b3))


if __name__ == "__main__":
    B = 2
    EMBEDDING_DIM = 512    # fc1 in_features (module default; 1024/2048 hard-coded)
    NUM_POINTS = 128       # small test shape; module default is 2048

    key = jax.random.PRNGKey(0)
    k_params, k_x = jax.random.split(key)
    params = make_params(k_params, EMBEDDING_DIM, NUM_POINTS)
    x = jax.random.normal(k_x, (B, EMBEDDING_DIM), jnp.float32)

    fwd = jax.jit(functools.partial(point_cloud_decoder, num_points=NUM_POINTS))
    out = jax.block_until_ready(fwd(x, params))

    assert out.shape == (B, NUM_POINTS, 3), out.shape
    assert bool(jnp.all(jnp.isfinite(out)))
    print("KERNEL_OK")
</pallas_src>

<mosaic_0001>
module attributes {stable_mosaic.version = 11 : i64} {
  func.func @_decoder_kernel(%arg0: i32, %arg1: memref<2x512xbf16, #tpu.memory_space<vmem>>, %arg2: memref<512x512xbf16, #tpu.memory_space<vmem>>, %arg3: memref<1x512xf32, #tpu.memory_space<vmem>>, %arg4: memref<1024x512xbf16, #tpu.memory_space<vmem>>, %arg5: memref<1x512xf32, #tpu.memory_space<vmem>>, %arg6: memref<2048x512xbf16, #tpu.memory_space<vmem>>, %arg7: memref<1x512xf32, #tpu.memory_space<vmem>>, %arg8: memref<2x512xf32, #tpu.memory_space<vmem>>, %arg9: memref<2x1024xbf16, #tpu.memory_space<vmem>>, %arg10: memref<2x2048xbf16, #tpu.memory_space<vmem>>) attributes {dimension_semantics = [#tpu.dimension_semantics<arbitrary>], iteration_bounds = array<i64: 7>, scalar_prefetch = 0 : i64, scratch_operands = 2 : i64, tpu.core_type = #tpu.core_type<tc>, window_params = [{pipeline_mode = #tpu.pipeline_mode<synchronous>, transform_indices = @transform_0, window_bounds = array<i64: 2, 512>}, {transform_indices = @transform_1, window_bounds = array<i64: 512, 512>}, {transform_indices = @transform_2, window_bounds = array<i64: 1, 512>}, {transform_indices = @transform_3, window_bounds = array<i64: 1024, 512>}, {transform_indices = @transform_4, window_bounds = array<i64: 1, 512>}, {transform_indices = @transform_5, window_bounds = array<i64: 2048, 512>}, {transform_indices = @transform_6, window_bounds = array<i64: 1, 512>}, {transform_indices = @transform_7, window_bounds = array<i64: 2, 512>}]} {
    %c2_i32 = arith.constant 2 : i32
    %0 = arith.cmpi slt, %arg0, %c2_i32 : i32
    %1 = arith.extui %0 : i1 to i32
    %c0_i32 = arith.constant 0 : i32
    %2 = arith.cmpi ne, %1, %c0_i32 : i32
    scf.if %2 {
      %c0 = arith.constant 0 : index
      %c0_4 = arith.constant 0 : index
      %11 = vector.load %arg1[%c0, %c0_4] : memref<2x512xbf16, #tpu.memory_space<vmem>>, vector<2x512xbf16>
      %c0_5 = arith.constant 0 : index
      %c0_6 = arith.constant 0 : index
      %12 = vector.load %arg2[%c0_5, %c0_6] : memref<512x512xbf16, #tpu.memory_space<vmem>>, vector<512x512xbf16>
      %cst = arith.constant dense<0.000000e+00> : vector<2x512xf32>
      %13 = tpu.matmul %11, %12, %cst {dimension_numbers = #tpu.dot_dimension_numbers<[1], [0], [0], [1], [0, 0, 1, 1], [], []>} : vector<2x512xbf16>, vector<512x512xbf16>, vector<2x512xf32> -> vector<2x512xf32>
      %c0_7 = arith.constant 0 : index
      %c0_8 = arith.constant 0 : index
      %14 = vector.load %arg3[%c0_7, %c0_8] : memref<1x512xf32, #tpu.memory_space<vmem>>, vector<1x512xf32>
      %15 = vector.broadcast %14 : vector<1x512xf32> to vector<2x512xf32>
      %16 = arith.addf %13, %15 : vector<2x512xf32>
      %cst_9 = arith.constant 0.000000e+00 : f32
      %17 = vector.broadcast %cst_9 : f32 to vector<2x512xf32>
      %18 = arith.maximumf %16, %17 : vector<2x512xf32>
      %19 = arith.truncf %18 : vector<2x512xf32> to vector<2x512xbf16>
      %c0_i32_10 = arith.constant 0 : i32
      %20 = arith.cmpi eq, %arg0, %c0_i32_10 : i32
      %21 = arith.extui %20 : i1 to i32
      %c0_i32_11 = arith.constant 0 : i32
      %22 = arith.cmpi ne, %21, %c0_i32_11 : i32
      scf.if %22 {
        %c0_13 = arith.constant 0 : index
        %c0_14 = arith.constant 0 : index
        %26 = vector.load %arg9[%c0_13, %c0_14] : memref<2x1024xbf16, #tpu.memory_space<vmem>>, vector<2x512xbf16>
        tpu.vector_store %arg9[%c0_13, %c0_14], %19 {strides = array<i32>} : memref<2x1024xbf16, #tpu.memory_space<vmem>>, vector<2x512xbf16>,
      } else {
      }
      %c1_i32 = arith.constant 1 : i32
      %23 = arith.cmpi eq, %arg0, %c1_i32 : i32
      %24 = arith.extui %23 : i1 to i32
      %c0_i32_12 = arith.constant 0 : i32
      %25 = arith.cmpi ne, %24, %c0_i32_12 : i32
      scf.if %25 {
        %c0_13 = arith.constant 0 : index
        %c512 = arith.constant 512 : index
        %26 = vector.load %arg9[%c0_13, %c512] : memref<2x1024xbf16, #tpu.memory_space<vmem>>, vector<2x512xbf16>
        tpu.vector_store %arg9[%c0_13, %c512], %19 {strides = array<i32>} : memref<2x1024xbf16, #tpu.memory_space<vmem>>, vector<2x512xbf16>,
      } else {
      }
    } else {
    }
    %c2_i32_0 = arith.constant 2 : i32
    %3 = arith.cmpi sge, %arg0, %c2_i32_0 : i32
    %c6_i32 = arith.constant 6 : i32
    %4 = arith.cmpi slt, %arg0, %c6_i32 : i32
    %5 = arith.andi %3, %4 : i1
    %6 = arith.extui %5 : i1 to i32
    %c0_i32_1 = arith.constant 0 : i32
    %7 = arith.cmpi ne, %6, %c0_i32_1 : i32
    scf.if %7 {
      %c0 = arith.constant 0 : index
      %c0_4 = arith.constant 0 : index
      %11 = vector.load %arg9[%c0, %c0_4] : memref<2x1024xbf16, #tpu.memory_space<vmem>>, vector<2x1024xbf16>
      %c0_5 = arith.constant 0 : index
      %c0_6 = arith.constant 0 : index
      %12 = vector.load %arg4[%c0_5, %c0_6] : memref<1024x512xbf16, #tpu.memory_space<vmem>>, vector<1024x512xbf16>
      %cst = arith.constant dense<0.000000e+00> : vector<2x512xf32>
      %13 = tpu.matmul %11, %12, %cst {dimension_numbers = #tpu.dot_dimension_numbers<[1], [0], [0], [1], [0, 0, 1, 1], [], []>} : vector<2x1024xbf16>, vector<1024x512xbf16>, vector<2x512xf32> -> vector<2x512xf32>
      %c0_7 = arith.constant 0 : index
      %c0_8 = arith.constant 0 : index
      %14 = vector.load %arg5[%c0_7, %c0_8] : memref<1x512xf32, #tpu.memory_space<vmem>>, vector<1x512xf32>
      %15 = vector.broadcast %14 : vector<1x512xf32> to vector<2x512xf32>
      %16 = arith.addf %13, %15 : vector<2x512xf32>
      %cst_9 = arith.constant 0.000000e+00 : f32
      %17 = vector.broadcast %cst_9 : f32 to vector<2x512xf32>
      %18 = arith.maximumf %16, %17 : vector<2x512xf32>
      %19 = arith.truncf %18 : vector<2x512xf32> to vector<2x512xbf16>
      %c2_i32_10 = arith.constant 2 : i32
      %20 = arith.cmpi eq, %arg0, %c2_i32_10 : i32
      %21 = arith.extui %20 : i1 to i32
      %c0_i32_11 = arith.constant 0 : i32
      %22 = arith.cmpi ne, %21, %c0_i32_11 : i32
      scf.if %22 {
        %c0_15 = arith.constant 0 : index
        %c0_16 = arith.constant 0 : index
        %32 = vector.load %arg10[%c0_15, %c0_16] : memref<2x2048xbf16, #tpu.memory_space<vmem>>, vector<2x512xbf16>
        tpu.vector_store %arg10[%c0_15, %c0_16], %19 {strides = array<i32>} : memref<2x2048xbf16, #tpu.memory_space<vmem>>, vector<2x512xbf16>,
      } else {
      }
      %c3_i32 = arith.constant 3 : i32
      %23 = arith.cmpi eq, %arg0, %c3_i32 : i32
      %24 = arith.extui %23 : i1 to i32
      %c0_i32_12 = arith.constant 0 : i32
      %25 = arith.cmpi ne, %24, %c0_i32_12 : i32
      scf.if %25 {
        %c0_15 = arith.constant 0 : index
        %c512 = arith.constant 512 : index
        %32 = vector.load %arg10[%c0_15, %c512] : memref<2x2048xbf16, #tpu.memory_space<vmem>>, vector<2x512xbf16>
        tpu.vector_store %arg10[%c0_15, %c512], %19 {strides = array<i32>} : memref<2x2048xbf16, #tpu.memory_space<vmem>>, vector<2x512xbf16>,
      } else {
      }
      %c4_i32 = arith.constant 4 : i32
      %26 = arith.cmpi eq, %arg0, %c4_i32 : i32
      %27 = arith.extui %26 : i1 to i32
      %c0_i32_13 = arith.constant 0 : i32
      %28 = arith.cmpi ne, %27, %c0_i32_13 : i32
      scf.if %28 {
        %c0_15 = arith.constant 0 : index
        %c1024 = arith.constant 1024 : index
        %32 = vector.load %arg10[%c0_15, %c1024] : memref<2x2048xbf16, #tpu.memory_space<vmem>>, vector<2x512xbf16>
        tpu.vector_store %arg10[%c0_15, %c1024], %19 {strides = array<i32>} : memref<2x2048xbf16, #tpu.memory_space<vmem>>, vector<2x512xbf16>,
      } else {
      }
      %c5_i32 = arith.constant 5 : i32
      %29 = arith.cmpi eq, %arg0, %c5_i32 : i32
      %30 = arith.extui %29 : i1 to i32
      %c0_i32_14 = arith.constant 0 : i32
      %31 = arith.cmpi ne, %30, %c0_i32_14 : i32
      scf.if %31 {
        %c0_15 = arith.constant 0 : index
        %c1536 = arith.constant 1536 : index
        %32 = vector.load %arg10[%c0_15, %c1536] : memref<2x2048xbf16, #tpu.memory_space<vmem>>, vector<2x512xbf16>
        tpu.vector_store %arg10[%c0_15, %c1536], %19 {strides = array<i32>} : memref<2x2048xbf16, #tpu.memory_space<vmem>>, vector<2x512xbf16>,
      } else {
      }
    } else {
    }
    %c6_i32_2 = arith.constant 6 : i32
    %8 = arith.cmpi sge, %arg0, %c6_i32_2 : i32
    %9 = arith.extui %8 : i1 to i32
    %c0_i32_3 = arith.constant 0 : i32
    %10 = arith.cmpi ne, %9, %c0_i32_3 : i32
    scf.if %10 {
      %c0 = arith.constant 0 : index
      %c0_4 = arith.constant 0 : index
      %11 = vector.load %arg10[%c0, %c0_4] : memref<2x2048xbf16, #tpu.memory_space<vmem>>, vector<2x2048xbf16>
      %c0_5 = arith.constant 0 : index
      %c0_6 = arith.constant 0 : index
      %12 = vector.load %arg6[%c0_5, %c0_6] : memref<2048x512xbf16, #tpu.memory_space<vmem>>, vector<2048x512xbf16>
      %cst = arith.constant dense<0.000000e+00> : vector<2x512xf32>
      %13 = tpu.matmul %11, %12, %cst {dimension_numbers = #tpu.dot_dimension_numbers<[1], [0], [0], [1], [0, 0, 1, 1], [], []>} : vector<2x2048xbf16>, vector<2048x512xbf16>, vector<2x512xf32> -> vector<2x512xf32>
      %c0_7 = arith.constant 0 : index
      %c0_8 = arith.constant 0 : index
      %14 = vector.load %arg7[%c0_7, %c0_8] : memref<1x512xf32, #tpu.memory_space<vmem>>, vector<1x512xf32>
      %15 = vector.broadcast %14 : vector<1x512xf32> to vector<2x512xf32>
      %16 = arith.addf %13, %15 : vector<2x512xf32>
      %c0_9 = arith.constant 0 : index
      %c0_10 = arith.constant 0 : index
      %17 = vector.load %arg8[%c0_9, %c0_10] : memref<2x512xf32, #tpu.memory_space<vmem>>, vector<2x512xf32>
      tpu.vector_store %arg8[%c0_9, %c0_10], %16 {strides = array<i32>} : memref<2x512xf32, #tpu.memory_space<vmem>>, vector<2x512xf32>,
    } else {
    }
    return
  }
  func.func @transform_0(%arg0: i32) -> (i32, i32) {
    %c0_i32 = arith.constant 0 : i32
    %c0_i32_0 = arith.constant 0 : i32
    %c0_i32_1 = arith.constant 0 : i32
    return %c0_i32, %c0_i32_0 : i32, i32
  }
  func.func @transform_1(%arg0: i32) -> (i32, i32) {
    %c1_i32 = arith.constant 1 : i32
    %0 = arith.minsi %arg0, %c1_i32 : i32
    %c0_i32 = arith.constant 0 : i32
    %c0_i32_0 = arith.constant 0 : i32
    return %c0_i32, %0 : i32, i32
  }
  func.func @transform_2(%arg0: i32) -> (i32, i32) {
    %c1_i32 = arith.constant 1 : i32
    %0 = arith.minsi %arg0, %c1_i32 : i32
    %c0_i32 = arith.constant 0 : i32
    %c0_i32_0 = arith.constant 0 : i32
    return %c0_i32, %0 : i32, i32
  }
  func.func @transform_3(%arg0: i32) -> (i32, i32) {
    %c2_i32 = arith.constant 2 : i32
    %0 = arith.subi %arg0, %c2_i32 : i32
    %c0_i32 = arith.constant 0 : i32
    %c3_i32 = arith.constant 3 : i32
    %1 = arith.maxsi %c0_i32, %0 : i32
    %2 = arith.minsi %c3_i32, %1 : i32
    %c0_i32_0 = arith.constant 0 : i32
    %c0_i32_1 = arith.constant 0 : i32
    return %c0_i32_0, %2 : i32, i32
  }
  func.func @transform_4(%arg0: i32) -> (i32, i32) {
    %c2_i32 = arith.constant 2 : i32
    %0 = arith.subi %arg0, %c2_i32 : i32
    %c0_i32 = arith.constant 0 : i32
    %c3_i32 = arith.constant 3 : i32
    %1 = arith.maxsi %c0_i32, %0 : i32
    %2 = arith.minsi %c3_i32, %1 : i32
    %c0_i32_0 = arith.constant 0 : i32
    %c0_i32_1 = arith.constant 0 : i32
    return %c0_i32_0, %2 : i32, i32
  }
  func.func @transform_5(%arg0: i32) -> (i32, i32) {
    %c2_i32 = arith.constant 2 : i32
    %0 = arith.subi %arg0, %c2_i32 : i32
    %c4_i32 = arith.constant 4 : i32
    %1 = arith.subi %0, %c4_i32 : i32
    %c0_i32 = arith.constant 0 : i32
    %c0_i32_0 = arith.constant 0 : i32
    %2 = arith.maxsi %c0_i32, %1 : i32
    %3 = arith.minsi %c0_i32_0, %2 : i32
    %c0_i32_1 = arith.constant 0 : i32
    %c0_i32_2 = arith.constant 0 : i32
    return %c0_i32_1, %3 : i32, i32
  }
  func.func @transform_6(%arg0: i32) -> (i32, i32) {
    %c2_i32 = arith.constant 2 : i32
    %0 = arith.subi %arg0, %c2_i32 : i32
    %c4_i32 = arith.constant 4 : i32
    %1 = arith.subi %0, %c4_i32 : i32
    %c0_i32 = arith.constant 0 : i32
    %c0_i32_0 = arith.constant 0 : i32
    %2 = arith.maxsi %c0_i32, %1 : i32
    %3 = arith.minsi %c0_i32_0, %2 : i32
    %c0_i32_1 = arith.constant 0 : i32
    %c0_i32_2 = arith.constant 0 : i32
    return %c0_i32_1, %3 : i32, i32
  }
  func.func @transform_7(%arg0: i32) -> (i32, i32) {
    %c2_i32 = arith.constant 2 : i32
    %0 = arith.subi %arg0, %c2_i32 : i32
    %c4_i32 = arith.constant 4 : i32
    %1 = arith.subi %0, %c4_i32 : i32
    %c0_i32 = arith.constant 0 : i32
    %c0_i32_0 = arith.constant 0 : i32
    %2 = arith.maxsi %c0_i32, %1 : i32
    %3 = arith.minsi %c0_i32_0, %2 : i32
    %c0_i32_1 = arith.constant 0 : i32
    %c0_i32_2 = arith.constant 0 : i32
    return %c0_i32_1, %3 : i32, i32
  }
}

</mosaic_0001>

<bundles_post_ra>
// kernel: point_cloud_decoder.1
= control target key start
LH: loop header
LB: loop body
LE: loop exit
PB: predicated region body
PF: predicated region fallthrough
CT: control target
= control target key end

     0   :  { %s11649_s0 = inlined_call_operand.vmem [shape: bf16[2,512], index: 0, kind: input, shape index: {}]   ;;  %s11650_s1 = inlined_call_operand.hbm [shape: bf16[512,1024], index: 1, kind: input, shape index: {}]   ;;  %s11651_s2 = inlined_call_operand.hbm [shape: f32[1,1024], index: 2, kind: input, shape index: {}]   ;;  %s11652_s3 = inlined_call_operand.hbm [shape: bf16[1024,2048], index: 3, kind: input, shape index: {}]   ;;  %s11653_s4 = inlined_call_operand.hbm [shape: f32[1,2048], index: 4, kind: input, shape index: {}]   ;;  %s11654_s5 = inlined_call_operand.hbm [shape: bf16[2048,512], index: 5, kind: input, shape index: {}]   ;;  %s11655_s6 = inlined_call_operand.hbm [shape: f32[1,512], index: 6, kind: input, shape index: {}]   ;;  %s11656_s7 = inlined_call_operand.vmem [shape: f32[2,512], index: 7, kind: output, shape index: {}]  }
   0x1   :  { %11678 = sst [smem:[#allocation28_spill]] %s11649_s0 }
   0x2   :  { %11679 = sst [smem:[#allocation29_spill]] %s11651_s2 }
   0x3   :  { %11680 = sst [smem:[#allocation30_spill]] %s11656_s7 }
   0x4   :  { %12 = vsyncpa [#allocation5], 0 }
   0x5   :  { %14 = vsyncpa [#allocation5 + $0x1], 0 }
   0x6   :  { %15 = vsyncpa [#allocation7], 0 }
   0x7   :  { %17 = vsyncpa [#allocation7 + $0x1], 0 }
   0x8   :  { %18 = vsyncpa [#allocation10], 0 }
   0x9   :  { %20 = vsyncpa [#allocation10 + $0x1], 0 }
   0xa   :  { %21 = vsyncpa [#allocation13], 0 }
   0xb   :  { %23 = vsyncpa [#allocation13 + $0x1], 0  ;;  %s10666_s24 = smov 0   ;;  %s10668_s25 = smov 0  }
   0xc   :  { %s10670_s26 = smov 0   ;;  %s10672_s27 = smov 0  }
   0xd   :  { %s10674_s28 = smov 0   ;;  %s10676_s29 = smov 0  }
   0xe   :  { %s10678_s30 = smov 0  }
   0xf LB: > { %11681 = sst [smem:[#allocation20_spill]] %s10590_s25  ;;  %s10700_s8 = sadd.s32 4294967295, %s10610_s30   ;;  %s10610_s30 = sphi %s10678_s30, %s11726_s30   ;;  %s10606_s29 = sphi %s10676_s29, %s11731_s29   ;;  %s10602_s28 = sphi %s10674_s28, %s11733_s28   ;;  %s10598_s27 = sphi %s10672_s27, %s11732_s27   ;;  %s10594_s26 = sphi %s10670_s26, %s11729_s26   ;;  %s10590_s25 = sphi %s10668_s25, %s11728_s25   ;;  %s10586_s24 = sphi %s10666_s24, %s11727_s24  }
  0x10   : > { %11682 = sst [smem:[#allocation21_spill]] %s10594_s26  ;;  %s10703_s9 = sadd.s32 1, %s10610_s30  }
  0x11   : > { %11683 = sst [smem:[#allocation22_spill]] %s10606_s29  ;;  %p54_p0 = scmp.lt.s32.totalorder %s10610_s30, 1 }
  0x12   : > { %11684 = sst [smem:[#allocation23_spill]] %s10700_s8  ;;  %p56_p1 = scmp.lt.s32.totalorder %s10703_s9, 1 }
  0x13   : > { %11685 = sst [smem:[#allocation24_spill]] %s10703_s9  ;;  %s61_s10 = sadd.s32 1, %s10606_s29 }
  0x14   : > { %p68_p2 = scmp.ne.s32.totalorder %s10606_s29, %s10602_s28  ;;  %p11661_p3 = scmp.eq.s32.totalorder %s10610_s30, 0 }
  0x15   : > { %s10711_s11 = scalar_select %p54_p0, %s10610_s30, 1 }
  0x16   : > { %s57_s12 = scalar_select %p56_p1, %s10703_s9, 1 }
  0x17   : > { %p74_p4 = scmp.ne.s32.totalorder %s10602_s28, %s10598_s27  ;;  %p11660_p5 = scmp.eq.s32.totalorder %s10700_s8, 0 }
  0x18   : > { %s58_s13 = ssub.s32 %s10711_s11, %s57_s12  ;;  %p70_p7 = por %p11661_p3, %p68_p2 }
  0x19   : > { %p59_p6 = scmp.eq.s32.totalorder %s58_s13, 0  ;;  %p10722_p8 = por %p11660_p5, %p74_p4 }
  0x1a   : > { %p11659_p9 = scmp.lt.s32.totalorder %s10610_s30, 7  ;;  %s10731_s16 = sand.u32 1, %s10606_s29  }
  0x1b   : > { %s11686_s14 = scalar_select %p10722_p8, 1, 0 }
  0x1c   : > { %s10727_s15 = scalar_select %p59_p6, %s10606_s29, %s61_s10  }
  0x1d   : > { %s7924_s17 = sshll.u32 %s10731_s16, 10  ;;  %p10736_p10 = pnand %p11659_p9, %p70_p7 }
  0x1e   : > { %11687 = sst [smem:[#allocation25_spill]] %s10727_s15  ;;  %s315_s19 = scalar_lea.vmem [#allocation4], %s7924_s17 }
  0x1f   : > { %s11688_s18 = scalar_select %p10736_p10, 1, 0 }
  0x20   : > { %s324_s20 = sshll.u32 %s315_s19, 4  ;;  %s11658_s21 = sand.u32 1, %s10610_s30   ;;  %s10741_s20 = int_to_ptr.vmem [resolvable:$true] %s324_s20 }
  0x21   : > { %s7927_s22 = sshll.u32 %s10731_s16, 2  ;;  %s8915_s23 = sshll.u32 %s10711_s11, 6 }
  0x22   : > { %s11689_s2 = sld [smem:[#allocation29_spill]]  ;;  %s338_s13 = scalar_lea.vmem [#allocation6], %s7927_s22 }
  0x23   : > { %s348_s15 = sshll.u32 %s338_s13, 4  ;;  %p10754_p11 = pnand %p11659_p9, %p11661_p3  ;;  %s349_s15 = int_to_ptr.vmem [resolvable:$true] %s348_s15 }
  0x24   : > { %s10760_s19 = scalar_lea.sflag [#allocation7], %s11658_s21  ;;  %p11673_p13 = pneg %p10736_p10 }
  0x25   : > { %s11690_s17 = scalar_select %p10754_p11, 1, 0 }
  0x28   : > { %s10748_s12 = scalar_lea.hbm %s11689_s2, %s8915_s23  ;;  %s10373_s27 = scalar_lea.hbm %s11689_s2, 128 }
  0x29   : > { %s10368_s29 = scalar_lea.hbm %s10748_s12, 64  ;;  %p10374_p2 = scmp.lt.s32.totalorder %s10748_s12, %s11689_s2 }
  0x2a   : > { %p10369_p12 = scmp.ne.s32.totalorder %s10748_s12, %s10368_s29  ;;  %p10375_p4 = scmp.lt.s32.totalorder %s10373_s27, %s10368_s29 }
  0x2c   : > { %p10371_p0 = pnand %p11673_p13, %p10369_p12  ;;  %p10376_p6 = por %p10375_p4, %p10374_p2 }
  0x2e   : > { %p10372_p1 = pneg %p10371_p0 }
  0x30   : > { %p10377_p7 = pnand %p10376_p6, %p10372_p1 }
  0x32   : > { %10380 = shalt.err (!%p10377_p7)
}
  0x33   : > { %s10381_s21 = scalar_lea.vmem %s349_s15, 64  ;;  %s10612_s7 = smov [#allocation6]  }
  0x34   : > { %p10382_p9 = scmp.ne.s32.totalorder %s349_s15, %s10381_s21  ;;  %s10386_s0 = sshll.u32 %s10612_s7, 4  ;;  %s10387_s0 = int_to_ptr.vmem [resolvable:$false] %s10386_s0 }
  0x35   : > { %s10388_s22 = scalar_lea.vmem %s10387_s0, 128  ;;  %p10389_p0 = scmp.lt.s32.totalorder %s349_s15, %s10387_s0 }
  0x36   : > { %p10384_p5 = pnand %p10382_p9, %p11673_p13  ;;  %p10390_p3 = scmp.lt.s32.totalorder %s10388_s22, %s10381_s21 }
  0x38   : > { %p10385_p12 = pneg %p10384_p5  ;;  %p10391_p8 = por %p10390_p3, %p10389_p0 }
  0x3a   : > { %p10392_p11 = pnand %p10391_p8, %p10385_p12 }
  0x3c   : > { %10395 = shalt.err (!%p10392_p11)
}
  0x3d   : > { %8940 = dma.hbm_to_vmem [thread:$0]  (!%p10736_p10), %s10748_s12, 64, %s349_s15, %s10760_s19  }
  0x3e   : > { %p7966_p5 = scmp.ge.s32.totalorder %s10610_s30, 1  ;;  %p453_p9 = scmp.lt.s32.totalorder %s10610_s30, 8 }
  0x3f   : > { %s7862_s7 = sadd.s32 4294967294, %s10610_s30  ;;  %s7868_s29 = sadd.s32 4294967294, %s10703_s9 }
  0x40   : > { %p10785_p1 = pnand %p7966_p5, %p453_p9  ;;  %p115_p3 = scmp.gt.s32.totalorder %s7862_s7, 0 }
  0x41   : > { %p7863_p8 = scmp.lt.s32.totalorder %s7862_s7, 3  ;;  %p120_p11 = scmp.gt.s32.totalorder %s7868_s29, 0 }
  0x42   : > { %s11691_s0 = scalar_select %p10785_p1, 1, 0 }
  0x43   : > { %p7869_p2 = scmp.lt.s32.totalorder %s7868_s29, 3  ;;  %s11735_s7 = smov (!%p115_p3, %s7862_s7), 0 }
  0x44   : > { %s11737_s29 = smov (!%p120_p11, %s7868_s29), 0  ;;  %s11739_s7 = smov (!%p7863_p8, %s11735_s7), 3 }
  0x45   : > { %s11741_s29 = smov (!%p7869_p2, %s11737_s29), 3  ;;  %s127_s15 = sadd.s32 1, %s10594_s26 }
  0x46   : > { %p134_p4 = scmp.ne.s32.totalorder %s10594_s26, %s10590_s25  ;;  %s124_s21 = ssub.s32 %s11739_s7, %s11741_s29 }
  0x47   : > { %p140_p6 = scmp.ne.s32.totalorder %s10590_s25, %s10586_s24  ;;  %p125_p7 = scmp.eq.s32.totalorder %s124_s21, 0 }
  0x48   : > { %p11692_p12 = scmp.eq.s32.totalorder %s10610_s30, 0  ;;  %p11693_p5 = scmp.eq.s32.totalorder %s10700_s8, 0 }
  0x49   : > { %s357_s23 = sand.u32 1, %s10594_s26   ;;  %s8918_s13 = sshll.u32 %s11739_s7, 8 }
  0x4a   : > { %p136_p0 = por %p134_p4, %p11692_p12  ;;  %p10800_p9 = por %p140_p6, %p11693_p5 }
  0x4b   : > { %s10806_s27 = scalar_select %p125_p7, %s10594_s26, %s127_s15  }
  0x4c   : > { %s11694_s12 = scalar_select %p10800_p9, 1, 0 }
  0x4d   : > { %11696 = sst [smem:[#allocation27_spill]] %s10806_s27  ;;  %s7930_s10 = sshll.u32 %s357_s23, 11 }
  0x4e   : > { %11695 = sst [smem:[#allocation26_spill]] %s11694_s12  ;;  %s10811_s29 = scalar_lea.hbm %s11652_s3, %s8918_s13 }
  0x4f   : > { %s359_s24 = scalar_lea.vmem [#allocation8], %s7930_s10  ;;  %p11697_p3 = scmp.lt.s32.totalorder %s10610_s30, 7 }
  0x50   : > { %s371_s21 = sshll.u32 %s359_s24, 4  ;;  %s7939_s15 = sshll.u32 %s357_s23, 2  ;;  %s10819_s21 = int_to_ptr.vmem [resolvable:$true] %s371_s21 }
  0x51   : > { %p10815_p8 = pnand %p11697_p3, %p136_p0  ;;  %s8921_s27 = sshll.u32 %s11739_s7, 6 }
  0x52   : > { %s10824_s25 = scalar_lea.hbm %s11653_s4, %s8921_s27  ;;  %s385_s2 = scalar_lea.vmem [#allocation9], %s7939_s15 }
  0x53   : > { %s398_s10 = sshll.u32 %s385_s2, 4  ;;  %s8914_s13 = sshll.u32 %s10711_s11, 8  ;;  %s399_s10 = int_to_ptr.vmem [resolvable:$true] %s398_s10 }
  0x54   : > { %s11699_s22 = sand.u32 1, %s10610_s30   ;;  %s10396_s8 = scalar_lea.hbm %s10824_s25, 64 }
  0x55   : > { %s10829_s24 = scalar_lea.sflag [#allocation10], %s11699_s22  ;;  %p10397_p11 = scmp.ne.s32.totalorder %s10824_s25, %s10396_s8 }
  0x56   : > { %p11677_p2 = pneg %p10815_p8  ;;  %s10401_s12 = scalar_lea.hbm %s11653_s4, 256 }
  0x57   : > { %p10402_p7 = scmp.lt.s32.totalorder %s10824_s25, %s11653_s4  ;;  %p10403_p12 = scmp.lt.s32.totalorder %s10401_s12, %s10396_s8 }
  0x58   : > { %p10399_p4 = pnand %p11677_p2, %p10397_p11 }
  0x59   : > { %p10404_p0 = por %p10403_p12, %p10402_p7 }
  0x5a   : > { %p10400_p6 = pneg %p10399_p4 }
  0x5c   : > { %p10405_p5 = pnand %p10404_p0, %p10400_p6 }
  0x5e   : > { %10408 = shalt.err (!%p10405_p5)
}
  0x5f   : > { %s10409_s30 = scalar_lea.vmem %s399_s10, 64  ;;  %s10613_s11 = smov [#allocation9]  }
  0x60   : > { %p10410_p3 = scmp.ne.s32.totalorder %s399_s10, %s10409_s30  ;;  %s10414_s15 = sshll.u32 %s10613_s11, 4  ;;  %s10415_s15 = int_to_ptr.vmem [resolvable:$false] %s10414_s15 }
  0x61   : > { %s10416_s2 = scalar_lea.vmem %s10415_s15, 128  ;;  %p10417_p4 = scmp.lt.s32.totalorder %s399_s10, %s10415_s15 }
  0x62   : > { %p10412_p13 = pnand %p10410_p3, %p11677_p2  ;;  %p10418_p9 = scmp.lt.s32.totalorder %s10416_s2, %s10409_s30 }
  0x64   : > { %p10413_p11 = pneg %p10412_p13  ;;  %p10419_p1 = por %p10418_p9, %p10417_p4 }
  0x66   : > { %p10420_p10 = pnand %p10419_p1, %p10413_p11 }
  0x68   : > { %10423 = shalt.err (!%p10420_p10)
}
  0x69   : > { %8946 = dma.hbm_to_vmem [thread:$0]  (!%p10815_p8), %s10824_s25, 64, %s399_s10, %s10829_s24  }
  0x6a   : > { %s10855_s26 = scalar_lea.hbm %s11650_s1, %s8914_s13  ;;  %s312_s7 = scalar_lea.sflag [#allocation5], %s10731_s16 }
  0x6b   : > { %s10424_s12 = scalar_lea.hbm %s10855_s26, 16384  ;;  %p11700_p1 = scmp.ne.s32.totalorder %s11688_s18, 0 }
  0x6c   : > { %p10425_p13 = scmp.ne.s32.totalorder %s10855_s26, %s10424_s12  ;;  %s10429_s30 = scalar_lea.hbm %s11650_s1, 32768 }
  0x6d   : > { %p11701_p10 = pneg %p11700_p1  ;;  %p10430_p7 = scmp.lt.s32.totalorder %s10855_s26, %s11650_s1 }
  0x6e   : > { %p10431_p12 = scmp.lt.s32.totalorder %s10429_s30, %s10424_s12 }
  0x6f   : > { %p10427_p9 = pnand %p10425_p13, %p11701_p10 }
  0x70   : > { %p10432_p0 = por %p10431_p12, %p10430_p7 }
  0x71   : > { %p10428_p6 = pneg %p10427_p9 }
  0x73   : > { %p10433_p5 = pnand %p10432_p0, %p10428_p6 }
  0x75   : > { %10436 = shalt.err (!%p10433_p5)
}
  0x76   : > { %s10437_s13 = scalar_lea.vmem %s10741_s20, 16384  ;;  %p11702_p11 = pmov %p11701_p10 }
  0x77   : > { %p10438_p3 = scmp.ne.s32.totalorder %s10741_s20, %s10437_s13  ;;  %s10614_s11 = smov [#allocation4]  }
  0x78   : > { %s10442_s15 = sshll.u32 %s10614_s11, 4  ;;  %s10443_s15 = int_to_ptr.vmem [resolvable:$false] %s10442_s15 }
  0x79   : > { %p10440_p4 = pnand %p10438_p3, %p11702_p11  ;;  %s10444_s2 = scalar_lea.vmem %s10443_s15, 32768 }
  0x7a   : > { %p10445_p10 = scmp.lt.s32.totalorder %s10741_s20, %s10443_s15  ;;  %p10446_p9 = scmp.lt.s32.totalorder %s10444_s2, %s10437_s13 }
  0x7b   : > { %p10441_p13 = pneg %p10440_p4 }
  0x7c   : > { %p10447_p2 = por %p10446_p9, %p10445_p10 }
  0x7e   : > { %p10448_p7 = pnand %p10447_p2, %p10441_p13 }
  0x80   : > { %10451 = shalt.err (!%p10448_p7)
}
  0x81   : > { %s10615_s8 = smov 512   ;;  %s10616_s22 = smov 256  }
  0x82   : > { %s10617_s12 = smov 16   ;;  %s10452_s23 = scalar_lea.hbm %s10811_s29, 32768 }
  0x83   : > { %8937 = dma.hbm_to_vmem [thread:$0]  (!%p11700_p1), %s10855_s26, 16384, %s10741_s20, %s312_s7, %s10615_s8, %s10616_s22, %s10617_s12  }
  0x84   : > { %p10453_p6 = scmp.ne.s32.totalorder %s10811_s29, %s10452_s23  ;;  %p11703_p2 = pneg %p10815_p8 }
  0x85   : > { %s10457_s25 = scalar_lea.hbm %s11652_s3, 131072  ;;  %p10458_p5 = scmp.lt.s32.totalorder %s10811_s29, %s11652_s3 }
  0x86   : > { %p10455_p12 = pnand %p10453_p6, %p11703_p2  ;;  %p10459_p3 = scmp.lt.s32.totalorder %s10457_s25, %s10452_s23 }
  0x88   : > { %p10456_p0 = pneg %p10455_p12  ;;  %p10460_p11 = por %p10459_p3, %p10458_p5 }
  0x8a   : > { %p10461_p4 = pnand %p10460_p11, %p10456_p0 }
  0x8c   : > { %10464 = shalt.err (!%p10461_p4)
}
  0x8d   : > { %s10465_s16 = scalar_lea.vmem %s10819_s21, 32768  ;;  %p11704_p13 = pmov %p11703_p2 }
  0x8e   : > { %p10466_p1 = scmp.ne.s32.totalorder %s10819_s21, %s10465_s16  ;;  %s10618_s18 = smov [#allocation8]  }
  0x8f   : > { %s10470_s20 = sshll.u32 %s10618_s18, 4  ;;  %s10471_s20 = int_to_ptr.vmem [resolvable:$false] %s10470_s20 }
  0x90   : > { %p10468_p10 = pnand %p10466_p1, %p11704_p13  ;;  %s10472_s26 = scalar_lea.vmem %s10471_s20, 65536 }
  0x91   : > { %p10473_p7 = scmp.lt.s32.totalorder %s10819_s21, %s10471_s20  ;;  %p10474_p6 = scmp.lt.s32.totalorder %s10472_s26, %s10465_s16 }
  0x92   : > { %p10469_p9 = pneg %p10468_p10 }
  0x93   : > { %p10475_p2 = por %p10474_p6, %p10473_p7 }
  0x95   : > { %p10476_p12 = pnand %p10475_p2, %p10469_p9 }
  0x97   : > { %10479 = shalt.err (!%p10476_p12)
}
  0x98   : > { %s10619_s7 = smov 1024   ;;  %s10620_s11 = smov [#allocation11]  }
  0x99   : > { %8943 = dma.hbm_to_vmem [thread:$0]  (!%p10815_p8), %s10811_s29, 32768, %s10819_s21, %s10760_s19, %s10619_s7, %s10616_s22, %s10617_s12  }
  0x9a   : > { %s421_s15 = sshll.u32 %s10620_s11, 4  ;;  %s10621_s2 = smov [#allocation12]   ;;  %s422_s15 = int_to_ptr.vmem [resolvable:$true] %s421_s15 }
  0x9b   : > { %s448_s8 = sshll.u32 %s10621_s2, 4  ;;  %p11705_p0 = scmp.ne.s32.totalorder %s11690_s17, 0  ;;  %s449_s8 = int_to_ptr.vmem [resolvable:$true] %s448_s8 }
  0x9c   : > { %s10491_s23 = scalar_lea.vmem %s422_s15, 65536  ;;  %s10498_s9 = scalar_lea.vmem %s422_s15, 131072 }
  0x9d   : > { %p10482_p5 = pneg %p11705_p0  ;;  %p10492_p3 = scmp.ne.s32.totalorder %s422_s15, %s10491_s23 }
  0x9e   : > { %p10499_p1 = scmp.lt.s32.totalorder %s422_s15, %s422_s15  ;;  %p10500_p13 = scmp.lt.s32.totalorder %s10498_s9, %s10491_s23 }
  0x9f   : > { %p10494_p11 = pnand %p10492_p3, %p10482_p5 }
  0xa0   : > { %p10501_p10 = por %p10500_p13, %p10499_p1 }
  0xa1   : > { %p10495_p4 = pneg %p10494_p11 }
  0xa3   : > { %p10502_p9 = pnand %p10501_p10, %p10495_p4 }
  0xa5   : > { %10505 = shalt.err (!%p10502_p9)
}
  0xa6   : > { %8949 = dma.hbm_to_vmem [thread:$0]  (!%p11705_p0), %s11654_s5, 65536, %s422_s15, %s10829_s24, %s10616_s22, %s10616_s22, %s10617_s12  }
  0xa7   : > { %s10517_s21 = scalar_lea.vmem %s449_s8, 64  ;;  %s10524_s27 = scalar_lea.vmem %s449_s8, 128 }
  0xa8   : > { %p10518_p8 = scmp.ne.s32.totalorder %s449_s8, %s10517_s21  ;;  %p10525_p2 = scmp.lt.s32.totalorder %s449_s8, %s449_s8 }
  0xa9   : > { %p10526_p12 = scmp.lt.s32.totalorder %s10524_s27, %s10517_s21 }
  0xaa   : > { %p10520_p7 = pnand %p10518_p8, %p10482_p5 }
  0xab   : > { %p10527_p3 = por %p10526_p12, %p10525_p2 }
  0xac   : > { %p10521_p6 = pneg %p10520_p7 }
  0xae   : > { %p10528_p11 = pnand %p10527_p3, %p10521_p6 }
  0xb0   : > { %10531 = shalt.err (!%p10528_p11)
}
  0xb1   : > { %8952 = dma.hbm_to_vmem [thread:$0]  (!%p11705_p0), %s11655_s6, 64, %s449_s8, [#allocation13]  }
  0xb2   : > { %p11706_p4 = scmp.ne.s32.totalorder %s11691_s0, 0 }
  0xb3   : > { %s459_s24 = sand.u32 (!%p11706_p4), 1, %s10602_s28   ;;  %p11707_p5 = scmp.ne.s32.totalorder (!%p11706_p4), %s11686_s14, 0 }
  0xb4   : > { %457 = sbr.rel (%p11706_p4) target bundleno = 1842 (0x732), region = 48  ;;  %s7967_s22 = sshll.u32 (!%p11706_p4), %s459_s24, 10 }
  0xb5   : > { %s460_s12 = scalar_lea.sflag (!%p11706_p4), [#allocation5], %s459_s24  ;;  %s10934_s10 = scalar_lea.vmem (!%p11706_p4), [#allocation4], %s7967_s22 }
  0xb9   : > { %10561 = dma.done.wait (%p11707_p5), %s460_s12, 16384  }
  0xba   : > { %10563 = vsyncadd (%p11707_p5), %s460_s12, 4294950912  ;;  %s11708_s17 = sld [smem:[#allocation23_spill]]  ;;  %s7968_s16 = sshll.u32 %s459_s24, 2 }
  0xbb   : > { %s10941_s20 = scalar_lea.vmem [#allocation6], %s7968_s16 }
  0xc0   : > { %s468_s13 = sand.u32 1, %s11708_s17  }
  0xc1   : > { %s469_s18 = scalar_lea.sflag [#allocation7], %s468_s13 }
  0xc2   : > { %10565 = dma.done.wait (%p11707_p5), %s469_s18, 64  }
  0xc3   : > { %10567 = vsyncadd (%p11707_p5), %s469_s18, 4294967232  ;;  %s11709_s0 = sld [smem:[#allocation20_spill]] }
  0xc4   : > { %s11710_s26 = sld [smem:[#allocation26_spill]] }
  0xc9   : > { %s479_s7 = sand.u32 1, %s11709_s0  }
  0xca   : > { %s7969_s11 = sshll.u32 %s479_s7, 11  ;;  %p11711_p0 = scmp.ne.s32.totalorder %s11710_s26, 0 }
  0xcb   : > { %s10948_s15 = scalar_lea.vmem [#allocation8], %s7969_s11 }
  0xcc   : > { %10569 = dma.done.wait (%p11711_p0), %s469_s18, 32768  }
  0xcd   : > { %10571 = vsyncadd (%p11711_p0), %s469_s18, 4294934528  ;;  %s10954_s2 = sshll.u32 %s479_s7, 2  ;;  %s487_s8 = scalar_lea.sflag [#allocation10], %s468_s13 }
  0xce   : > { %s490_s23 = scalar_lea.vmem [#allocation9], %s10954_s2 }
  0xcf   : > { %10573 = dma.done.wait (%p11711_p0), %s487_s8, 64  }
  0xd0   : > { %10575 = vsyncadd (%p11711_p0), %s487_s8, 4294967232  ;;  %p11712_p1 = scmp.eq.s32.totalorder %s11708_s17, 0 }
  0xd2   : > { %10577 = dma.done.wait (%p11712_p1), %s487_s8, 65536   ;;  %p11713_p13 = pmov %p11712_p1 }
  0xd3   : > { %p11714_p10 = pmov %p11712_p1 }
  0xd4   : > { %10579 = vsyncadd (%p11713_p13), %s487_s8, 4294901760 }
  0xd5   : > { %10581 = dma.done.wait (%p11714_p10), [#allocation13], 64   ;;  %p11715_p9 = pmov %p11712_p1 }
  0xd6   : > { %p7981_p8 = scmp.ge.s32.totalorder %s11708_s17, 2 }
  0xd7   : > { %10583 = vsyncadd (%p11715_p9), [#allocation13], 4294967232  ;;  %s11716_s19 = sld [smem:[#allocation28_spill]] (!%p7981_p8) }
  0xd8   : > { %618 = sbr.rel (%p7981_p8) target bundleno = 578 (0x242), region = 76  ;;  %s11717_s29 = sld [smem:[#allocation23_spill]] (!%p7981_p8) }
  0xdd   : > { %v9020_v0 = vld [vmem:[%s10934_s10 + $0xe4] ss:$16 sps:$4 sm:$0xff]   ;;  %v9024_v2 = vld [vmem:[%s10934_s10 + $0xe0] ss:$16 sps:$4 sm:$0xff]   ;;  %v750_v38 = vlaneseq  ;;  %v10622_v39 = vmov 1966171168  }
  0xde   : > { %v9022_v1 = vld [vmem:[%s10934_s10 + $0x2e4] ss:$16 sps:$4 sm:$0xff]   ;;  %1439 = vmatprep.subr.bf16.mxu0 %v9020_v0  ;;  %v9025_v3 = vld [vmem:[%s10934_s10 + $0x2e0] ss:$16 sps:$4 sm:$0xff]   ;;  %v780_v40 = vunpack.c.l.s4 %v10622_v39  ;;  %v9155_v39 = vld [vmem:[%s10934_s10 + $0x228] ss:$16 sps:$4 sm:$0xff]  }
  0xdf   : > { %1480 = vmatprep.subr.bf16.mxu1 %v9022_v1  ;;  %v9026_v4 = vld [vmem:[%s10934_s10 + $0xc4] ss:$16 sps:$4 sm:$0xff]   ;;  %1440 = vmatpush1.bf16.msra.mxu0 %v9024_v2  ;;  %v9030_v6 = vld [vmem:[%s10934_s10 + $0xc0] ss:$16 sps:$4 sm:$0xff]   ;;  %v11014_v45 = vshrl.u32 %v750_v38, 7  ;;  %p8111_p7 = scmp.ne.s32.totalorder %s11717_s29, 0 }
  0xe0   : > { %1481 = vmatpush1.bf16.msra.mxu1 %v9025_v3  ;;  %v9028_v5 = vld [vmem:[%s10934_s10 + $0x2c4] ss:$16 sps:$4 sm:$0xff]   ;;  %1441 = vmatprep.subr.bf16.mxu0 %v9026_v4  ;;  %v9031_v7 = vld [vmem:[%s10934_s10 + $0x2c0] ss:$16 sps:$4 sm:$0xff]   ;;  %v781_v46 = vunpack.c.0.s8 %v780_v40  ;;  %v9152_v38 = vld [vmem:[%s10934_s10 + $0x28] ss:$16 sps:$4 sm:$0xff]  }
  0xe1   : > { %1482 = vmatprep.subr.bf16.mxu1 %v9028_v5  ;;  %v9032_v8 = vld [vmem:[%s10934_s10 + $0xa4] ss:$16 sps:$4 sm:$0xff]   ;;  %v9036_v10 = vld [vmem:[%s10934_s10 + $0xa0] ss:$16 sps:$4 sm:$0xff]   ;;  %v9160_v40 = vld [vmem:[%s10934_s10 + $0xc] ss:$16 sps:$4 sm:$0xff]  }
  0xe2   : > { %v9034_v9 = vld [vmem:[%s10934_s10 + $0x2a4] ss:$16 sps:$4 sm:$0xff]   ;;  %v9037_v11 = vld [vmem:[%s10934_s10 + $0x2a0] ss:$16 sps:$4 sm:$0xff]   ;;  %v11021_v51 = vsub.s32 %v781_v46, %v11014_v45  ;;  %v9169_v46 = vld [vmem:[%s10934_s10 + $0x3ec] ss:$16 sps:$4 sm:$0xff]  }
  0xe3   : > { %1442 = vmatpush1.bf16.msra.mxu0 %v9030_v6  ;;  %v9038_v12 = vld [vmem:[%s10934_s10 + $0x84] ss:$16 sps:$4 sm:$0xff]   ;;  %v9042_v14 = vld [vmem:[%s10934_s10 + $0x80] ss:$16 sps:$4 sm:$0xff]  }
  0xe4   : > { %1483 = vmatpush1.bf16.msra.mxu1 %v9031_v7  ;;  %1443 = vmatprep.subr.bf16.mxu0 %v9032_v8  ;;  %v9040_v13 = vld [vmem:[%s10934_s10 + $0x284] ss:$16 sps:$4 sm:$0xff]   ;;  %v9043_v15 = vld [vmem:[%s10934_s10 + $0x280] ss:$16 sps:$4 sm:$0xff]  }
  0xe5   : > { %1484 = vmatprep.subr.bf16.mxu1 %v9034_v9  ;;  %v9044_v16 = vld [vmem:[%s10934_s10 + $0x64] ss:$16 sps:$4 sm:$0xff]   ;;  %v9048_v18 = vld [vmem:[%s10934_s10 + $0x60] ss:$16 sps:$4 sm:$0xff]  }
  0xe6   : > { %v9046_v17 = vld [vmem:[%s10934_s10 + $0x264] ss:$16 sps:$4 sm:$0xff]   ;;  %v9049_v19 = vld [vmem:[%s10934_s10 + $0x260] ss:$16 sps:$4 sm:$0xff]  }
  0xe7   : > { %1444 = vmatpush1.bf16.msra.mxu0 %v9036_v10  ;;  %v9050_v20 = vld [vmem:[%s10934_s10 + $0x44] ss:$16 sps:$4 sm:$0xff]   ;;  %v9054_v22 = vld [vmem:[%s10934_s10 + $0x40] ss:$16 sps:$4 sm:$0xff]  }
  0xe8   : > { %1485 = vmatpush1.bf16.msra.mxu1 %v9037_v11  ;;  %1445 = vmatprep.subr.bf16.mxu0 %v9038_v12  ;;  %v9052_v21 = vld [vmem:[%s10934_s10 + $0x244] ss:$16 sps:$4 sm:$0xff]   ;;  %v9055_v23 = vld [vmem:[%s10934_s10 + $0x240] ss:$16 sps:$4 sm:$0xff]   ;;  %v9118_v11 = vld [vmem:[%s10934_s10 + $0xec] ss:$16 sps:$4 sm:$0xff]  }
  0xe9   : > { %1486 = vmatprep.subr.bf16.mxu1 %v9040_v13  ;;  %v9056_v24 = vld [vmem:[%s10934_s10 + $0x24] ss:$16 sps:$4 sm:$0xff]   ;;  %v9060_v26 = vld [vmem:[%s10934_s10 + $0x20] ss:$16 sps:$4 sm:$0xff]   ;;  %v9121_v12 = vld [vmem:[%s10934_s10 + $0x2ec] ss:$16 sps:$4 sm:$0xff]  }
  0xea   : > { %v9058_v25 = vld [vmem:[%s10934_s10 + $0x224] ss:$16 sps:$4 sm:$0xff]   ;;  %v9061_v27 = vld [vmem:[%s10934_s10 + $0x220] ss:$16 sps:$4 sm:$0xff]  }
  0xeb   : > { %1446 = vmatpush1.bf16.msra.mxu0 %v9042_v14  ;;  %v9062_v28 = vld [vmem:[%s10934_s10 + $0x4] ss:$16 sps:$4 sm:$0xff]   ;;  %v9066_v30 = vld [vmem:[%s10934_s10] ss:$16 sps:$4 sm:$0xff]   ;;  %v9116_v14 = vld [vmem:[%s10934_s10 + $0xe8] ss:$16 sps:$4 sm:$0xff]  }
  0xec   : > { %1487 = vmatpush1.bf16.msra.mxu1 %v9043_v15  ;;  %1447 = vmatprep.subr.bf16.mxu0 %v9044_v16  ;;  %v9064_v29 = vld [vmem:[%s10934_s10 + $0x204] ss:$16 sps:$4 sm:$0xff]   ;;  %v9067_v31 = vld [vmem:[%s10934_s10 + $0x200] ss:$16 sps:$4 sm:$0xff]   ;;  %v9119_v15 = vld [vmem:[%s10934_s10 + $0x2e8] ss:$16 sps:$4 sm:$0xff]  }
  0xed   : > { %1488 = vmatprep.subr.bf16.mxu1 %v9046_v17  ;;  %v9068_v32 = vld [vmem:[%s10934_s10 + $0x1e4] ss:$16 sps:$4 sm:$0xff]   ;;  %v9072_v34 = vld [vmem:[%s10934_s10 + $0x1e0] ss:$16 sps:$4 sm:$0xff]   ;;  %v9124_v16 = vld [vmem:[%s10934_s10 + $0xcc] ss:$16 sps:$4 sm:$0xff]  }
  0xee   : > { %v9070_v33 = vld [vmem:[%s10934_s10 + $0x3e4] ss:$16 sps:$4 sm:$0xff]   ;;  %v9073_v35 = vld [vmem:[%s10934_s10 + $0x3e0] ss:$16 sps:$4 sm:$0xff]   ;;  %v9127_v17 = vld [vmem:[%s10934_s10 + $0x2cc] ss:$16 sps:$4 sm:$0xff]  }
  0xef   : > { %1448 = vmatpush1.bf16.msra.mxu0 %v9048_v18  ;;  %v9074_v36 = vld [vmem:[%s10934_s10 + $0x1c4] ss:$16 sps:$4 sm:$0xff]   ;;  %v9078_v41 = vld [vmem:[%s10934_s10 + $0x1c0] ss:$16 sps:$4 sm:$0xff]   ;;  %v9122_v18 = vld [vmem:[%s10934_s10 + $0xc8] ss:$16 sps:$4 sm:$0xff]  }
  0xf0   : > { %1489 = vmatpush1.bf16.msra.mxu1 %v9049_v19  ;;  %1449 = vmatprep.subr.bf16.mxu0 %v9050_v20  ;;  %v9076_v37 = vld [vmem:[%s10934_s10 + $0x3c4] ss:$16 sps:$4 sm:$0xff]   ;;  %v9079_v42 = vld [vmem:[%s10934_s10 + $0x3c0] ss:$16 sps:$4 sm:$0xff]   ;;  %v9125_v19 = vld [vmem:[%s10934_s10 + $0x2c8] ss:$16 sps:$4 sm:$0xff]  }
  0xf1   : > { %1490 = vmatprep.subr.bf16.mxu1 %v9052_v21  ;;  %v9080_v43 = vld [vmem:[%s10934_s10 + $0x1a4] ss:$16 sps:$4 sm:$0xff]   ;;  %v9084_v47 = vld [vmem:[%s10934_s10 + $0x1a0] ss:$16 sps:$4 sm:$0xff]   ;;  %v9130_v20 = vld [vmem:[%s10934_s10 + $0xac] ss:$16 sps:$4 sm:$0xff]  }
  0xf2   : > { %v9082_v44 = vld [vmem:[%s10934_s10 + $0x3a4] ss:$16 sps:$4 sm:$0xff]   ;;  %v9085_v48 = vld [vmem:[%s10934_s10 + $0x3a0] ss:$16 sps:$4 sm:$0xff]   ;;  %v9133_v21 = vld [vmem:[%s10934_s10 + $0x2ac] ss:$16 sps:$4 sm:$0xff]  }
  0xf3   : > { %1450 = vmatpush1.bf16.msra.mxu0 %v9054_v22  ;;  %v9086_v49 = vld [vmem:[%s10934_s10 + $0x184] ss:$16 sps:$4 sm:$0xff]   ;;  %v7982_v52 = vld.sshfl [vmem:[%s11716_s19] sm:$0x33 pattern:$0x75316420] }
  0xf4   : > { %1491 = vmatpush1.bf16.msra.mxu1 %v9055_v23  ;;  %1451 = vmatprep.subr.bf16.mxu0 %v9056_v24  ;;  %v9088_v50 = vld [vmem:[%s10934_s10 + $0x384] ss:$16 sps:$4 sm:$0xff]   ;;  %v9090_v53 = vld [vmem:[%s10934_s10 + $0x180] ss:$16 sps:$4 sm:$0xff]   ;;  %v778_v55 = vcombine.high %v7982_v52, %v7982_v52  ;;  %v11045_v9 = vrot.slane %v7982_v52, %v11021_v51  ;;  %v9128_v22 = vld [vmem:[%s10934_s10 + $0xa8] ss:$16 sps:$4 sm:$0xff]  }
  0xf5   : > { %1492 = vmatprep.subr.bf16.mxu1 %v9058_v25  ;;  %v9091_v54 = vld [vmem:[%s10934_s10 + $0x380] ss:$16 sps:$4 sm:$0xff]   ;;  %v9092_v56 = vld [vmem:[%s10934_s10 + $0x164] ss:$16 sps:$4 sm:$0xff]   ;;  %v9131_v23 = vld [vmem:[%s10934_s10 + $0x2a8] ss:$16 sps:$4 sm:$0xff]  }
  0xf6   : > { %v9094_v57 = vld [vmem:[%s10934_s10 + $0x364] ss:$16 sps:$4 sm:$0xff]   ;;  %v792_v58 = vrot.slane %v778_v55, %v11021_v51  ;;  %v9096_v59 = vld [vmem:[%s10934_s10 + $0x160] ss:$16 sps:$4 sm:$0xff]   ;;  %v11052_v13 = vcombine.high %v11045_v9, %v11045_v9  ;;  %v9136_v24 = vld [vmem:[%s10934_s10 + $0x8c] ss:$16 sps:$4 sm:$0xff]  }
  0xf7   : > { %1452 = vmatpush1.bf16.msra.mxu0 %v9060_v26  ;;  %v9097_v60 = vld [vmem:[%s10934_s10 + $0x360] ss:$16 sps:$4 sm:$0xff]   ;;  %v9098_v62 = vld [vmem:[%s10934_s10 + $0x144] ss:$16 sps:$4 sm:$0xff]   ;;  %v9139_v25 = vld [vmem:[%s10934_s10 + $0x28c] ss:$16 sps:$4 sm:$0xff]  }
  0xf8   : > { %1493 = vmatpush1.bf16.msra.mxu1 %v9061_v27  ;;  %1453 = vmatprep.subr.bf16.mxu0 %v9062_v28  ;;  %v794_v61 = vcombine.high %v792_v58, %v792_v58  ;;  %v9100_v63 = vld [vmem:[%s10934_s10 + $0x344] ss:$16 sps:$4 sm:$0xff]   ;;  %v9102_v0 = vld [vmem:[%s10934_s10 + $0x140] ss:$16 sps:$4 sm:$0xff]   ;;  %v9134_v26 = vld [vmem:[%s10934_s10 + $0x88] ss:$16 sps:$4 sm:$0xff]  }
  0xf9   : > { %1494 = vmatprep.subr.bf16.mxu1 %v9064_v29  ;;  %1471 = vmatprep.mubr.bf16.mxu0 %v792_v58  ;;  %v9103_v1 = vld [vmem:[%s10934_s10 + $0x340] ss:$16 sps:$4 sm:$0xff]   ;;  %v9104_v2 = vld [vmem:[%s10934_s10 + $0x124] ss:$16 sps:$4 sm:$0xff]   ;;  %v9137_v27 = vld [vmem:[%s10934_s10 + $0x288] ss:$16 sps:$4 sm:$0xff]  }
  0xfa   : > { %1512 = vmatprep.mubr.bf16.mxu1 %v794_v61  ;;  %v9106_v3 = vld [vmem:[%s10934_s10 + $0x324] ss:$16 sps:$4 sm:$0xff]   ;;  %v9108_v4 = vld [vmem:[%s10934_s10 + $0x120] ss:$16 sps:$4 sm:$0xff]   ;;  %v9142_v28 = vld [vmem:[%s10934_s10 + $0x6c] ss:$16 sps:$4 sm:$0xff]  }
  0xfb   : > { %1454 = vmatpush1.bf16.msra.mxu0 %v9066_v30  ;;  %v9109_v5 = vld [vmem:[%s10934_s10 + $0x320] ss:$16 sps:$4 sm:$0xff]   ;;  %v9110_v6 = vld [vmem:[%s10934_s10 + $0x104] ss:$16 sps:$4 sm:$0xff]   ;;  %v9145_v29 = vld [vmem:[%s10934_s10 + $0x26c] ss:$16 sps:$4 sm:$0xff]  }
  0xfc   : > { %1495 = vmatpush1.bf16.msra.mxu1 %v9067_v31  ;;  %1455 = vmatprep.subr.bf16.mxu0 %v9068_v32  ;;  %v9112_v7 = vld [vmem:[%s10934_s10 + $0x304] ss:$16 sps:$4 sm:$0xff]   ;;  %v9114_v8 = vld [vmem:[%s10934_s10 + $0x100] ss:$16 sps:$4 sm:$0xff]   ;;  %v9140_v30 = vld [vmem:[%s10934_s10 + $0x68] ss:$16 sps:$4 sm:$0xff]  }
  0xfd   : > { %1496 = vmatprep.subr.bf16.mxu1 %v9070_v33  ;;  %v9115_v10 = vld [vmem:[%s10934_s10 + $0x300] ss:$16 sps:$4 sm:$0xff]   ;;  %v9143_v31 = vld [vmem:[%s10934_s10 + $0x268] ss:$16 sps:$4 sm:$0xff]   ;;  %v9148_v32 = vld [vmem:[%s10934_s10 + $0x4c] ss:$16 sps:$4 sm:$0xff]  }
  0xfe   : > { %v9151_v33 = vld [vmem:[%s10934_s10 + $0x24c] ss:$16 sps:$4 sm:$0xff]   ;;  %v9170_v52 = vld [vmem:[%s10934_s10 + $0x1c8] ss:$16 sps:$4 sm:$0xff]  }
  0xff   : > { %1456 = vmatpush2.bf16.msra.mxu0 %v9072_v34  ;;  %v9146_v34 = vld [vmem:[%s10934_s10 + $0x48] ss:$16 sps:$4 sm:$0xff]   ;;  %v9181_v55 = vld [vmem:[%s10934_s10 + $0x3ac] ss:$16 sps:$4 sm:$0xff]  }
 0x100   : > { %1497 = vmatpush2.bf16.msra.mxu1 %v9073_v35  ;;  %1457 = vmatprep.subr.bf16.mxu0 %v9074_v36  ;;  %v9149_v35 = vld [vmem:[%s10934_s10 + $0x248] ss:$16 sps:$4 sm:$0xff]   ;;  %v9154_v36 = vld [vmem:[%s10934_s10 + $0x2c] ss:$16 sps:$4 sm:$0xff]  }
 0x101   : > { %1498 = vmatprep.subr.bf16.mxu1 %v9076_v37  ;;  %v9157_v37 = vld [vmem:[%s10934_s10 + $0x22c] ss:$16 sps:$4 sm:$0xff]  }
 0x103   : > { %1458 = vmatpush2.bf16.msra.mxu0 %v9078_v41  ;;  %v9163_v41 = vld [vmem:[%s10934_s10 + $0x20c] ss:$16 sps:$4 sm:$0xff]  }
 0x104   : > { %1499 = vmatpush2.bf16.msra.mxu1 %v9079_v42  ;;  %1459 = vmatprep.subr.bf16.mxu0 %v9080_v43  ;;  %v9158_v42 = vld [vmem:[%s10934_s10 + $0x8] ss:$16 sps:$4 sm:$0xff]  }
 0x105   : > { %1500 = vmatprep.subr.bf16.mxu1 %v9082_v44  ;;  %v9161_v43 = vld [vmem:[%s10934_s10 + $0x208] ss:$16 sps:$4 sm:$0xff]   ;;  %v9166_v44 = vld [vmem:[%s10934_s10 + $0x1ec] ss:$16 sps:$4 sm:$0xff]  }
 0x107   : > { %1460 = vmatpush2.bf16.msra.mxu0 %v9084_v47  ;;  %v9164_v47 = vld [vmem:[%s10934_s10 + $0x1e8] ss:$16 sps:$4 sm:$0xff]  }
 0x108   : > { %1501 = vmatpush2.bf16.msra.mxu1 %v9085_v48  ;;  %1461 = vmatprep.subr.bf16.mxu0 %v9086_v49  ;;  %v9167_v48 = vld [vmem:[%s10934_s10 + $0x3e8] ss:$16 sps:$4 sm:$0xff]   ;;  %v9172_v49 = vld [vmem:[%s10934_s10 + $0x1cc] ss:$16 sps:$4 sm:$0xff]  }
 0x109   : > { %1502 = vmatprep.subr.bf16.mxu1 %v9088_v50  ;;  %v9175_v50 = vld [vmem:[%s10934_s10 + $0x3cc] ss:$16 sps:$4 sm:$0xff]  }
 0x10b   : > { %1462 = vmatpush2.bf16.msra.mxu0 %v9090_v53  ;;  %v9173_v53 = vld [vmem:[%s10934_s10 + $0x3c8] ss:$16 sps:$4 sm:$0xff]  }
 0x10c   : > { %1503 = vmatpush2.bf16.msra.mxu1 %v9091_v54  ;;  %1463 = vmatprep.subr.bf16.mxu0 %v9092_v56  ;;  %v9178_v54 = vld [vmem:[%s10934_s10 + $0x1ac] ss:$16 sps:$4 sm:$0xff]   ;;  %v9176_v56 = vld [vmem:[%s10934_s10 + $0x1a8] ss:$16 sps:$4 sm:$0xff]  }
 0x10d   : > { %1504 = vmatprep.subr.bf16.mxu1 %v9094_v57  ;;  %v9179_v57 = vld [vmem:[%s10934_s10 + $0x3a8] ss:$16 sps:$4 sm:$0xff]  }
 0x10f   : > { %1464 = vmatpush2.bf16.msra.mxu0 %v9096_v59  ;;  %v9187_v59 = vld [vmem:[%s10934_s10 + $0x38c] ss:$16 sps:$4 sm:$0xff]  }
 0x110   : > { %1505 = vmatpush2.bf16.msra.mxu1 %v9097_v60  ;;  %1465 = vmatprep.subr.bf16.mxu0 %v9098_v62  ;;  %v9182_v60 = vld [vmem:[%s10934_s10 + $0x188] ss:$16 sps:$4 sm:$0xff]   ;;  %v9190_v62 = vld [vmem:[%s10934_s10 + $0x16c] ss:$16 sps:$4 sm:$0xff]  }
 0x111   : > { %1506 = vmatprep.subr.bf16.mxu1 %v9100_v63  ;;  %v9193_v63 = vld [vmem:[%s10934_s10 + $0x36c] ss:$16 sps:$4 sm:$0xff]  }
 0x113   : > { %1466 = vmatpush2.bf16.msra.mxu0 %v9102_v0  ;;  %v9188_v0 = vld [vmem:[%s10934_s10 + $0x168] ss:$16 sps:$4 sm:$0xff]  }
 0x114   : > { %1507 = vmatpush2.bf16.msra.mxu1 %v9103_v1  ;;  %1467 = vmatprep.subr.bf16.mxu0 %v9104_v2  ;;  %v9191_v1 = vld [vmem:[%s10934_s10 + $0x368] ss:$16 sps:$4 sm:$0xff]   ;;  %v9196_v2 = vld [vmem:[%s10934_s10 + $0x14c] ss:$16 sps:$4 sm:$0xff]  }
 0x115   : > { %1508 = vmatprep.subr.bf16.mxu1 %v9106_v3  ;;  %v9199_v3 = vld [vmem:[%s10934_s10 + $0x34c] ss:$16 sps:$4 sm:$0xff]  }
 0x117   : > { %1468 = vmatpush2.bf16.msra.mxu0 %v9108_v4  ;;  %v9194_v4 = vld [vmem:[%s10934_s10 + $0x148] ss:$16 sps:$4 sm:$0xff]  }
 0x118   : > { %1509 = vmatpush2.bf16.msra.mxu1 %v9109_v5  ;;  %1469 = vmatprep.subr.bf16.mxu0 %v9110_v6  ;;  %v9197_v5 = vld [vmem:[%s10934_s10 + $0x348] ss:$16 sps:$4 sm:$0xff]   ;;  %v9202_v6 = vld [vmem:[%s10934_s10 + $0x12c] ss:$16 sps:$4 sm:$0xff]  }
 0x119   : > { %1510 = vmatprep.subr.bf16.mxu1 %v9112_v7  ;;  %v9205_v7 = vld [vmem:[%s10934_s10 + $0x32c] ss:$16 sps:$4 sm:$0xff]  }
 0x11b   : > { %1470 = vmatpush2.bf16.msra.mxu0 %v9114_v8  ;;  %v9200_v8 = vld [vmem:[%s10934_s10 + $0x128] ss:$16 sps:$4 sm:$0xff]  }
 0x11c   : > { %1511 = vmatpush2.bf16.msra.mxu1 %v9115_v10  ;;  %1521 = vmatprep.subr.bf16.mxu0 %v9118_v11  ;;  %v9203_v10 = vld [vmem:[%s10934_s10 + $0x328] ss:$16 sps:$4 sm:$0xff]   ;;  %v9208_v11 = vld [vmem:[%s10934_s10 + $0x10c] ss:$16 sps:$4 sm:$0xff]  }
 0x11d   : > { %1562 = vmatprep.subr.bf16.mxu1 %v9121_v12  ;;  %v9211_v12 = vld [vmem:[%s10934_s10 + $0x30c] ss:$16 sps:$4 sm:$0xff]  }
 0x11e   : > { %1472 = vmatmul.mubr.bf16.vlgmr.msra.gmra.mxu0 %v11045_v9 }
 0x11f   : > { %1513 = vmatmul.mubr.bf16.vlgmr.msra.gmra.mxu1 %v11052_v13  ;;  %1522 = vmatpush1.bf16.msra.mxu0 %v9116_v14  ;;  %v9206_v14 = vld [vmem:[%s10934_s10 + $0x108] ss:$16 sps:$4 sm:$0xff]  }
 0x120   : > { %1563 = vmatpush1.bf16.msra.mxu1 %v9119_v15  ;;  %1523 = vmatprep.subr.bf16.mxu0 %v9124_v16  ;;  %v9209_v15 = vld [vmem:[%s10934_s10 + $0x308] ss:$16 sps:$4 sm:$0xff]   ;;  %v752_v16 = vsub.s32 0, %v11014_v45 }
 0x121   : > { %1564 = vmatprep.subr.bf16.mxu1 %v9127_v17  ;;  %1553 = vmatprep.mubr.bf16.mxu0 %v792_v58  ;;  %v9184_v58 = vld [vmem:[%s10934_s10 + $0x18c] ss:$16 sps:$4 sm:$0xff]   ;;  %v748_v17 = vld [vmem:[%s10941_s20] sm:$0xf] }
 0x122   : > { %1594 = vmatprep.mubr.bf16.mxu1 %v794_v61  ;;  %v9185_v61 = vld [vmem:[%s10934_s10 + $0x388] ss:$16 sps:$4 sm:$0xff]  }
 0x123   : > { %1524 = vmatpush1.bf16.msra.mxu0 %v9122_v18  ;;  %v756_v18 = vsub.s32 1, %v11014_v45 }
 0x124   : > { %1565 = vmatpush1.bf16.msra.mxu1 %v9125_v19  ;;  %1525 = vmatprep.subr.bf16.mxu0 %v9130_v20  ;;  %v753_v19 = vrot.slane %v748_v17, %v752_v16 }
 0x125   : > { %1566 = vmatprep.subr.bf16.mxu1 %v9133_v21  ;;  %v757_v20 = vrot.slane %v748_v17, %v756_v18 }
 0x127   : > { %1526 = vmatpush1.bf16.msra.mxu0 %v9128_v22 }
 0x128   : > { %1567 = vmatpush1.bf16.msra.mxu1 %v9131_v23  ;;  %1527 = vmatprep.subr.bf16.mxu0 %v9136_v24 }
 0x129   : > { %1568 = vmatprep.subr.bf16.mxu1 %v9139_v25 }
 0x12b   : > { %1528 = vmatpush1.bf16.msra.mxu0 %v9134_v26 }
 0x12c   : > { %1569 = vmatpush1.bf16.msra.mxu1 %v9137_v27  ;;  %1529 = vmatprep.subr.bf16.mxu0 %v9142_v28 }
 0x12d   : > { %1570 = vmatprep.subr.bf16.mxu1 %v9145_v29 }
 0x12f   : > { %1530 = vmatpush1.bf16.msra.mxu0 %v9140_v30 }
 0x130   : > { %1571 = vmatpush1.bf16.msra.mxu1 %v9143_v31  ;;  %1531 = vmatprep.subr.bf16.mxu0 %v9148_v32 }
 0x131   : > { %1572 = vmatprep.subr.bf16.mxu1 %v9151_v33  ;;  %v760_v33 = vsub.s32 2, %v11014_v45 }
 0x133   : > { %1532 = vmatpush1.bf16.msra.mxu0 %v9146_v34  ;;  %v764_v34 = vsub.s32 3, %v11014_v45 }
 0x134   : > { %1573 = vmatpush1.bf16.msra.mxu1 %v9149_v35  ;;  %1533 = vmatprep.subr.bf16.mxu0 %v9154_v36  ;;  %v761_v35 = vrot.slane %v748_v17, %v760_v33 }
 0x135   : > { %1574 = vmatprep.subr.bf16.mxu1 %v9157_v37  ;;  %v765_v36 = vrot.slane %v748_v17, %v764_v34 }
 0x137   : > { %1534 = vmatpush1.bf16.msra.mxu0 %v9152_v38 }
 0x138   : > { %1575 = vmatpush1.bf16.msra.mxu1 %v9155_v39  ;;  %1535 = vmatprep.subr.bf16.mxu0 %v9160_v40 }
 0x139   : > { %1576 = vmatprep.subr.bf16.mxu1 %v9163_v41 }
 0x13b   : > { %1536 = vmatpush1.bf16.msra.mxu0 %v9158_v42 }
 0x13c   : > { %1577 = vmatpush1.bf16.msra.mxu1 %v9161_v43  ;;  %1537 = vmatprep.subr.bf16.mxu0 %v9166_v44 }
 0x13d   : > { %1578 = vmatprep.subr.bf16.mxu1 %v9169_v46 }
 0x13f   : > { %1538 = vmatpush2.bf16.msra.mxu0 %v9164_v47 }
 0x140   : > { %1579 = vmatpush2.bf16.msra.mxu1 %v9167_v48  ;;  %1539 = vmatprep.subr.bf16.mxu0 %v9172_v49 }
 0x141   : > { %1580 = vmatprep.subr.bf16.mxu1 %v9175_v50 }
 0x143   : > { %1540 = vmatpush2.bf16.msra.mxu0 %v9170_v52 }
 0x144   : > { %1581 = vmatpush2.bf16.msra.mxu1 %v9173_v53  ;;  %1541 = vmatprep.subr.bf16.mxu0 %v9178_v54 }
 0x145   : > { %1582 = vmatprep.subr.bf16.mxu1 %v9181_v55 }
 0x147   : > { %1542 = vmatpush2.bf16.msra.mxu0 %v9176_v56 }
 0x148   : > { %1583 = vmatpush2.bf16.msra.mxu1 %v9179_v57  ;;  %1543 = vmatprep.subr.bf16.mxu0 %v9184_v58 }
 0x149   : > { %1584 = vmatprep.subr.bf16.mxu1 %v9187_v59 }
 0x14b   : > { %1544 = vmatpush2.bf16.msra.mxu0 %v9182_v60 }
 0x14c   : > { %1585 = vmatpush2.bf16.msra.mxu1 %v9185_v61  ;;  %1545 = vmatprep.subr.bf16.mxu0 %v9190_v62 }
 0x14d   : > { %1586 = vmatprep.subr.bf16.mxu1 %v9193_v63 }
 0x14f   : > { %1546 = vmatpush2.bf16.msra.mxu0 %v9188_v0 }
 0x150   : > { %1587 = vmatpush2.bf16.msra.mxu1 %v9191_v1  ;;  %1547 = vmatprep.subr.bf16.mxu0 %v9196_v2 }
 0x151   : > { %1588 = vmatprep.subr.bf16.mxu1 %v9199_v3 }
 0x153   : > { %1548 = vmatpush2.bf16.msra.mxu0 %v9194_v4 }
 0x154   : > { %1589 = vmatpush2.bf16.msra.mxu1 %v9197_v5  ;;  %1549 = vmatprep.subr.bf16.mxu0 %v9202_v6 }
 0x155   : > { %1590 = vmatprep.subr.bf16.mxu1 %v9205_v7 }
 0x157   : > { %1550 = vmatpush2.bf16.msra.mxu0 %v9200_v8 }
 0x158   : > { %1591 = vmatpush2.bf16.msra.mxu1 %v9203_v10  ;;  %1551 = vmatprep.subr.bf16.mxu0 %v9208_v11 }
 0x159   : > { %1592 = vmatprep.subr.bf16.mxu1 %v9211_v12 }
 0x15b   : > { %1552 = vmatpush2.bf16.msra.mxu0 %v9206_v14 }
 0x15c   : > { %1593 = vmatpush2.bf16.msra.mxu1 %v9209_v15 }
 0x15e   : > { %1554 = vmatmul.mubr.bf16.vlgmr.msra.gmra.mxu0 %v11045_v9 }
 0x15f   : > { %1595 = vmatmul.mubr.bf16.vlgmr.msra.gmra.mxu1 %v11052_v13 }
 0x1de   : > { %v1473_v21 = vpop.f32.mrf.mxu0 }
 0x1df   : > { %v1514_v22 = vpop.f32.mrf.mxu1  ;;  %v1474_v23 = vadd.f32 %v1473_v21, %v753_v19 }
 0x1e0   : > { %v1475_v24 = vpop.f32.mrf.mxu0 }
 0x1e1   : > { %v1516_v25 = vpop.f32.mrf.mxu1  ;;  %v1515_v26 = vadd.f32 %v1514_v22, %v1474_v23  ;;  %v1476_v27 = vadd.f32 %v1475_v24, %v757_v20 }
 0x1e2   : > { %v1477_v28 = vpop.f32.mrf.mxu0 }
 0x1e3   : > { %v1518_v29 = vpop.f32.mrf.mxu1  ;;  %v1603_v30 = vmax.f32 %v1515_v26, 0.0  ;;  %v1517_v9 = vadd.f32 %v1516_v25, %v1476_v27 }
 0x1e4   : > { %v1478_v31 = vpop.f32.mrf.mxu0 }
 0x1e5   : > { %v1519_v13 = vpop.f32.mrf.mxu1  ;;  %v1604_v32 = vmax.f32 %v1517_v9, 0.0 }
 0x21e   : > { %v1555_v37 = vpop.f32.mrf.mxu0 }
 0x21f   : > { %v1596_v38 = vpop.f32.mrf.mxu1  ;;  %v1556_v39 = vadd.f32 %v1555_v37, %v761_v35 }
 0x220   : > { %v1557_v40 = vpop.f32.mrf.mxu0 }
 0x221   : > { %v1598_v41 = vpop.f32.mrf.mxu1  ;;  %v1597_v42 = vadd.f32 %v1596_v38, %v1556_v39  ;;  %v1558_v43 = vadd.f32 %v1557_v40, %v765_v36  ;;  %1614 = sbr.rel (%p8111_p7) target bundleno = 558 (0x22e), region = 80 }
 0x222   : > { %v1559_v44 = vpop.f32.mrf.mxu0 }
 0x223   : > { %v1600_v46 = vpop.f32.mrf.mxu1  ;;  %v1605_v47 = vmax.f32 %v1597_v42, 0.0  ;;  %v1599_v48 = vadd.f32 %v1598_v41, %v1558_v43 }
 0x224   : > { %v1560_v49 = vpop.f32.mrf.mxu0 }
 0x225   : > { %v1601_v50 = vpop.f32.mrf.mxu1  ;;  %v1606_v52 = vmax.f32 %v1599_v48, 0.0 }
 0x226   : > { %v8112_v45 = vpack.c.bf16 %v1604_v32, %v1603_v30 }
 0x227   : > { %v8113_v53 = vpack.c.bf16 %v1606_v52, %v1605_v47 }
 0x228   : > { %v1627_v54 = vrot.slane %v8112_v45, %v11021_v51 }
 0x229   : > { %v1634_v55 = vrot.slane %v8113_v53, %v11021_v51 }
 0x22b   : > { %v1635_v56 = vcombine.low %v1627_v54, %v1634_v55 }
 0x22d   : > { %8114 = vst.sshfl [vmem:[#allocation2] sm:$0x55 pattern:$0x73625140] %v1635_v56 }
 0x22e PF: > { %s11718_s21 = sld [smem:[#allocation23_spill]] }
 0x234   : > { %p8115_p6 = scmp.ne.s32.totalorder %s11718_s21, 1 }
 0x236   : > { %1648 = sbr.rel (%p8115_p6) target bundleno = 578 (0x242), region = 84 }
 0x23b   : > { %v8116_v57 = vpack.c.bf16 %v1604_v32, %v1603_v30  ;;  %v8117_v58 = vpack.c.bf16 %v1606_v52, %v1605_v47 }
 0x23d   : > { %v1661_v59 = vrot.slane %v8116_v57, %v11021_v51  ;;  %v1668_v60 = vrot.slane %v8117_v58, %v11021_v51 }
 0x23f   : > { %v1669_v61 = vcombine.low %v1661_v59, %v1668_v60 }
 0x241   : > { %8118 = vst.sshfl [vmem:[#allocation2 + $0x4] sm:$0x55 pattern:$0x73625140] %v1669_v61 }
 0x242 PF: > { %s11719_s27 = sld [smem:[#allocation23_spill]] }
 0x248   : > { %p1680_p2 = scmp.lt.s32.totalorder %s11719_s27, 6 }
 0x24a   : > { %p1681_p12 = pnand %p7981_p8, %p1680_p2 }
 0x24b   : > { %s11720_s30 = sld [smem:[#allocation23_spill]] (!%p1681_p12) }
 0x24c   : > { %1684 = sbr.rel (%p1681_p12) target bundleno = 1118 (0x45e), region = 88 }
 0x251   : > { %v9212_v51 = vld [vmem:[%s10948_s15 + $0xe4] ss:$16 sps:$4 sm:$0xff]   ;;  %v9216_v63 = vld [vmem:[%s10948_s15 + $0xe0] ss:$16 sps:$4 sm:$0xff]   ;;  %v1944_v33 = vlaneseq  ;;  %v10623_v34 = vmov 1966171168  }
 0x252   : > { %v9214_v62 = vld [vmem:[%s10948_s15 + $0x2e4] ss:$16 sps:$4 sm:$0xff]   ;;  %3302 = vmatprep.subr.bf16.mxu0 %v9212_v51  ;;  %v9217_v0 = vld [vmem:[%s10948_s15 + $0x2e0] ss:$16 sps:$4 sm:$0xff]   ;;  %v1967_v35 = vunpack.c.l.s4 %v10623_v34  ;;  %p8375_p3 = scmp.ne.s32.totalorder %s11720_s30, 2 }
 0x253   : > { %3343 = vmatprep.subr.bf16.mxu1 %v9214_v62  ;;  %v9218_v1 = vld [vmem:[%s10948_s15 + $0xc4] ss:$16 sps:$4 sm:$0xff]   ;;  %3303 = vmatpush1.bf16.msra.mxu0 %v9216_v63  ;;  %v9222_v3 = vld [vmem:[%s10948_s15 + $0xc0] ss:$16 sps:$4 sm:$0xff]   ;;  %v11175_v39 = vshrl.u32 %v1944_v33, 7 }
 0x254   : > { %3344 = vmatpush1.bf16.msra.mxu1 %v9217_v0  ;;  %v9220_v2 = vld [vmem:[%s10948_s15 + $0x2c4] ss:$16 sps:$4 sm:$0xff]   ;;  %3304 = vmatprep.subr.bf16.mxu0 %v9218_v1  ;;  %v9223_v4 = vld [vmem:[%s10948_s15 + $0x2c0] ss:$16 sps:$4 sm:$0xff]   ;;  %v1968_v40 = vunpack.c.0.s8 %v1967_v35 }
 0x255   : > { %3345 = vmatprep.subr.bf16.mxu1 %v9220_v2  ;;  %v9224_v5 = vld [vmem:[%s10948_s15 + $0xa4] ss:$16 sps:$4 sm:$0xff]   ;;  %v9228_v7 = vld [vmem:[%s10948_s15 + $0xa0] ss:$16 sps:$4 sm:$0xff]  }
 0x256   : > { %v9226_v6 = vld [vmem:[%s10948_s15 + $0x2a4] ss:$16 sps:$4 sm:$0xff]   ;;  %v9229_v8 = vld [vmem:[%s10948_s15 + $0x2a0] ss:$16 sps:$4 sm:$0xff]   ;;  %v11183_v47 = vsub.s32 %v1968_v40, %v11175_v39 }
 0x257   : > { %3305 = vmatpush1.bf16.msra.mxu0 %v9222_v3  ;;  %v9230_v10 = vld [vmem:[%s10948_s15 + $0x84] ss:$16 sps:$4 sm:$0xff]   ;;  %v9234_v12 = vld [vmem:[%s10948_s15 + $0x80] ss:$16 sps:$4 sm:$0xff]  }
 0x258   : > { %3346 = vmatpush1.bf16.msra.mxu1 %v9223_v4  ;;  %3306 = vmatprep.subr.bf16.mxu0 %v9224_v5  ;;  %v9232_v11 = vld [vmem:[%s10948_s15 + $0x284] ss:$16 sps:$4 sm:$0xff]   ;;  %v9235_v14 = vld [vmem:[%s10948_s15 + $0x280] ss:$16 sps:$4 sm:$0xff]  }
 0x259   : > { %3347 = vmatprep.subr.bf16.mxu1 %v9226_v6  ;;  %v9236_v15 = vld [vmem:[%s10948_s15 + $0x64] ss:$16 sps:$4 sm:$0xff]   ;;  %v9240_v17 = vld [vmem:[%s10948_s15 + $0x60] ss:$16 sps:$4 sm:$0xff]  }
 0x25a   : > { %v9238_v16 = vld [vmem:[%s10948_s15 + $0x264] ss:$16 sps:$4 sm:$0xff]   ;;  %v9241_v18 = vld [vmem:[%s10948_s15 + $0x260] ss:$16 sps:$4 sm:$0xff]  }
 0x25b   : > { %3307 = vmatpush1.bf16.msra.mxu0 %v9228_v7  ;;  %v9242_v19 = vld [vmem:[%s10948_s15 + $0x44] ss:$16 sps:$4 sm:$0xff]   ;;  %v9246_v21 = vld [vmem:[%s10948_s15 + $0x40] ss:$16 sps:$4 sm:$0xff]  }
 0x25c   : > { %3348 = vmatpush1.bf16.msra.mxu1 %v9229_v8  ;;  %3308 = vmatprep.subr.bf16.mxu0 %v9230_v10  ;;  %v9244_v20 = vld [vmem:[%s10948_s15 + $0x244] ss:$16 sps:$4 sm:$0xff]   ;;  %v9247_v22 = vld [vmem:[%s10948_s15 + $0x240] ss:$16 sps:$4 sm:$0xff]  }
 0x25d   : > { %3349 = vmatprep.subr.bf16.mxu1 %v9232_v11  ;;  %v9248_v23 = vld [vmem:[%s10948_s15 + $0x24] ss:$16 sps:$4 sm:$0xff]   ;;  %v9252_v25 = vld [vmem:[%s10948_s15 + $0x20] ss:$16 sps:$4 sm:$0xff]  }
 0x25e   : > { %v9250_v24 = vld [vmem:[%s10948_s15 + $0x224] ss:$16 sps:$4 sm:$0xff]   ;;  %v9253_v26 = vld [vmem:[%s10948_s15 + $0x220] ss:$16 sps:$4 sm:$0xff]  }
 0x25f   : > { %3309 = vmatpush1.bf16.msra.mxu0 %v9234_v12  ;;  %v9254_v27 = vld [vmem:[%s10948_s15 + $0x4] ss:$16 sps:$4 sm:$0xff]   ;;  %v9258_v29 = vld [vmem:[%s10948_s15] ss:$16 sps:$4 sm:$0xff]  }
 0x260   : > { %3350 = vmatpush1.bf16.msra.mxu1 %v9235_v14  ;;  %3310 = vmatprep.subr.bf16.mxu0 %v9236_v15  ;;  %v9256_v28 = vld [vmem:[%s10948_s15 + $0x204] ss:$16 sps:$4 sm:$0xff]   ;;  %v9259_v30 = vld [vmem:[%s10948_s15 + $0x200] ss:$16 sps:$4 sm:$0xff]  }
 0x261   : > { %3351 = vmatprep.subr.bf16.mxu1 %v9238_v16  ;;  %v9260_v9 = vld [vmem:[%s10948_s15 + $0x1e4] ss:$16 sps:$4 sm:$0xff]   ;;  %v9264_v13 = vld [vmem:[%s10948_s15 + $0x1e0] ss:$16 sps:$4 sm:$0xff]  }
 0x262   : > { %v9262_v31 = vld [vmem:[%s10948_s15 + $0x3e4] ss:$16 sps:$4 sm:$0xff]   ;;  %v9265_v32 = vld [vmem:[%s10948_s15 + $0x3e0] ss:$16 sps:$4 sm:$0xff]  }
 0x263   : > { %3311 = vmatpush1.bf16.msra.mxu0 %v9240_v17  ;;  %v9266_v36 = vld [vmem:[%s10948_s15 + $0x1c4] ss:$16 sps:$4 sm:$0xff]   ;;  %v9270_v38 = vld [vmem:[%s10948_s15 + $0x1c0] ss:$16 sps:$4 sm:$0xff]  }
 0x264   : > { %3352 = vmatpush1.bf16.msra.mxu1 %v9241_v18  ;;  %3312 = vmatprep.subr.bf16.mxu0 %v9242_v19  ;;  %v9268_v37 = vld [vmem:[%s10948_s15 + $0x3c4] ss:$16 sps:$4 sm:$0xff]   ;;  %v9271_v41 = vld [vmem:[%s10948_s15 + $0x3c0] ss:$16 sps:$4 sm:$0xff]  }
 0x265   : > { %3353 = vmatprep.subr.bf16.mxu1 %v9244_v20  ;;  %v9272_v42 = vld [vmem:[%s10948_s15 + $0x1a4] ss:$16 sps:$4 sm:$0xff]   ;;  %v9276_v44 = vld [vmem:[%s10948_s15 + $0x1a0] ss:$16 sps:$4 sm:$0xff]  }
 0x266   : > { %v9274_v43 = vld [vmem:[%s10948_s15 + $0x3a4] ss:$16 sps:$4 sm:$0xff]   ;;  %v9277_v46 = vld [vmem:[%s10948_s15 + $0x3a0] ss:$16 sps:$4 sm:$0xff]  }
 0x267   : > { %3313 = vmatpush1.bf16.msra.mxu0 %v9246_v21  ;;  %v9278_v48 = vld [vmem:[%s10948_s15 + $0x184] ss:$16 sps:$4 sm:$0xff]   ;;  %v9282_v52 = vld [vmem:[%s10948_s15 + $0x180] ss:$16 sps:$4 sm:$0xff]  }
 0x268   : > { %3354 = vmatpush1.bf16.msra.mxu1 %v9247_v22  ;;  %3314 = vmatprep.subr.bf16.mxu0 %v9248_v23  ;;  %v9280_v49 = vld [vmem:[%s10948_s15 + $0x384] ss:$16 sps:$4 sm:$0xff]   ;;  %v9283_v54 = vld [vmem:[%s10948_s15 + $0x380] ss:$16 sps:$4 sm:$0xff]  }
 0x269   : > { %3355 = vmatprep.subr.bf16.mxu1 %v9250_v24  ;;  %v1685_v50 = vld [vmem:[#allocation2] sm:$0xff] }
 0x26a   : > { %v1972_v45 = vrot.slane %v1685_v50, %v11183_v47  ;;  %v1965_v53 = vcombine.high %v1685_v50, %v1685_v50  ;;  %v9284_v55 = vld [vmem:[%s10948_s15 + $0x164] ss:$16 sps:$4 sm:$0xff]   ;;  %v9288_v59 = vld [vmem:[%s10948_s15 + $0x160] ss:$16 sps:$4 sm:$0xff]  }
 0x26b   : > { %3315 = vmatpush1.bf16.msra.mxu0 %v9252_v25  ;;  %v9286_v56 = vld [vmem:[%s10948_s15 + $0x364] ss:$16 sps:$4 sm:$0xff]   ;;  %v9289_v51 = vld [vmem:[%s10948_s15 + $0x360] ss:$16 sps:$4 sm:$0xff]  }
 0x26c   : > { %3356 = vmatpush1.bf16.msra.mxu1 %v9253_v26  ;;  %3316 = vmatprep.subr.bf16.mxu0 %v9254_v27  ;;  %v1980_v57 = vcombine.high %v1972_v45, %v1972_v45  ;;  %v1979_v58 = vrot.slane %v1965_v53, %v11183_v47  ;;  %v9290_v62 = vld [vmem:[%s10948_s15 + $0x144] ss:$16 sps:$4 sm:$0xff]   ;;  %v9294_v1 = vld [vmem:[%s10948_s15 + $0x140] ss:$16 sps:$4 sm:$0xff]   ;;  %v11219_v12 = vrot.slane %v1972_v45, %v11183_v47 }
 0x26d   : > { %3357 = vmatprep.subr.bf16.mxu1 %v9256_v28  ;;  %v9292_v63 = vld [vmem:[%s10948_s15 + $0x344] ss:$16 sps:$4 sm:$0xff]   ;;  %v9295_v2 = vld [vmem:[%s10948_s15 + $0x340] ss:$16 sps:$4 sm:$0xff]  }
 0x26e   : > { %v11195_v60 = vrot.slane %v1980_v57, %v11183_v47  ;;  %v11198_v61 = vrot.slane %v1979_v58, %v11183_v47  ;;  %v9296_v3 = vld [vmem:[%s10948_s15 + $0x124] ss:$16 sps:$4 sm:$0xff]   ;;  %v9300_v5 = vld [vmem:[%s10948_s15 + $0x120] ss:$16 sps:$4 sm:$0xff]   ;;  %v1981_v10 = vcombine.high %v1979_v58, %v1979_v58  ;;  %v11229_v18 = vcombine.high %v11219_v12, %v11219_v12 }
 0x26f   : > { %3317 = vmatpush1.bf16.msra.mxu0 %v9258_v29  ;;  %v9298_v4 = vld [vmem:[%s10948_s15 + $0x324] ss:$16 sps:$4 sm:$0xff]   ;;  %v9301_v6 = vld [vmem:[%s10948_s15 + $0x320] ss:$16 sps:$4 sm:$0xff]  }
 0x270   : > { %3358 = vmatpush1.bf16.msra.mxu1 %v9259_v30  ;;  %3318 = vmatprep.subr.bf16.mxu0 %v9260_v9  ;;  %v11205_v0 = vcombine.high %v11195_v60, %v11195_v60  ;;  %v9302_v7 = vld [vmem:[%s10948_s15 + $0x104] ss:$16 sps:$4 sm:$0xff]   ;;  %v9306_v11 = vld [vmem:[%s10948_s15 + $0x100] ss:$16 sps:$4 sm:$0xff]   ;;  %v11225_v17 = vrot.slane %v1981_v10, %v11183_v47 }
 0x271   : > { %3359 = vmatprep.subr.bf16.mxu1 %v9262_v31  ;;  %3334 = vmatprep.mubr.bf16.mxu0 %v11195_v60  ;;  %v9304_v8 = vld [vmem:[%s10948_s15 + $0x304] ss:$16 sps:$4 sm:$0xff]   ;;  %v9307_v14 = vld [vmem:[%s10948_s15 + $0x300] ss:$16 sps:$4 sm:$0xff]  }
 0x272   : > { %3375 = vmatprep.mubr.bf16.mxu1 %v11205_v0  ;;  %v9310_v15 = vld [vmem:[%s10948_s15 + $0x4e4] ss:$16 sps:$4 sm:$0xff]   ;;  %v9308_v19 = vld [vmem:[%s10948_s15 + $0x4e0] ss:$16 sps:$4 sm:$0xff]   ;;  %v11237_v23 = vcombine.high %v11225_v17, %v11225_v17 }
 0x273   : > { %3319 = vmatpush2.bf16.msra.mxu0 %v9264_v13  ;;  %v9313_v16 = vld [vmem:[%s10948_s15 + $0x6e4] ss:$16 sps:$4 sm:$0xff]   ;;  %v9311_v20 = vld [vmem:[%s10948_s15 + $0x6e0] ss:$16 sps:$4 sm:$0xff]  }
 0x274   : > { %3360 = vmatpush2.bf16.msra.mxu1 %v9265_v32  ;;  %3320 = vmatprep.subr.bf16.mxu0 %v9266_v36  ;;  %v9316_v21 = vld [vmem:[%s10948_s15 + $0x4c4] ss:$16 sps:$4 sm:$0xff]   ;;  %v9314_v24 = vld [vmem:[%s10948_s15 + $0x4c0] ss:$16 sps:$4 sm:$0xff]  }
 0x275   : > { %3361 = vmatprep.subr.bf16.mxu1 %v9268_v37  ;;  %v9319_v22 = vld [vmem:[%s10948_s15 + $0x6c4] ss:$16 sps:$4 sm:$0xff]   ;;  %v9317_v25 = vld [vmem:[%s10948_s15 + $0x6c0] ss:$16 sps:$4 sm:$0xff]  }
 0x276   : > { %v9322_v26 = vld [vmem:[%s10948_s15 + $0x4a4] ss:$16 sps:$4 sm:$0xff]   ;;  %v9320_v28 = vld [vmem:[%s10948_s15 + $0x4a0] ss:$16 sps:$4 sm:$0xff]  }
 0x277   : > { %3321 = vmatpush2.bf16.msra.mxu0 %v9270_v38  ;;  %v9325_v27 = vld [vmem:[%s10948_s15 + $0x6a4] ss:$16 sps:$4 sm:$0xff]   ;;  %v9323_v29 = vld [vmem:[%s10948_s15 + $0x6a0] ss:$16 sps:$4 sm:$0xff]  }
 0x278   : > { %3362 = vmatpush2.bf16.msra.mxu1 %v9271_v41  ;;  %3322 = vmatprep.subr.bf16.mxu0 %v9272_v42  ;;  %v9328_v30 = vld [vmem:[%s10948_s15 + $0x484] ss:$16 sps:$4 sm:$0xff]   ;;  %v9326_v31 = vld [vmem:[%s10948_s15 + $0x480] ss:$16 sps:$4 sm:$0xff]  }
 0x279   : > { %3363 = vmatprep.subr.bf16.mxu1 %v9274_v43  ;;  %v9331_v9 = vld [vmem:[%s10948_s15 + $0x684] ss:$16 sps:$4 sm:$0xff]   ;;  %v9329_v13 = vld [vmem:[%s10948_s15 + $0x680] ss:$16 sps:$4 sm:$0xff]  }
 0x27a   : > { %v9334_v32 = vld [vmem:[%s10948_s15 + $0x464] ss:$16 sps:$4 sm:$0xff]   ;;  %v9332_v34 = vld [vmem:[%s10948_s15 + $0x460] ss:$16 sps:$4 sm:$0xff]  }
 0x27b   : > { %3323 = vmatpush2.bf16.msra.mxu0 %v9276_v44  ;;  %v9337_v33 = vld [vmem:[%s10948_s15 + $0x664] ss:$16 sps:$4 sm:$0xff]   ;;  %v9335_v35 = vld [vmem:[%s10948_s15 + $0x660] ss:$16 sps:$4 sm:$0xff]  }
 0x27c   : > { %3364 = vmatpush2.bf16.msra.mxu1 %v9277_v46  ;;  %3324 = vmatprep.subr.bf16.mxu0 %v9278_v48  ;;  %v9340_v36 = vld [vmem:[%s10948_s15 + $0x444] ss:$16 sps:$4 sm:$0xff]   ;;  %v9338_v38 = vld [vmem:[%s10948_s15 + $0x440] ss:$16 sps:$4 sm:$0xff]  }
 0x27d   : > { %3365 = vmatprep.subr.bf16.mxu1 %v9280_v49  ;;  %v9343_v37 = vld [vmem:[%s10948_s15 + $0x644] ss:$16 sps:$4 sm:$0xff]   ;;  %v9341_v40 = vld [vmem:[%s10948_s15 + $0x640] ss:$16 sps:$4 sm:$0xff]  }
 0x27e   : > { %v9346_v41 = vld [vmem:[%s10948_s15 + $0x424] ss:$16 sps:$4 sm:$0xff]   ;;  %v9344_v43 = vld [vmem:[%s10948_s15 + $0x420] ss:$16 sps:$4 sm:$0xff]  }
 0x27f   : > { %3325 = vmatpush2.bf16.msra.mxu0 %v9282_v52  ;;  %v9349_v42 = vld [vmem:[%s10948_s15 + $0x624] ss:$16 sps:$4 sm:$0xff]   ;;  %v9347_v44 = vld [vmem:[%s10948_s15 + $0x620] ss:$16 sps:$4 sm:$0xff]  }
 0x280   : > { %3366 = vmatpush2.bf16.msra.mxu1 %v9283_v54  ;;  %3326 = vmatprep.subr.bf16.mxu0 %v9284_v55  ;;  %v9352_v46 = vld [vmem:[%s10948_s15 + $0x404] ss:$16 sps:$4 sm:$0xff]   ;;  %v9350_v49 = vld [vmem:[%s10948_s15 + $0x400] ss:$16 sps:$4 sm:$0xff]  }
 0x281   : > { %3367 = vmatprep.subr.bf16.mxu1 %v9286_v56  ;;  %v9355_v48 = vld [vmem:[%s10948_s15 + $0x604] ss:$16 sps:$4 sm:$0xff]   ;;  %v9353_v50 = vld [vmem:[%s10948_s15 + $0x600] ss:$16 sps:$4 sm:$0xff]  }
 0x282   : > { %v9358_v52 = vld [vmem:[%s10948_s15 + $0x5e4] ss:$16 sps:$4 sm:$0xff]   ;;  %v9356_v53 = vld [vmem:[%s10948_s15 + $0x5e0] ss:$16 sps:$4 sm:$0xff]  }
 0x283   : > { %3327 = vmatpush2.bf16.msra.mxu0 %v9288_v59  ;;  %v9361_v45 = vld [vmem:[%s10948_s15 + $0x7e4] ss:$16 sps:$4 sm:$0xff]   ;;  %v9359_v54 = vld [vmem:[%s10948_s15 + $0x7e0] ss:$16 sps:$4 sm:$0xff]  }
 0x284   : > { %3368 = vmatpush2.bf16.msra.mxu1 %v9289_v51  ;;  %3328 = vmatprep.subr.bf16.mxu0 %v9290_v62  ;;  %v9364_v55 = vld [vmem:[%s10948_s15 + $0x5c4] ss:$16 sps:$4 sm:$0xff]   ;;  %v9362_v57 = vld [vmem:[%s10948_s15 + $0x5c0] ss:$16 sps:$4 sm:$0xff]  }
 0x285   : > { %3369 = vmatprep.subr.bf16.mxu1 %v9292_v63  ;;  %v9367_v56 = vld [vmem:[%s10948_s15 + $0x7c4] ss:$16 sps:$4 sm:$0xff]   ;;  %v9365_v58 = vld [vmem:[%s10948_s15 + $0x7c0] ss:$16 sps:$4 sm:$0xff]  }
 0x286   : > { %v9370_v59 = vld [vmem:[%s10948_s15 + $0x5a4] ss:$16 sps:$4 sm:$0xff]   ;;  %v9368_v62 = vld [vmem:[%s10948_s15 + $0x5a0] ss:$16 sps:$4 sm:$0xff]  }
 0x287   : > { %3329 = vmatpush2.bf16.msra.mxu0 %v9294_v1  ;;  %v9373_v51 = vld [vmem:[%s10948_s15 + $0x7a4] ss:$16 sps:$4 sm:$0xff]   ;;  %v9371_v63 = vld [vmem:[%s10948_s15 + $0x7a0] ss:$16 sps:$4 sm:$0xff]  }
 0x288   : > { %3370 = vmatpush2.bf16.msra.mxu1 %v9295_v2  ;;  %3330 = vmatprep.subr.bf16.mxu0 %v9296_v3  ;;  %v9376_v1 = vld [vmem:[%s10948_s15 + $0x584] ss:$16 sps:$4 sm:$0xff]   ;;  %v9374_v3 = vld [vmem:[%s10948_s15 + $0x580] ss:$16 sps:$4 sm:$0xff]  }
 0x289   : > { %3371 = vmatprep.subr.bf16.mxu1 %v9298_v4  ;;  %v9379_v2 = vld [vmem:[%s10948_s15 + $0x784] ss:$16 sps:$4 sm:$0xff]   ;;  %v9377_v4 = vld [vmem:[%s10948_s15 + $0x780] ss:$16 sps:$4 sm:$0xff]  }
 0x28a   : > { %v9388_v10 = vld [vmem:[%s10948_s15 + $0x544] ss:$16 sps:$4 sm:$0xff]  }
 0x28b   : > { %3331 = vmatpush2.bf16.msra.mxu0 %v9300_v5  ;;  %v9382_v5 = vld [vmem:[%s10948_s15 + $0x564] ss:$16 sps:$4 sm:$0xff]  }
 0x28c   : > { %3372 = vmatpush2.bf16.msra.mxu1 %v9301_v6  ;;  %3332 = vmatprep.subr.bf16.mxu0 %v9302_v7  ;;  %v9385_v6 = vld [vmem:[%s10948_s15 + $0x764] ss:$16 sps:$4 sm:$0xff]   ;;  %v9380_v7 = vld [vmem:[%s10948_s15 + $0x560] ss:$16 sps:$4 sm:$0xff]  }
 0x28d   : > { %3373 = vmatprep.subr.bf16.mxu1 %v9304_v8  ;;  %v9383_v8 = vld [vmem:[%s10948_s15 + $0x760] ss:$16 sps:$4 sm:$0xff]  }
 0x28f   : > { %3333 = vmatpush2.bf16.msra.mxu0 %v9306_v11  ;;  %v9391_v11 = vld [vmem:[%s10948_s15 + $0x744] ss:$16 sps:$4 sm:$0xff]  }
 0x290   : > { %3374 = vmatpush2.bf16.msra.mxu1 %v9307_v14  ;;  %3384 = vmatprep.subr.bf16.mxu0 %v9310_v15  ;;  %v9386_v14 = vld [vmem:[%s10948_s15 + $0x540] ss:$16 sps:$4 sm:$0xff]  }
 0x291   : > { %3425 = vmatprep.subr.bf16.mxu1 %v9313_v16  ;;  %v9389_v15 = vld [vmem:[%s10948_s15 + $0x740] ss:$16 sps:$4 sm:$0xff]   ;;  %v9394_v16 = vld [vmem:[%s10948_s15 + $0x524] ss:$16 sps:$4 sm:$0xff]  }
 0x292   : > { %3335 = vmatmul.mubr.bf16.vlgmr.msra.gmra.mxu0 %v11219_v12 }
 0x293   : > { %3376 = vmatmul.mubr.bf16.vlgmr.msra.gmra.mxu1 %v11229_v18  ;;  %3385 = vmatpush1.bf16.msra.mxu0 %v9308_v19  ;;  %v9397_v19 = vld [vmem:[%s10948_s15 + $0x724] ss:$16 sps:$4 sm:$0xff]  }
 0x294   : > { %3426 = vmatpush1.bf16.msra.mxu1 %v9311_v20  ;;  %3386 = vmatprep.subr.bf16.mxu0 %v9316_v21  ;;  %v9392_v20 = vld [vmem:[%s10948_s15 + $0x520] ss:$16 sps:$4 sm:$0xff]  }
 0x295   : > { %3427 = vmatprep.subr.bf16.mxu1 %v9319_v22  ;;  %3416 = vmatprep.mubr.bf16.mxu0 %v11225_v17  ;;  %v9395_v21 = vld [vmem:[%s10948_s15 + $0x720] ss:$16 sps:$4 sm:$0xff]   ;;  %v9400_v22 = vld [vmem:[%s10948_s15 + $0x504] ss:$16 sps:$4 sm:$0xff]  }
 0x296   : > { %3457 = vmatprep.mubr.bf16.mxu1 %v11237_v23 }
 0x297   : > { %3387 = vmatpush1.bf16.msra.mxu0 %v9314_v24  ;;  %v9403_v24 = vld [vmem:[%s10948_s15 + $0x704] ss:$16 sps:$4 sm:$0xff]  }
 0x298   : > { %3428 = vmatpush1.bf16.msra.mxu1 %v9317_v25  ;;  %3388 = vmatprep.subr.bf16.mxu0 %v9322_v26  ;;  %v9398_v25 = vld [vmem:[%s10948_s15 + $0x500] ss:$16 sps:$4 sm:$0xff]  }
 0x299   : > { %3429 = vmatprep.subr.bf16.mxu1 %v9325_v27  ;;  %v9401_v26 = vld [vmem:[%s10948_s15 + $0x700] ss:$16 sps:$4 sm:$0xff]   ;;  %v9407_v27 = vld [vmem:[%s10948_s15 + $0xec] ss:$16 sps:$4 sm:$0xff]  }
 0x29b   : > { %3389 = vmatpush1.bf16.msra.mxu0 %v9320_v28  ;;  %v9410_v28 = vld [vmem:[%s10948_s15 + $0x2ec] ss:$16 sps:$4 sm:$0xff]  }
 0x29c   : > { %3430 = vmatpush1.bf16.msra.mxu1 %v9323_v29  ;;  %3390 = vmatprep.subr.bf16.mxu0 %v9328_v30  ;;  %v11305_v29 = vcombine.high %v11198_v61, %v11198_v61  ;;  %v9405_v30 = vld [vmem:[%s10948_s15 + $0xe8] ss:$16 sps:$4 sm:$0xff]  }
 0x29d   : > { %3431 = vmatprep.subr.bf16.mxu1 %v9331_v9  ;;  %v9408_v9 = vld [vmem:[%s10948_s15 + $0x2e8] ss:$16 sps:$4 sm:$0xff]  }
 0x29f   : > { %3391 = vmatpush1.bf16.msra.mxu0 %v9326_v31  ;;  %v9413_v31 = vld [vmem:[%s10948_s15 + $0xcc] ss:$16 sps:$4 sm:$0xff]  }
 0x2a0   : > { %3432 = vmatpush1.bf16.msra.mxu1 %v9329_v13  ;;  %3392 = vmatprep.subr.bf16.mxu0 %v9334_v32  ;;  %v9416_v13 = vld [vmem:[%s10948_s15 + $0x2cc] ss:$16 sps:$4 sm:$0xff]   ;;  %v9411_v32 = vld [vmem:[%s10948_s15 + $0xc8] ss:$16 sps:$4 sm:$0xff]  }
 0x2a1   : > { %3433 = vmatprep.subr.bf16.mxu1 %v9337_v33  ;;  %v9414_v33 = vld [vmem:[%s10948_s15 + $0x2c8] ss:$16 sps:$4 sm:$0xff]  }
 0x2a3   : > { %3393 = vmatpush1.bf16.msra.mxu0 %v9332_v34  ;;  %v9419_v34 = vld [vmem:[%s10948_s15 + $0xac] ss:$16 sps:$4 sm:$0xff]  }
 0x2a4   : > { %3434 = vmatpush1.bf16.msra.mxu1 %v9335_v35  ;;  %3394 = vmatprep.subr.bf16.mxu0 %v9340_v36  ;;  %v9422_v35 = vld [vmem:[%s10948_s15 + $0x2ac] ss:$16 sps:$4 sm:$0xff]   ;;  %v9417_v36 = vld [vmem:[%s10948_s15 + $0xa8] ss:$16 sps:$4 sm:$0xff]  }
 0x2a5   : > { %3435 = vmatprep.subr.bf16.mxu1 %v9343_v37  ;;  %v9420_v37 = vld [vmem:[%s10948_s15 + $0x2a8] ss:$16 sps:$4 sm:$0xff]  }
 0x2a7   : > { %3395 = vmatpush1.bf16.msra.mxu0 %v9338_v38  ;;  %v9425_v38 = vld [vmem:[%s10948_s15 + $0x8c] ss:$16 sps:$4 sm:$0xff]  }
 0x2a8   : > { %3436 = vmatpush1.bf16.msra.mxu1 %v9341_v40  ;;  %3396 = vmatprep.subr.bf16.mxu0 %v9346_v41  ;;  %v9428_v40 = vld [vmem:[%s10948_s15 + $0x28c] ss:$16 sps:$4 sm:$0xff]   ;;  %v9423_v41 = vld [vmem:[%s10948_s15 + $0x88] ss:$16 sps:$4 sm:$0xff]  }
 0x2a9   : > { %3437 = vmatprep.subr.bf16.mxu1 %v9349_v42  ;;  %v9434_v42 = vld [vmem:[%s10948_s15 + $0x26c] ss:$16 sps:$4 sm:$0xff]  }
 0x2ab   : > { %3397 = vmatpush1.bf16.msra.mxu0 %v9344_v43  ;;  %v9429_v43 = vld [vmem:[%s10948_s15 + $0x68] ss:$16 sps:$4 sm:$0xff]  }
 0x2ac   : > { %3438 = vmatpush1.bf16.msra.mxu1 %v9347_v44  ;;  %3398 = vmatprep.subr.bf16.mxu0 %v9352_v46  ;;  %v9432_v44 = vld [vmem:[%s10948_s15 + $0x268] ss:$16 sps:$4 sm:$0xff]   ;;  %v9437_v46 = vld [vmem:[%s10948_s15 + $0x4c] ss:$16 sps:$4 sm:$0xff]  }
 0x2ad   : > { %3439 = vmatprep.subr.bf16.mxu1 %v9355_v48  ;;  %v9440_v48 = vld [vmem:[%s10948_s15 + $0x24c] ss:$16 sps:$4 sm:$0xff]  }
 0x2af   : > { %3399 = vmatpush1.bf16.msra.mxu0 %v9350_v49  ;;  %v9435_v49 = vld [vmem:[%s10948_s15 + $0x48] ss:$16 sps:$4 sm:$0xff]  }
 0x2b0   : > { %3440 = vmatpush1.bf16.msra.mxu1 %v9353_v50  ;;  %3400 = vmatprep.subr.bf16.mxu0 %v9358_v52  ;;  %v9438_v50 = vld [vmem:[%s10948_s15 + $0x248] ss:$16 sps:$4 sm:$0xff]   ;;  %v9443_v52 = vld [vmem:[%s10948_s15 + $0x2c] ss:$16 sps:$4 sm:$0xff]  }
 0x2b1   : > { %3441 = vmatprep.subr.bf16.mxu1 %v9361_v45  ;;  %v9446_v45 = vld [vmem:[%s10948_s15 + $0x22c] ss:$16 sps:$4 sm:$0xff]  }
 0x2b3   : > { %3401 = vmatpush2.bf16.msra.mxu0 %v9356_v53  ;;  %v9441_v53 = vld [vmem:[%s10948_s15 + $0x28] ss:$16 sps:$4 sm:$0xff]  }
 0x2b4   : > { %3442 = vmatpush2.bf16.msra.mxu1 %v9359_v54  ;;  %3402 = vmatprep.subr.bf16.mxu0 %v9364_v55  ;;  %v9444_v54 = vld [vmem:[%s10948_s15 + $0x228] ss:$16 sps:$4 sm:$0xff]   ;;  %v9449_v55 = vld [vmem:[%s10948_s15 + $0xc] ss:$16 sps:$4 sm:$0xff]  }
 0x2b5   : > { %3443 = vmatprep.subr.bf16.mxu1 %v9367_v56  ;;  %v9452_v56 = vld [vmem:[%s10948_s15 + $0x20c] ss:$16 sps:$4 sm:$0xff]  }
 0x2b7   : > { %3403 = vmatpush2.bf16.msra.mxu0 %v9362_v57  ;;  %v9447_v57 = vld [vmem:[%s10948_s15 + $0x8] ss:$16 sps:$4 sm:$0xff]  }
 0x2b8   : > { %3444 = vmatpush2.bf16.msra.mxu1 %v9365_v58  ;;  %3404 = vmatprep.subr.bf16.mxu0 %v9370_v59  ;;  %v9450_v58 = vld [vmem:[%s10948_s15 + $0x208] ss:$16 sps:$4 sm:$0xff]   ;;  %v9455_v59 = vld [vmem:[%s10948_s15 + $0x1ec] ss:$16 sps:$4 sm:$0xff]  }
 0x2b9   : > { %3445 = vmatprep.subr.bf16.mxu1 %v9373_v51  ;;  %v9458_v51 = vld [vmem:[%s10948_s15 + $0x3ec] ss:$16 sps:$4 sm:$0xff]  }
 0x2bb   : > { %3405 = vmatpush2.bf16.msra.mxu0 %v9368_v62  ;;  %v9453_v62 = vld [vmem:[%s10948_s15 + $0x1e8] ss:$16 sps:$4 sm:$0xff]  }
 0x2bc   : > { %3446 = vmatpush2.bf16.msra.mxu1 %v9371_v63  ;;  %3406 = vmatprep.subr.bf16.mxu0 %v9376_v1  ;;  %v9456_v63 = vld [vmem:[%s10948_s15 + $0x3e8] ss:$16 sps:$4 sm:$0xff]   ;;  %v9461_v1 = vld [vmem:[%s10948_s15 + $0x1cc] ss:$16 sps:$4 sm:$0xff]  }
 0x2bd   : > { %3447 = vmatprep.subr.bf16.mxu1 %v9379_v2  ;;  %v9464_v2 = vld [vmem:[%s10948_s15 + $0x3cc] ss:$16 sps:$4 sm:$0xff]  }
 0x2bf   : > { %3407 = vmatpush2.bf16.msra.mxu0 %v9374_v3  ;;  %v9459_v3 = vld [vmem:[%s10948_s15 + $0x1c8] ss:$16 sps:$4 sm:$0xff]  }
 0x2c0   : > { %3448 = vmatpush2.bf16.msra.mxu1 %v9377_v4  ;;  %3408 = vmatprep.subr.bf16.mxu0 %v9382_v5  ;;  %v9462_v4 = vld [vmem:[%s10948_s15 + $0x3c8] ss:$16 sps:$4 sm:$0xff]   ;;  %v9467_v5 = vld [vmem:[%s10948_s15 + $0x1ac] ss:$16 sps:$4 sm:$0xff]  }
 0x2c1   : > { %3449 = vmatprep.subr.bf16.mxu1 %v9385_v6  ;;  %v9470_v6 = vld [vmem:[%s10948_s15 + $0x3ac] ss:$16 sps:$4 sm:$0xff]  }
 0x2c3   : > { %3409 = vmatpush2.bf16.msra.mxu0 %v9380_v7  ;;  %v9465_v7 = vld [vmem:[%s10948_s15 + $0x1a8] ss:$16 sps:$4 sm:$0xff]  }
 0x2c4   : > { %3450 = vmatpush2.bf16.msra.mxu1 %v9383_v8  ;;  %3410 = vmatprep.subr.bf16.mxu0 %v9388_v10  ;;  %v9468_v8 = vld [vmem:[%s10948_s15 + $0x3a8] ss:$16 sps:$4 sm:$0xff]   ;;  %v9473_v10 = vld [vmem:[%s10948_s15 + $0x18c] ss:$16 sps:$4 sm:$0xff]  }
 0x2c5   : > { %3451 = vmatprep.subr.bf16.mxu1 %v9391_v11  ;;  %v9476_v11 = vld [vmem:[%s10948_s15 + $0x38c] ss:$16 sps:$4 sm:$0xff]  }
 0x2c7   : > { %3411 = vmatpush2.bf16.msra.mxu0 %v9386_v14  ;;  %v9471_v14 = vld [vmem:[%s10948_s15 + $0x188] ss:$16 sps:$4 sm:$0xff]  }
 0x2c8   : > { %3452 = vmatpush2.bf16.msra.mxu1 %v9389_v15  ;;  %3412 = vmatprep.subr.bf16.mxu0 %v9394_v16  ;;  %v9474_v15 = vld [vmem:[%s10948_s15 + $0x388] ss:$16 sps:$4 sm:$0xff]   ;;  %v9479_v16 = vld [vmem:[%s10948_s15 + $0x16c] ss:$16 sps:$4 sm:$0xff]  }
 0x2c9   : > { %3453 = vmatprep.subr.bf16.mxu1 %v9397_v19  ;;  %v9482_v19 = vld [vmem:[%s10948_s15 + $0x36c] ss:$16 sps:$4 sm:$0xff]  }
 0x2cb   : > { %3413 = vmatpush2.bf16.msra.mxu0 %v9392_v20  ;;  %v9477_v20 = vld [vmem:[%s10948_s15 + $0x168] ss:$16 sps:$4 sm:$0xff]  }
 0x2cc   : > { %3454 = vmatpush2.bf16.msra.mxu1 %v9395_v21  ;;  %3414 = vmatprep.subr.bf16.mxu0 %v9400_v22  ;;  %v9480_v21 = vld [vmem:[%s10948_s15 + $0x368] ss:$16 sps:$4 sm:$0xff]   ;;  %v9485_v22 = vld [vmem:[%s10948_s15 + $0x14c] ss:$16 sps:$4 sm:$0xff]  }
 0x2cd   : > { %3455 = vmatprep.subr.bf16.mxu1 %v9403_v24  ;;  %v9488_v24 = vld [vmem:[%s10948_s15 + $0x34c] ss:$16 sps:$4 sm:$0xff]  }
 0x2cf   : > { %3415 = vmatpush2.bf16.msra.mxu0 %v9398_v25  ;;  %v9483_v25 = vld [vmem:[%s10948_s15 + $0x148] ss:$16 sps:$4 sm:$0xff]  }
 0x2d0   : > { %3456 = vmatpush2.bf16.msra.mxu1 %v9401_v26  ;;  %3466 = vmatprep.subr.bf16.mxu0 %v9407_v27  ;;  %v9486_v26 = vld [vmem:[%s10948_s15 + $0x348] ss:$16 sps:$4 sm:$0xff]   ;;  %v9491_v27 = vld [vmem:[%s10948_s15 + $0x12c] ss:$16 sps:$4 sm:$0xff]  }
 0x2d1   : > { %3507 = vmatprep.subr.bf16.mxu1 %v9410_v28  ;;  %v9494_v28 = vld [vmem:[%s10948_s15 + $0x32c] ss:$16 sps:$4 sm:$0xff]  }
 0x2d2   : > { %3417 = vmatmul.mubr.bf16.vlgmr.msra.gmra.mxu0 %v11198_v61 }
 0x2d3   : > { %3458 = vmatmul.mubr.bf16.vlgmr.msra.gmra.mxu1 %v11305_v29  ;;  %3467 = vmatpush1.bf16.msra.mxu0 %v9405_v30  ;;  %v9489_v30 = vld [vmem:[%s10948_s15 + $0x128] ss:$16 sps:$4 sm:$0xff]  }
 0x2d4   : > { %3508 = vmatpush1.bf16.msra.mxu1 %v9408_v9  ;;  %3468 = vmatprep.subr.bf16.mxu0 %v9413_v31  ;;  %v9492_v9 = vld [vmem:[%s10948_s15 + $0x328] ss:$16 sps:$4 sm:$0xff]   ;;  %v9497_v31 = vld [vmem:[%s10948_s15 + $0x10c] ss:$16 sps:$4 sm:$0xff]  }
 0x2d5   : > { %3509 = vmatprep.subr.bf16.mxu1 %v9416_v13  ;;  %3498 = vmatprep.mubr.bf16.mxu0 %v11195_v60  ;;  %v9426_v60 = vld [vmem:[%s10948_s15 + $0x288] ss:$16 sps:$4 sm:$0xff]   ;;  %v9500_v13 = vld [vmem:[%s10948_s15 + $0x30c] ss:$16 sps:$4 sm:$0xff]  }
 0x2d6   : > { %3539 = vmatprep.mubr.bf16.mxu1 %v11205_v0  ;;  %v9431_v0 = vld [vmem:[%s10948_s15 + $0x6c] ss:$16 sps:$4 sm:$0xff]  }
 0x2d7   : > { %3469 = vmatpush1.bf16.msra.mxu0 %v9411_v32  ;;  %v9495_v32 = vld [vmem:[%s10948_s15 + $0x108] ss:$16 sps:$4 sm:$0xff]  }
 0x2d8   : > { %3510 = vmatpush1.bf16.msra.mxu1 %v9414_v33  ;;  %3470 = vmatprep.subr.bf16.mxu0 %v9419_v34  ;;  %v9498_v33 = vld [vmem:[%s10948_s15 + $0x308] ss:$16 sps:$4 sm:$0xff]   ;;  %v9503_v34 = vld [vmem:[%s10948_s15 + $0x4ec] ss:$16 sps:$4 sm:$0xff]  }
 0x2d9   : > { %3511 = vmatprep.subr.bf16.mxu1 %v9422_v35  ;;  %v9506_v35 = vld [vmem:[%s10948_s15 + $0x6ec] ss:$16 sps:$4 sm:$0xff]  }
 0x2db   : > { %3471 = vmatpush1.bf16.msra.mxu0 %v9417_v36  ;;  %v9501_v36 = vld [vmem:[%s10948_s15 + $0x4e8] ss:$16 sps:$4 sm:$0xff]  }
 0x2dc   : > { %3512 = vmatpush1.bf16.msra.mxu1 %v9420_v37  ;;  %3472 = vmatprep.subr.bf16.mxu0 %v9425_v38  ;;  %v9504_v37 = vld [vmem:[%s10948_s15 + $0x6e8] ss:$16 sps:$4 sm:$0xff]   ;;  %v9509_v38 = vld [vmem:[%s10948_s15 + $0x4cc] ss:$16 sps:$4 sm:$0xff]  }
 0x2dd   : > { %3513 = vmatprep.subr.bf16.mxu1 %v9428_v40  ;;  %v9512_v40 = vld [vmem:[%s10948_s15 + $0x6cc] ss:$16 sps:$4 sm:$0xff]  }
 0x2df   : > { %3473 = vmatpush1.bf16.msra.mxu0 %v9423_v41  ;;  %v9507_v41 = vld [vmem:[%s10948_s15 + $0x4c8] ss:$16 sps:$4 sm:$0xff]  }
 0x2e0   : > { %3514 = vmatpush1.bf16.msra.mxu1 %v9426_v60  ;;  %3474 = vmatprep.subr.bf16.mxu0 %v9431_v0  ;;  %v9510_v60 = vld [vmem:[%s10948_s15 + $0x6c8] ss:$16 sps:$4 sm:$0xff]   ;;  %v9515_v0 = vld [vmem:[%s10948_s15 + $0x4ac] ss:$16 sps:$4 sm:$0xff]  }
 0x2e1   : > { %3515 = vmatprep.subr.bf16.mxu1 %v9434_v42  ;;  %v9518_v42 = vld [vmem:[%s10948_s15 + $0x6ac] ss:$16 sps:$4 sm:$0xff]  }
 0x2e3   : > { %3475 = vmatpush1.bf16.msra.mxu0 %v9429_v43  ;;  %v9521_v43 = vld [vmem:[%s10948_s15 + $0x48c] ss:$16 sps:$4 sm:$0xff]  }
 0x2e4   : > { %3516 = vmatpush1.bf16.msra.mxu1 %v9432_v44  ;;  %3476 = vmatprep.subr.bf16.mxu0 %v9437_v46  ;;  %v9524_v44 = vld [vmem:[%s10948_s15 + $0x68c] ss:$16 sps:$4 sm:$0xff]   ;;  %v9519_v46 = vld [vmem:[%s10948_s15 + $0x488] ss:$16 sps:$4 sm:$0xff]  }
 0x2e5   : > { %3517 = vmatprep.subr.bf16.mxu1 %v9440_v48  ;;  %v9530_v48 = vld [vmem:[%s10948_s15 + $0x66c] ss:$16 sps:$4 sm:$0xff]  }
 0x2e7   : > { %3477 = vmatpush1.bf16.msra.mxu0 %v9435_v49  ;;  %v9525_v49 = vld [vmem:[%s10948_s15 + $0x468] ss:$16 sps:$4 sm:$0xff]  }
 0x2e8   : > { %3518 = vmatpush1.bf16.msra.mxu1 %v9438_v50  ;;  %3478 = vmatprep.subr.bf16.mxu0 %v9443_v52  ;;  %v9528_v50 = vld [vmem:[%s10948_s15 + $0x668] ss:$16 sps:$4 sm:$0xff]   ;;  %v9533_v52 = vld [vmem:[%s10948_s15 + $0x44c] ss:$16 sps:$4 sm:$0xff]  }
 0x2e9   : > { %3519 = vmatprep.subr.bf16.mxu1 %v9446_v45  ;;  %v9536_v45 = vld [vmem:[%s10948_s15 + $0x64c] ss:$16 sps:$4 sm:$0xff]  }
 0x2eb   : > { %3479 = vmatpush1.bf16.msra.mxu0 %v9441_v53  ;;  %v9531_v53 = vld [vmem:[%s10948_s15 + $0x448] ss:$16 sps:$4 sm:$0xff]  }
 0x2ec   : > { %3520 = vmatpush1.bf16.msra.mxu1 %v9444_v54  ;;  %3480 = vmatprep.subr.bf16.mxu0 %v9449_v55  ;;  %v9534_v54 = vld [vmem:[%s10948_s15 + $0x648] ss:$16 sps:$4 sm:$0xff]   ;;  %v9539_v55 = vld [vmem:[%s10948_s15 + $0x42c] ss:$16 sps:$4 sm:$0xff]  }
 0x2ed   : > { %3521 = vmatprep.subr.bf16.mxu1 %v9452_v56  ;;  %v9542_v56 = vld [vmem:[%s10948_s15 + $0x62c] ss:$16 sps:$4 sm:$0xff]  }
 0x2ef   : > { %3481 = vmatpush1.bf16.msra.mxu0 %v9447_v57  ;;  %v9537_v57 = vld [vmem:[%s10948_s15 + $0x428] ss:$16 sps:$4 sm:$0xff]  }
 0x2f0   : > { %3522 = vmatpush1.bf16.msra.mxu1 %v9450_v58  ;;  %3482 = vmatprep.subr.bf16.mxu0 %v9455_v59  ;;  %v9540_v58 = vld [vmem:[%s10948_s15 + $0x628] ss:$16 sps:$4 sm:$0xff]   ;;  %v9545_v59 = vld [vmem:[%s10948_s15 + $0x40c] ss:$16 sps:$4 sm:$0xff]  }
 0x2f1   : > { %3523 = vmatprep.subr.bf16.mxu1 %v9458_v51  ;;  %v9548_v51 = vld [vmem:[%s10948_s15 + $0x60c] ss:$16 sps:$4 sm:$0xff]  }
 0x2f3   : > { %3483 = vmatpush2.bf16.msra.mxu0 %v9453_v62  ;;  %v9543_v62 = vld [vmem:[%s10948_s15 + $0x408] ss:$16 sps:$4 sm:$0xff]  }
 0x2f4   : > { %3524 = vmatpush2.bf16.msra.mxu1 %v9456_v63  ;;  %3484 = vmatprep.subr.bf16.mxu0 %v9461_v1  ;;  %v9546_v63 = vld [vmem:[%s10948_s15 + $0x608] ss:$16 sps:$4 sm:$0xff]   ;;  %v9551_v1 = vld [vmem:[%s10948_s15 + $0x5ec] ss:$16 sps:$4 sm:$0xff]  }
 0x2f5   : > { %3525 = vmatprep.subr.bf16.mxu1 %v9464_v2  ;;  %v9554_v2 = vld [vmem:[%s10948_s15 + $0x7ec] ss:$16 sps:$4 sm:$0xff]  }
 0x2f7   : > { %3485 = vmatpush2.bf16.msra.mxu0 %v9459_v3  ;;  %v9549_v3 = vld [vmem:[%s10948_s15 + $0x5e8] ss:$16 sps:$4 sm:$0xff]  }
 0x2f8   : > { %3526 = vmatpush2.bf16.msra.mxu1 %v9462_v4  ;;  %3486 = vmatprep.subr.bf16.mxu0 %v9467_v5  ;;  %v9552_v4 = vld [vmem:[%s10948_s15 + $0x7e8] ss:$16 sps:$4 sm:$0xff]   ;;  %v9557_v5 = vld [vmem:[%s10948_s15 + $0x5cc] ss:$16 sps:$4 sm:$0xff]  }
 0x2f9   : > { %3527 = vmatprep.subr.bf16.mxu1 %v9470_v6  ;;  %v9560_v6 = vld [vmem:[%s10948_s15 + $0x7cc] ss:$16 sps:$4 sm:$0xff]  }
 0x2fb   : > { %3487 = vmatpush2.bf16.msra.mxu0 %v9465_v7  ;;  %v9555_v7 = vld [vmem:[%s10948_s15 + $0x5c8] ss:$16 sps:$4 sm:$0xff]  }
 0x2fc   : > { %3528 = vmatpush2.bf16.msra.mxu1 %v9468_v8  ;;  %3488 = vmatprep.subr.bf16.mxu0 %v9473_v10  ;;  %v9558_v8 = vld [vmem:[%s10948_s15 + $0x7c8] ss:$16 sps:$4 sm:$0xff]   ;;  %v9563_v10 = vld [vmem:[%s10948_s15 + $0x5ac] ss:$16 sps:$4 sm:$0xff]  }
 0x2fd   : > { %3529 = vmatprep.subr.bf16.mxu1 %v9476_v11  ;;  %v9566_v11 = vld [vmem:[%s10948_s15 + $0x7ac] ss:$16 sps:$4 sm:$0xff]  }
 0x2ff   : > { %3489 = vmatpush2.bf16.msra.mxu0 %v9471_v14  ;;  %v9561_v14 = vld [vmem:[%s10948_s15 + $0x5a8] ss:$16 sps:$4 sm:$0xff]  }
 0x300   : > { %3530 = vmatpush2.bf16.msra.mxu1 %v9474_v15  ;;  %3490 = vmatprep.subr.bf16.mxu0 %v9479_v16  ;;  %v9564_v15 = vld [vmem:[%s10948_s15 + $0x7a8] ss:$16 sps:$4 sm:$0xff]   ;;  %v9569_v16 = vld [vmem:[%s10948_s15 + $0x58c] ss:$16 sps:$4 sm:$0xff]  }
 0x301   : > { %3531 = vmatprep.subr.bf16.mxu1 %v9482_v19  ;;  %v9572_v19 = vld [vmem:[%s10948_s15 + $0x78c] ss:$16 sps:$4 sm:$0xff]  }
 0x303   : > { %3491 = vmatpush2.bf16.msra.mxu0 %v9477_v20  ;;  %v9567_v20 = vld [vmem:[%s10948_s15 + $0x588] ss:$16 sps:$4 sm:$0xff]  }
 0x304   : > { %3532 = vmatpush2.bf16.msra.mxu1 %v9480_v21  ;;  %3492 = vmatprep.subr.bf16.mxu0 %v9485_v22  ;;  %v9570_v21 = vld [vmem:[%s10948_s15 + $0x788] ss:$16 sps:$4 sm:$0xff]   ;;  %v9575_v22 = vld [vmem:[%s10948_s15 + $0x56c] ss:$16 sps:$4 sm:$0xff]  }
 0x305   : > { %3533 = vmatprep.subr.bf16.mxu1 %v9488_v24  ;;  %v9578_v24 = vld [vmem:[%s10948_s15 + $0x76c] ss:$16 sps:$4 sm:$0xff]  }
 0x307   : > { %3493 = vmatpush2.bf16.msra.mxu0 %v9483_v25  ;;  %v9573_v25 = vld [vmem:[%s10948_s15 + $0x568] ss:$16 sps:$4 sm:$0xff]  }
 0x308   : > { %3534 = vmatpush2.bf16.msra.mxu1 %v9486_v26  ;;  %3494 = vmatprep.subr.bf16.mxu0 %v9491_v27  ;;  %v9576_v26 = vld [vmem:[%s10948_s15 + $0x768] ss:$16 sps:$4 sm:$0xff]   ;;  %v9581_v27 = vld [vmem:[%s10948_s15 + $0x54c] ss:$16 sps:$4 sm:$0xff]  }
 0x309   : > { %3535 = vmatprep.subr.bf16.mxu1 %v9494_v28  ;;  %v9584_v28 = vld [vmem:[%s10948_s15 + $0x74c] ss:$16 sps:$4 sm:$0xff]  }
 0x30b   : > { %3495 = vmatpush2.bf16.msra.mxu0 %v9489_v30  ;;  %v9579_v30 = vld [vmem:[%s10948_s15 + $0x548] ss:$16 sps:$4 sm:$0xff]  }
 0x30c   : > { %3536 = vmatpush2.bf16.msra.mxu1 %v9492_v9  ;;  %3496 = vmatprep.subr.bf16.mxu0 %v9497_v31  ;;  %v9582_v9 = vld [vmem:[%s10948_s15 + $0x748] ss:$16 sps:$4 sm:$0xff]   ;;  %v9587_v31 = vld [vmem:[%s10948_s15 + $0x52c] ss:$16 sps:$4 sm:$0xff]  }
 0x30d   : > { %3537 = vmatprep.subr.bf16.mxu1 %v9500_v13  ;;  %v9590_v13 = vld [vmem:[%s10948_s15 + $0x72c] ss:$16 sps:$4 sm:$0xff]  }
 0x30f   : > { %3497 = vmatpush2.bf16.msra.mxu0 %v9495_v32  ;;  %v9585_v32 = vld [vmem:[%s10948_s15 + $0x528] ss:$16 sps:$4 sm:$0xff]  }
 0x310   : > { %3538 = vmatpush2.bf16.msra.mxu1 %v9498_v33  ;;  %3548 = vmatprep.subr.bf16.mxu0 %v9503_v34  ;;  %v9588_v33 = vld [vmem:[%s10948_s15 + $0x728] ss:$16 sps:$4 sm:$0xff]   ;;  %v9593_v34 = vld [vmem:[%s10948_s15 + $0x50c] ss:$16 sps:$4 sm:$0xff]  }
 0x311   : > { %3589 = vmatprep.subr.bf16.mxu1 %v9506_v35  ;;  %v9596_v35 = vld [vmem:[%s10948_s15 + $0x70c] ss:$16 sps:$4 sm:$0xff]  }
 0x312   : > { %3499 = vmatmul.mubr.bf16.vlgmr.msra.gmra.mxu0 %v11219_v12  ;;  %v9513_v12 = vld [vmem:[%s10948_s15 + $0x4a8] ss:$16 sps:$4 sm:$0xff]  }
 0x313   : > { %3540 = vmatmul.mubr.bf16.vlgmr.msra.gmra.mxu1 %v11229_v18  ;;  %3549 = vmatpush1.bf16.msra.mxu0 %v9501_v36  ;;  %v9516_v18 = vld [vmem:[%s10948_s15 + $0x6a8] ss:$16 sps:$4 sm:$0xff]  }
 0x314   : > { %3590 = vmatpush1.bf16.msra.mxu1 %v9504_v37  ;;  %3550 = vmatprep.subr.bf16.mxu0 %v9509_v38  ;;  %v9591_v36 = vld [vmem:[%s10948_s15 + $0x508] ss:$16 sps:$4 sm:$0xff]   ;;  %v1946_v38 = vsub.s32 0, %v11175_v39 }
 0x315   : > { %3591 = vmatprep.subr.bf16.mxu1 %v9512_v40  ;;  %3580 = vmatprep.mubr.bf16.mxu0 %v11225_v17  ;;  %v9522_v17 = vld [vmem:[%s10948_s15 + $0x688] ss:$16 sps:$4 sm:$0xff]   ;;  %v1942_v40 = vld [vmem:[%s490_s23] sm:$0xf] }
 0x316   : > { %3621 = vmatprep.mubr.bf16.mxu1 %v11237_v23  ;;  %v9527_v23 = vld [vmem:[%s10948_s15 + $0x46c] ss:$16 sps:$4 sm:$0xff]   ;;  %v9594_v37 = vld [vmem:[%s10948_s15 + $0x708] ss:$16 sps:$4 sm:$0xff]  }
 0x317   : > { %3551 = vmatpush1.bf16.msra.mxu0 %v9507_v41  ;;  %v1950_v41 = vsub.s32 1, %v11175_v39 }
 0x318   : > { %3592 = vmatpush1.bf16.msra.mxu1 %v9510_v60  ;;  %3552 = vmatprep.subr.bf16.mxu0 %v9515_v0  ;;  %v1947_v60 = vrot.slane %v1942_v40, %v1946_v38 }
 0x319   : > { %3593 = vmatprep.subr.bf16.mxu1 %v9518_v42  ;;  %v1951_v0 = vrot.slane %v1942_v40, %v1950_v41 }
 0x31b   : > { %3553 = vmatpush1.bf16.msra.mxu0 %v9513_v12 }
 0x31c   : > { %3594 = vmatpush1.bf16.msra.mxu1 %v9516_v18  ;;  %3554 = vmatprep.subr.bf16.mxu0 %v9521_v43 }
 0x31d   : > { %3595 = vmatprep.subr.bf16.mxu1 %v9524_v44 }
 0x31f   : > { %3555 = vmatpush1.bf16.msra.mxu0 %v9519_v46 }
 0x320   : > { %3596 = vmatpush1.bf16.msra.mxu1 %v9522_v17  ;;  %3556 = vmatprep.subr.bf16.mxu0 %v9527_v23 }
 0x321   : > { %3597 = vmatprep.subr.bf16.mxu1 %v9530_v48 }
 0x323   : > { %3557 = vmatpush1.bf16.msra.mxu0 %v9525_v49 }
 0x324   : > { %3598 = vmatpush1.bf16.msra.mxu1 %v9528_v50  ;;  %3558 = vmatprep.subr.bf16.mxu0 %v9533_v52 }
 0x325   : > { %3599 = vmatprep.subr.bf16.mxu1 %v9536_v45 }
 0x327   : > { %3559 = vmatpush1.bf16.msra.mxu0 %v9531_v53 }
 0x328   : > { %3600 = vmatpush1.bf16.msra.mxu1 %v9534_v54  ;;  %3560 = vmatprep.subr.bf16.mxu0 %v9539_v55 }
 0x329   : > { %3601 = vmatprep.subr.bf16.mxu1 %v9542_v56 }
 0x32b   : > { %3561 = vmatpush1.bf16.msra.mxu0 %v9537_v57 }
 0x32c   : > { %3602 = vmatpush1.bf16.msra.mxu1 %v9540_v58  ;;  %3562 = vmatprep.subr.bf16.mxu0 %v9545_v59 }
 0x32d   : > { %3603 = vmatprep.subr.bf16.mxu1 %v9548_v51 }
 0x32f   : > { %3563 = vmatpush1.bf16.msra.mxu0 %v9543_v62 }
 0x330   : > { %3604 = vmatpush1.bf16.msra.mxu1 %v9546_v63  ;;  %3564 = vmatprep.subr.bf16.mxu0 %v9551_v1 }
 0x331   : > { %3605 = vmatprep.subr.bf16.mxu1 %v9554_v2 }
 0x333   : > { %3565 = vmatpush2.bf16.msra.mxu0 %v9549_v3 }
 0x334   : > { %3606 = vmatpush2.bf16.msra.mxu1 %v9552_v4  ;;  %3566 = vmatprep.subr.bf16.mxu0 %v9557_v5 }
 0x335   : > { %3607 = vmatprep.subr.bf16.mxu1 %v9560_v6 }
 0x337   : > { %3567 = vmatpush2.bf16.msra.mxu0 %v9555_v7 }
 0x338   : > { %3608 = vmatpush2.bf16.msra.mxu1 %v9558_v8  ;;  %3568 = vmatprep.subr.bf16.mxu0 %v9563_v10 }
 0x339   : > { %3609 = vmatprep.subr.bf16.mxu1 %v9566_v11  ;;  %v1954_v11 = vsub.s32 2, %v11175_v39 }
 0x33b   : > { %3569 = vmatpush2.bf16.msra.mxu0 %v9561_v14  ;;  %v1958_v14 = vsub.s32 3, %v11175_v39 }
 0x33c   : > { %3610 = vmatpush2.bf16.msra.mxu1 %v9564_v15  ;;  %3570 = vmatprep.subr.bf16.mxu0 %v9569_v16  ;;  %v1955_v15 = vrot.slane %v1942_v40, %v1954_v11 }
 0x33d   : > { %3611 = vmatprep.subr.bf16.mxu1 %v9572_v19  ;;  %v1959_v16 = vrot.slane %v1942_v40, %v1958_v14 }
 0x33f   : > { %3571 = vmatpush2.bf16.msra.mxu0 %v9567_v20 }
 0x340   : > { %3612 = vmatpush2.bf16.msra.mxu1 %v9570_v21  ;;  %3572 = vmatprep.subr.bf16.mxu0 %v9575_v22 }
 0x341   : > { %3613 = vmatprep.subr.bf16.mxu1 %v9578_v24 }
 0x343   : > { %3573 = vmatpush2.bf16.msra.mxu0 %v9573_v25 }
 0x344   : > { %3614 = vmatpush2.bf16.msra.mxu1 %v9576_v26  ;;  %3574 = vmatprep.subr.bf16.mxu0 %v9581_v27 }
 0x345   : > { %3615 = vmatprep.subr.bf16.mxu1 %v9584_v28 }
 0x347   : > { %3575 = vmatpush2.bf16.msra.mxu0 %v9579_v30 }
 0x348   : > { %3616 = vmatpush2.bf16.msra.mxu1 %v9582_v9  ;;  %3576 = vmatprep.subr.bf16.mxu0 %v9587_v31 }
 0x349   : > { %3617 = vmatprep.subr.bf16.mxu1 %v9590_v13 }
 0x34b   : > { %3577 = vmatpush2.bf16.msra.mxu0 %v9585_v32 }
 0x34c   : > { %3618 = vmatpush2.bf16.msra.mxu1 %v9588_v33  ;;  %3578 = vmatprep.subr.bf16.mxu0 %v9593_v34 }
 0x34d   : > { %3619 = vmatprep.subr.bf16.mxu1 %v9596_v35 }
 0x34f   : > { %3579 = vmatpush2.bf16.msra.mxu0 %v9591_v36 }
 0x350   : > { %3620 = vmatpush2.bf16.msra.mxu1 %v9594_v37 }
 0x352   : > { %v3336_v42 = vpop.f32.mrf.mxu0  ;;  %3581 = vmatmul.mubr.bf16.vlgmr.msra.gmra.mxu0 %v11198_v61 }
 0x353   : > { %v3377_v12 = vpop.f32.mrf.mxu1  ;;  %3622 = vmatmul.mubr.bf16.vlgmr.msra.gmra.mxu1 %v11305_v29  ;;  %v3337_v18 = vadd.f32 %v3336_v42, %v1947_v60 }
 0x354   : > { %v3338_v43 = vpop.f32.mrf.mxu0 }
 0x355   : > { %v3379_v44 = vpop.f32.mrf.mxu1  ;;  %v3378_v46 = vadd.f32 %v3377_v12, %v3337_v18  ;;  %v3339_v17 = vadd.f32 %v3338_v43, %v1951_v0 }
 0x356   : > { %v3340_v23 = vpop.f32.mrf.mxu0 }
 0x357   : > { %v3381_v48 = vpop.f32.mrf.mxu1  ;;  %v3380_v49 = vadd.f32 %v3379_v44, %v3339_v17 }
 0x358   : > { %v3341_v50 = vpop.f32.mrf.mxu0 }
 0x359   : > { %v3382_v52 = vpop.f32.mrf.mxu1 }
 0x392   : > { %v3418_v45 = vpop.f32.mrf.mxu0 }
 0x393   : > { %v3459_v53 = vpop.f32.mrf.mxu1  ;;  %v3419_v54 = vadd.f32 %v3418_v45, %v3378_v46 }
 0x394   : > { %v3420_v55 = vpop.f32.mrf.mxu0 }
 0x395   : > { %v3461_v56 = vpop.f32.mrf.mxu1  ;;  %v3460_v57 = vadd.f32 %v3459_v53, %v3419_v54  ;;  %v3421_v58 = vadd.f32 %v3420_v55, %v3380_v49 }
 0x396   : > { %v3422_v61 = vpop.f32.mrf.mxu0 }
 0x397   : > { %v3463_v59 = vpop.f32.mrf.mxu1  ;;  %v11447_v29 = vmax.f32 %v3460_v57, 0.0  ;;  %v3462_v51 = vadd.f32 %v3461_v56, %v3421_v58 }
 0x398   : > { %v3423_v62 = vpop.f32.mrf.mxu0 }
 0x399   : > { %v3464_v63 = vpop.f32.mrf.mxu1  ;;  %v11449_v1 = vmax.f32 %v3462_v51, 0.0 }
 0x3d2   : > { %v3500_v2 = vpop.f32.mrf.mxu0 }
 0x3d3   : > { %v3541_v3 = vpop.f32.mrf.mxu1  ;;  %v3501_v19 = vadd.f32 %v3500_v2, %v1955_v15 }
 0x3d4   : > { %v3502_v4 = vpop.f32.mrf.mxu0 }
 0x3d5   : > { %v3543_v5 = vpop.f32.mrf.mxu1  ;;  %v3503_v20 = vadd.f32 %v3502_v4, %v1959_v16  ;;  %v3542_v21 = vadd.f32 %v3541_v3, %v3501_v19 }
 0x3d6   : > { %v3504_v6 = vpop.f32.mrf.mxu0 }
 0x3d7   : > { %v3545_v7 = vpop.f32.mrf.mxu1  ;;  %v3544_v25 = vadd.f32 %v3543_v5, %v3503_v20 }
 0x3d8   : > { %v3505_v8 = vpop.f32.mrf.mxu0 }
 0x3d9   : > { %v3546_v10 = vpop.f32.mrf.mxu1 }
 0x412   : > { %v3582_v22 = vpop.f32.mrf.mxu0 }
 0x413   : > { %v3623_v24 = vpop.f32.mrf.mxu1  ;;  %v3583_v26 = vadd.f32 %v3582_v22, %v3542_v21 }
 0x414   : > { %v3584_v27 = vpop.f32.mrf.mxu0 }
 0x415   : > { %v3625_v28 = vpop.f32.mrf.mxu1  ;;  %v3624_v30 = vadd.f32 %v3623_v24, %v3583_v26  ;;  %v3585_v9 = vadd.f32 %v3584_v27, %v3544_v25  ;;  %3641 = sbr.rel (%p8375_p3) target bundleno = 1058 (0x422), region = 92 }
 0x416   : > { %v3586_v31 = vpop.f32.mrf.mxu0 }
 0x417   : > { %v3627_v13 = vpop.f32.mrf.mxu1  ;;  %v3632_v32 = vmax.f32 %v3624_v30, 0.0  ;;  %v3626_v33 = vadd.f32 %v3625_v28, %v3585_v9 }
 0x418   : > { %v3587_v34 = vpop.f32.mrf.mxu0 }
 0x419   : > { %v3628_v35 = vpop.f32.mrf.mxu1  ;;  %v3633_v39 = vmax.f32 %v3626_v33, 0.0 }
 0x41a   : > { %v8376_v36 = vpack.c.bf16 %v11449_v1, %v11447_v29 }
 0x41b   : > { %v8377_v37 = vpack.c.bf16 %v3633_v39, %v3632_v32 }
 0x41c   : > { %v3654_v38 = vrot.slane %v8376_v36, %v11183_v47 }
 0x41d   : > { %v3661_v40 = vrot.slane %v8377_v37, %v11183_v47 }
 0x41f   : > { %v3662_v41 = vcombine.low %v3654_v38, %v3661_v40 }
 0x421   : > { %8378 = vst.sshfl [vmem:[#allocation3] sm:$0x55 pattern:$0x73625140] %v3662_v41 }
 0x422 PF: > { %s11721_s25 = sld [smem:[#allocation23_spill]] }
 0x428   : > { %p8379_p11 = scmp.ne.s32.totalorder %s11721_s25, 3 }
 0x42a   : > { %3675 = sbr.rel (%p8379_p11) target bundleno = 1078 (0x436), region = 96 }
 0x42f   : > { %v8380_v60 = vpack.c.bf16 %v11449_v1, %v11447_v29  ;;  %v8381_v0 = vpack.c.bf16 %v3633_v39, %v3632_v32 }
 0x431   : > { %v3688_v42 = vrot.slane %v8380_v60, %v11183_v47  ;;  %v3695_v12 = vrot.slane %v8381_v0, %v11183_v47 }
 0x433   : > { %v3696_v18 = vcombine.low %v3688_v42, %v3695_v12 }
 0x435   : > { %8382 = vst.sshfl [vmem:[#allocation3 + $0x4] sm:$0x55 pattern:$0x73625140] %v3696_v18 }
 0x436 PF: > { %s11722_s24 = sld [smem:[#allocation23_spill]] }
 0x43c   : > { %p8383_p4 = scmp.ne.s32.totalorder %s11722_s24, 4 }
 0x43e   : > { %3709 = sbr.rel (%p8383_p4) target bundleno = 1098 (0x44a), region = 100 }
 0x443   : > { %v8384_v43 = vpack.c.bf16 %v11449_v1, %v11447_v29  ;;  %v8385_v44 = vpack.c.bf16 %v3633_v39, %v3632_v32 }
 0x445   : > { %v3722_v46 = vrot.slane %v8384_v43, %v11183_v47  ;;  %v3729_v17 = vrot.slane %v8385_v44, %v11183_v47 }
 0x447   : > { %v3730_v23 = vcombine.low %v3722_v46, %v3729_v17 }
 0x449   : > { %8386 = vst.sshfl [vmem:[#allocation3 + $0x8] sm:$0x55 pattern:$0x73625140] %v3730_v23 }
 0x44a PF: > { %s11723_s22 = sld [smem:[#allocation23_spill]] }
 0x450   : > { %p8387_p5 = scmp.ne.s32.totalorder %s11723_s22, 5 }
 0x452   : > { %3743 = sbr.rel (%p8387_p5) target bundleno = 1118 (0x45e), region = 104 }
 0x457   : > { %v8388_v48 = vpack.c.bf16 %v11449_v1, %v11447_v29  ;;  %v8389_v49 = vpack.c.bf16 %v3633_v39, %v3632_v32 }
 0x459   : > { %v3756_v50 = vrot.slane %v8388_v48, %v11183_v47  ;;  %v3763_v52 = vrot.slane %v8389_v49, %v11183_v47 }
 0x45b   : > { %v3764_v45 = vcombine.low %v3756_v50, %v3763_v52 }
 0x45d   : > { %8390 = vst.sshfl [vmem:[#allocation3 + $0xc] sm:$0x55 pattern:$0x73625140] %v3764_v45 }
 0x45e PF: > { %3777 = sbr.rel (%p1680_p2) target bundleno = 1842 (0x732), region = 108  ;;  %s11725_s13 = sld [smem:[#allocation30_spill]] (!%p1680_p2) }
 0x463   : > { %v9597_v53 = vld [vmem:[#allocation11 + $0xe4] ss:$16 sps:$4 sm:$0xff]   ;;  %v9601_v55 = vld [vmem:[#allocation11 + $0xe0] ss:$16 sps:$4 sm:$0xff]   ;;  %v4294_v9 = vlaneseq  ;;  %v10624_v31 = vmov 1966171168  }
 0x464   : > { %v9599_v54 = vld [vmem:[#allocation11 + $0x2e4] ss:$16 sps:$4 sm:$0xff]   ;;  %6990 = vmatprep.subr.bf16.mxu0 %v9597_v53  ;;  %v9602_v56 = vld [vmem:[#allocation11 + $0x2e0] ss:$16 sps:$4 sm:$0xff]   ;;  %v4318_v13 = vunpack.c.l.s4 %v10624_v31 }
 0x465   : > { %7031 = vmatprep.subr.bf16.mxu1 %v9599_v54  ;;  %v9603_v57 = vld [vmem:[#allocation11 + $0xc4] ss:$16 sps:$4 sm:$0xff]   ;;  %6991 = vmatpush1.bf16.msra.mxu0 %v9601_v55  ;;  %v9607_v61 = vld [vmem:[#allocation11 + $0xc0] ss:$16 sps:$4 sm:$0xff]   ;;  %v11475_v35 = vshrl.u32 %v4294_v9, 7 }
 0x466   : > { %7032 = vmatpush1.bf16.msra.mxu1 %v9602_v56  ;;  %v9605_v58 = vld [vmem:[#allocation11 + $0x2c4] ss:$16 sps:$4 sm:$0xff]   ;;  %6992 = vmatprep.subr.bf16.mxu0 %v9603_v57  ;;  %v9608_v47 = vld [vmem:[#allocation11 + $0x2c0] ss:$16 sps:$4 sm:$0xff]   ;;  %v4319_v39 = vunpack.c.0.s8 %v4318_v13 }
 0x467   : > { %7033 = vmatprep.subr.bf16.mxu1 %v9605_v58  ;;  %v9609_v59 = vld [vmem:[#allocation11 + $0xa4] ss:$16 sps:$4 sm:$0xff]   ;;  %v9613_v51 = vld [vmem:[#allocation11 + $0xa0] ss:$16 sps:$4 sm:$0xff]  }
 0x468   : > { %v9611_v29 = vld [vmem:[#allocation11 + $0x2a4] ss:$16 sps:$4 sm:$0xff]   ;;  %v9614_v62 = vld [vmem:[#allocation11 + $0x2a0] ss:$16 sps:$4 sm:$0xff]   ;;  %v11478_v60 = vsub.s32 %v4319_v39, %v11475_v35 }
 0x469   : > { %6993 = vmatpush1.bf16.msra.mxu0 %v9607_v61  ;;  %v9615_v63 = vld [vmem:[#allocation11 + $0x84] ss:$16 sps:$4 sm:$0xff]   ;;  %v9619_v2 = vld [vmem:[#allocation11 + $0x80] ss:$16 sps:$4 sm:$0xff]  }
 0x46a   : > { %7034 = vmatpush1.bf16.msra.mxu1 %v9608_v47  ;;  %6994 = vmatprep.subr.bf16.mxu0 %v9609_v59  ;;  %v9617_v1 = vld [vmem:[#allocation11 + $0x284] ss:$16 sps:$4 sm:$0xff]   ;;  %v9620_v3 = vld [vmem:[#allocation11 + $0x280] ss:$16 sps:$4 sm:$0xff]  }
 0x46b   : > { %7035 = vmatprep.subr.bf16.mxu1 %v9611_v29  ;;  %v9621_v4 = vld [vmem:[#allocation11 + $0x64] ss:$16 sps:$4 sm:$0xff]   ;;  %v9625_v6 = vld [vmem:[#allocation11 + $0x60] ss:$16 sps:$4 sm:$0xff]  }
 0x46c   : > { %v9623_v5 = vld [vmem:[#allocation11 + $0x264] ss:$16 sps:$4 sm:$0xff]   ;;  %v9626_v7 = vld [vmem:[#allocation11 + $0x260] ss:$16 sps:$4 sm:$0xff]  }
 0x46d   : > { %6995 = vmatpush1.bf16.msra.mxu0 %v9613_v51  ;;  %v9627_v8 = vld [vmem:[#allocation11 + $0x44] ss:$16 sps:$4 sm:$0xff]   ;;  %v9631_v11 = vld [vmem:[#allocation11 + $0x40] ss:$16 sps:$4 sm:$0xff]  }
 0x46e   : > { %7036 = vmatpush1.bf16.msra.mxu1 %v9614_v62  ;;  %6996 = vmatprep.subr.bf16.mxu0 %v9615_v63  ;;  %v9629_v10 = vld [vmem:[#allocation11 + $0x244] ss:$16 sps:$4 sm:$0xff]   ;;  %v9632_v14 = vld [vmem:[#allocation11 + $0x240] ss:$16 sps:$4 sm:$0xff]  }
 0x46f   : > { %7037 = vmatprep.subr.bf16.mxu1 %v9617_v1  ;;  %v9633_v15 = vld [vmem:[#allocation11 + $0x24] ss:$16 sps:$4 sm:$0xff]   ;;  %v9637_v19 = vld [vmem:[#allocation11 + $0x20] ss:$16 sps:$4 sm:$0xff]  }
 0x470   : > { %v9635_v16 = vld [vmem:[#allocation11 + $0x224] ss:$16 sps:$4 sm:$0xff]   ;;  %v9638_v20 = vld [vmem:[#allocation11 + $0x220] ss:$16 sps:$4 sm:$0xff]  }
 0x471   : > { %6997 = vmatpush1.bf16.msra.mxu0 %v9619_v2  ;;  %v9639_v21 = vld [vmem:[#allocation11 + $0x4] ss:$16 sps:$4 sm:$0xff]   ;;  %v9643_v24 = vld [vmem:[#allocation11] ss:$16 sps:$4 sm:$0xff]  }
 0x472   : > { %7038 = vmatpush1.bf16.msra.mxu1 %v9620_v3  ;;  %6998 = vmatprep.subr.bf16.mxu0 %v9621_v4  ;;  %v9641_v22 = vld [vmem:[#allocation11 + $0x204] ss:$16 sps:$4 sm:$0xff]   ;;  %v9644_v25 = vld [vmem:[#allocation11 + $0x200] ss:$16 sps:$4 sm:$0xff]  }
 0x473   : > { %7039 = vmatprep.subr.bf16.mxu1 %v9623_v5  ;;  %v9645_v26 = vld [vmem:[#allocation11 + $0x1e4] ss:$16 sps:$4 sm:$0xff]   ;;  %v9649_v28 = vld [vmem:[#allocation11 + $0x1e0] ss:$16 sps:$4 sm:$0xff]  }
 0x474   : > { %v9647_v27 = vld [vmem:[#allocation11 + $0x3e4] ss:$16 sps:$4 sm:$0xff]   ;;  %v9650_v30 = vld [vmem:[#allocation11 + $0x3e0] ss:$16 sps:$4 sm:$0xff]  }
 0x475   : > { %6999 = vmatpush1.bf16.msra.mxu0 %v9625_v6  ;;  %v9651_v32 = vld [vmem:[#allocation11 + $0x1c4] ss:$16 sps:$4 sm:$0xff]   ;;  %v9655_v34 = vld [vmem:[#allocation11 + $0x1c0] ss:$16 sps:$4 sm:$0xff]  }
 0x476   : > { %7040 = vmatpush1.bf16.msra.mxu1 %v9626_v7  ;;  %7000 = vmatprep.subr.bf16.mxu0 %v9627_v8  ;;  %v9653_v33 = vld [vmem:[#allocation11 + $0x3c4] ss:$16 sps:$4 sm:$0xff]   ;;  %v9656_v36 = vld [vmem:[#allocation11 + $0x3c0] ss:$16 sps:$4 sm:$0xff]  }
 0x477   : > { %7041 = vmatprep.subr.bf16.mxu1 %v9629_v10  ;;  %v9657_v37 = vld [vmem:[#allocation11 + $0x1a4] ss:$16 sps:$4 sm:$0xff]   ;;  %v9661_v40 = vld [vmem:[#allocation11 + $0x1a0] ss:$16 sps:$4 sm:$0xff]  }
 0x478   : > { %v9659_v38 = vld [vmem:[#allocation11 + $0x3a4] ss:$16 sps:$4 sm:$0xff]   ;;  %v9662_v41 = vld [vmem:[#allocation11 + $0x3a0] ss:$16 sps:$4 sm:$0xff]  }
 0x479   : > { %7001 = vmatpush1.bf16.msra.mxu0 %v9631_v11  ;;  %v9663_v0 = vld [vmem:[#allocation11 + $0x184] ss:$16 sps:$4 sm:$0xff]   ;;  %v9667_v18 = vld [vmem:[#allocation11 + $0x180] ss:$16 sps:$4 sm:$0xff]  }
 0x47a   : > { %7042 = vmatpush1.bf16.msra.mxu1 %v9632_v14  ;;  %7002 = vmatprep.subr.bf16.mxu0 %v9633_v15  ;;  %v9665_v42 = vld [vmem:[#allocation11 + $0x384] ss:$16 sps:$4 sm:$0xff]   ;;  %v9668_v44 = vld [vmem:[#allocation11 + $0x380] ss:$16 sps:$4 sm:$0xff]  }
 0x47b   : > { %7043 = vmatprep.subr.bf16.mxu1 %v9635_v16  ;;  %v3778_v12 = vld [vmem:[#allocation3] sm:$0xff] }
 0x47c   : > { %v4323_v43 = vrot.slane %v3778_v12, %v11478_v60  ;;  %v9669_v46 = vld [vmem:[#allocation11 + $0x164] ss:$16 sps:$4 sm:$0xff]   ;;  %v9673_v48 = vld [vmem:[#allocation11 + $0x160] ss:$16 sps:$4 sm:$0xff]   ;;  %v4316_v54 = vcombine.high %v3778_v12, %v3778_v12 }
 0x47d   : > { %7003 = vmatpush1.bf16.msra.mxu0 %v9637_v19  ;;  %v9671_v17 = vld [vmem:[#allocation11 + $0x364] ss:$16 sps:$4 sm:$0xff]   ;;  %v9674_v50 = vld [vmem:[#allocation11 + $0x360] ss:$16 sps:$4 sm:$0xff]  }
 0x47e   : > { %7044 = vmatpush1.bf16.msra.mxu1 %v9638_v20  ;;  %7004 = vmatprep.subr.bf16.mxu0 %v9639_v21  ;;  %v4331_v23 = vcombine.high %v4323_v43, %v4323_v43  ;;  %v9675_v52 = vld [vmem:[#allocation11 + $0x144] ss:$16 sps:$4 sm:$0xff]   ;;  %v9679_v55 = vld [vmem:[#allocation11 + $0x140] ss:$16 sps:$4 sm:$0xff]   ;;  %v11491_v61 = vrot.slane %v4316_v54, %v11478_v60  ;;  %v11496_v1 = vrot.slane %v4323_v43, %v11478_v60 }
 0x47f   : > { %7045 = vmatprep.subr.bf16.mxu1 %v9641_v22  ;;  %v9677_v45 = vld [vmem:[#allocation11 + $0x344] ss:$16 sps:$4 sm:$0xff]   ;;  %v9680_v56 = vld [vmem:[#allocation11 + $0x340] ss:$16 sps:$4 sm:$0xff]  }
 0x480   : > { %v11482_v49 = vrot.slane %v4331_v23, %v11478_v60  ;;  %v9681_v57 = vld [vmem:[#allocation11 + $0x124] ss:$16 sps:$4 sm:$0xff]   ;;  %v9685_v47 = vld [vmem:[#allocation11 + $0x120] ss:$16 sps:$4 sm:$0xff]   ;;  %v4332_v62 = vcombine.high %v11491_v61, %v11491_v61  ;;  %v11503_v6 = vcombine.high %v11496_v1, %v11496_v1 }
 0x481   : > { %7005 = vmatpush1.bf16.msra.mxu0 %v9643_v24  ;;  %v9683_v58 = vld [vmem:[#allocation11 + $0x324] ss:$16 sps:$4 sm:$0xff]   ;;  %v9686_v59 = vld [vmem:[#allocation11 + $0x320] ss:$16 sps:$4 sm:$0xff]  }
 0x482   : > { %7046 = vmatpush1.bf16.msra.mxu1 %v9644_v25  ;;  %7006 = vmatprep.subr.bf16.mxu0 %v9645_v26  ;;  %v11486_v53 = vcombine.high %v11482_v49, %v11482_v49  ;;  %v9687_v29 = vld [vmem:[#allocation11 + $0x104] ss:$16 sps:$4 sm:$0xff]   ;;  %v9691_v63 = vld [vmem:[#allocation11 + $0x100] ss:$16 sps:$4 sm:$0xff]   ;;  %v11499_v5 = vrot.slane %v4332_v62, %v11478_v60 }
 0x483   : > { %7047 = vmatprep.subr.bf16.mxu1 %v9647_v27  ;;  %7022 = vmatprep.mubr.bf16.mxu0 %v11482_v49  ;;  %v9689_v51 = vld [vmem:[#allocation11 + $0x304] ss:$16 sps:$4 sm:$0xff]   ;;  %v9692_v2 = vld [vmem:[#allocation11 + $0x300] ss:$16 sps:$4 sm:$0xff]  }
 0x484   : > { %7063 = vmatprep.mubr.bf16.mxu1 %v11486_v53  ;;  %v9695_v3 = vld [vmem:[#allocation11 + $0x4e4] ss:$16 sps:$4 sm:$0xff]   ;;  %v9693_v7 = vld [vmem:[#allocation11 + $0x4e0] ss:$16 sps:$4 sm:$0xff]   ;;  %v11507_v14 = vcombine.high %v11499_v5, %v11499_v5 }
 0x485   : > { %7007 = vmatpush2.bf16.msra.mxu0 %v9649_v28  ;;  %v9698_v4 = vld [vmem:[#allocation11 + $0x6e4] ss:$16 sps:$4 sm:$0xff]   ;;  %v9696_v8 = vld [vmem:[#allocation11 + $0x6e0] ss:$16 sps:$4 sm:$0xff]  }
 0x486   : > { %7048 = vmatpush2.bf16.msra.mxu1 %v9650_v30  ;;  %7008 = vmatprep.subr.bf16.mxu0 %v9651_v32  ;;  %v9701_v10 = vld [vmem:[#allocation11 + $0x4c4] ss:$16 sps:$4 sm:$0xff]   ;;  %v9699_v15 = vld [vmem:[#allocation11 + $0x4c0] ss:$16 sps:$4 sm:$0xff]  }
 0x487   : > { %7049 = vmatprep.subr.bf16.mxu1 %v9653_v33  ;;  %v9704_v11 = vld [vmem:[#allocation11 + $0x6c4] ss:$16 sps:$4 sm:$0xff]   ;;  %v9702_v16 = vld [vmem:[#allocation11 + $0x6c0] ss:$16 sps:$4 sm:$0xff]  }
 0x488   : > { %v9707_v19 = vld [vmem:[#allocation11 + $0x4a4] ss:$16 sps:$4 sm:$0xff]   ;;  %v9705_v21 = vld [vmem:[#allocation11 + $0x4a0] ss:$16 sps:$4 sm:$0xff]  }
 0x489   : > { %7009 = vmatpush2.bf16.msra.mxu0 %v9655_v34  ;;  %v9710_v20 = vld [vmem:[#allocation11 + $0x6a4] ss:$16 sps:$4 sm:$0xff]   ;;  %v9708_v22 = vld [vmem:[#allocation11 + $0x6a0] ss:$16 sps:$4 sm:$0xff]  }
 0x48a   : > { %7050 = vmatpush2.bf16.msra.mxu1 %v9656_v36  ;;  %7010 = vmatprep.subr.bf16.mxu0 %v9657_v37  ;;  %v9713_v24 = vld [vmem:[#allocation11 + $0x484] ss:$16 sps:$4 sm:$0xff]   ;;  %v9711_v26 = vld [vmem:[#allocation11 + $0x480] ss:$16 sps:$4 sm:$0xff]  }
 0x48b   : > { %7051 = vmatprep.subr.bf16.mxu1 %v9659_v38  ;;  %v9716_v25 = vld [vmem:[#allocation11 + $0x684] ss:$16 sps:$4 sm:$0xff]   ;;  %v9714_v27 = vld [vmem:[#allocation11 + $0x680] ss:$16 sps:$4 sm:$0xff]  }
 0x48c   : > { %v9719_v28 = vld [vmem:[#allocation11 + $0x464] ss:$16 sps:$4 sm:$0xff]   ;;  %v9717_v9 = vld [vmem:[#allocation11 + $0x460] ss:$16 sps:$4 sm:$0xff]  }
 0x48d   : > { %7011 = vmatpush2.bf16.msra.mxu0 %v9661_v40  ;;  %v9722_v30 = vld [vmem:[#allocation11 + $0x664] ss:$16 sps:$4 sm:$0xff]   ;;  %v9720_v31 = vld [vmem:[#allocation11 + $0x660] ss:$16 sps:$4 sm:$0xff]  }
 0x48e   : > { %7052 = vmatpush2.bf16.msra.mxu1 %v9662_v41  ;;  %7012 = vmatprep.subr.bf16.mxu0 %v9663_v0  ;;  %v9725_v13 = vld [vmem:[#allocation11 + $0x444] ss:$16 sps:$4 sm:$0xff]   ;;  %v9723_v33 = vld [vmem:[#allocation11 + $0x440] ss:$16 sps:$4 sm:$0xff]  }
 0x48f   : > { %7053 = vmatprep.subr.bf16.mxu1 %v9665_v42  ;;  %v9728_v32 = vld [vmem:[#allocation11 + $0x644] ss:$16 sps:$4 sm:$0xff]   ;;  %v9726_v34 = vld [vmem:[#allocation11 + $0x640] ss:$16 sps:$4 sm:$0xff]  }
 0x490   : > { %v9731_v39 = vld [vmem:[#allocation11 + $0x424] ss:$16 sps:$4 sm:$0xff]   ;;  %v9729_v37 = vld [vmem:[#allocation11 + $0x420] ss:$16 sps:$4 sm:$0xff]  }
 0x491   : > { %7013 = vmatpush2.bf16.msra.mxu0 %v9667_v18  ;;  %v9734_v36 = vld [vmem:[#allocation11 + $0x624] ss:$16 sps:$4 sm:$0xff]   ;;  %v9732_v38 = vld [vmem:[#allocation11 + $0x620] ss:$16 sps:$4 sm:$0xff]  }
 0x492   : > { %7054 = vmatpush2.bf16.msra.mxu1 %v9668_v44  ;;  %7014 = vmatprep.subr.bf16.mxu0 %v9669_v46  ;;  %v9737_v40 = vld [vmem:[#allocation11 + $0x404] ss:$16 sps:$4 sm:$0xff]   ;;  %v9735_v0 = vld [vmem:[#allocation11 + $0x400] ss:$16 sps:$4 sm:$0xff]  }
 0x493   : > { %7055 = vmatprep.subr.bf16.mxu1 %v9671_v17  ;;  %v9740_v41 = vld [vmem:[#allocation11 + $0x604] ss:$16 sps:$4 sm:$0xff]   ;;  %v9738_v42 = vld [vmem:[#allocation11 + $0x600] ss:$16 sps:$4 sm:$0xff]  }
 0x494   : > { %v9743_v12 = vld [vmem:[#allocation11 + $0x5e4] ss:$16 sps:$4 sm:$0xff]   ;;  %v9741_v43 = vld [vmem:[#allocation11 + $0x5e0] ss:$16 sps:$4 sm:$0xff]  }
 0x495   : > { %7015 = vmatpush2.bf16.msra.mxu0 %v9673_v48  ;;  %v9746_v18 = vld [vmem:[#allocation11 + $0x7e4] ss:$16 sps:$4 sm:$0xff]   ;;  %v9744_v44 = vld [vmem:[#allocation11 + $0x7e0] ss:$16 sps:$4 sm:$0xff]  }
 0x496   : > { %7056 = vmatpush2.bf16.msra.mxu1 %v9674_v50  ;;  %7016 = vmatprep.subr.bf16.mxu0 %v9675_v52  ;;  %v9749_v46 = vld [vmem:[#allocation11 + $0x5c4] ss:$16 sps:$4 sm:$0xff]   ;;  %v9747_v23 = vld [vmem:[#allocation11 + $0x5c0] ss:$16 sps:$4 sm:$0xff]  }
 0x497   : > { %7057 = vmatprep.subr.bf16.mxu1 %v9677_v45  ;;  %v9752_v17 = vld [vmem:[#allocation11 + $0x7c4] ss:$16 sps:$4 sm:$0xff]   ;;  %v9750_v48 = vld [vmem:[#allocation11 + $0x7c0] ss:$16 sps:$4 sm:$0xff]  }
 0x498   : > { %v9755_v50 = vld [vmem:[#allocation11 + $0x5a4] ss:$16 sps:$4 sm:$0xff]   ;;  %v9753_v45 = vld [vmem:[#allocation11 + $0x5a0] ss:$16 sps:$4 sm:$0xff]  }
 0x499   : > { %7017 = vmatpush2.bf16.msra.mxu0 %v9679_v55  ;;  %v9758_v52 = vld [vmem:[#allocation11 + $0x7a4] ss:$16 sps:$4 sm:$0xff]   ;;  %v9756_v54 = vld [vmem:[#allocation11 + $0x7a0] ss:$16 sps:$4 sm:$0xff]  }
 0x49a   : > { %7058 = vmatpush2.bf16.msra.mxu1 %v9680_v56  ;;  %7018 = vmatprep.subr.bf16.mxu0 %v9681_v57  ;;  %v9761_v55 = vld [vmem:[#allocation11 + $0x584] ss:$16 sps:$4 sm:$0xff]   ;;  %v9759_v57 = vld [vmem:[#allocation11 + $0x580] ss:$16 sps:$4 sm:$0xff]  }
 0x49b   : > { %7059 = vmatprep.subr.bf16.mxu1 %v9683_v58  ;;  %v9764_v56 = vld [vmem:[#allocation11 + $0x784] ss:$16 sps:$4 sm:$0xff]   ;;  %v9762_v58 = vld [vmem:[#allocation11 + $0x780] ss:$16 sps:$4 sm:$0xff]  }
 0x49c   : > { %v9773_v62 = vld [vmem:[#allocation11 + $0x544] ss:$16 sps:$4 sm:$0xff]  }
 0x49d   : > { %7019 = vmatpush2.bf16.msra.mxu0 %v9685_v47  ;;  %v9767_v47 = vld [vmem:[#allocation11 + $0x564] ss:$16 sps:$4 sm:$0xff]  }
 0x49e   : > { %7060 = vmatpush2.bf16.msra.mxu1 %v9686_v59  ;;  %7020 = vmatprep.subr.bf16.mxu0 %v9687_v29  ;;  %v9770_v59 = vld [vmem:[#allocation11 + $0x764] ss:$16 sps:$4 sm:$0xff]   ;;  %v9765_v29 = vld [vmem:[#allocation11 + $0x560] ss:$16 sps:$4 sm:$0xff]  }
 0x49f   : > { %7061 = vmatprep.subr.bf16.mxu1 %v9689_v51  ;;  %v9768_v51 = vld [vmem:[#allocation11 + $0x760] ss:$16 sps:$4 sm:$0xff]  }
 0x4a1   : > { %7021 = vmatpush2.bf16.msra.mxu0 %v9691_v63  ;;  %v9776_v63 = vld [vmem:[#allocation11 + $0x744] ss:$16 sps:$4 sm:$0xff]  }
 0x4a2   : > { %7062 = vmatpush2.bf16.msra.mxu1 %v9692_v2  ;;  %7072 = vmatprep.subr.bf16.mxu0 %v9695_v3  ;;  %v9771_v2 = vld [vmem:[#allocation11 + $0x540] ss:$16 sps:$4 sm:$0xff]  }
 0x4a3   : > { %7113 = vmatprep.subr.bf16.mxu1 %v9698_v4  ;;  %v9774_v3 = vld [vmem:[#allocation11 + $0x740] ss:$16 sps:$4 sm:$0xff]   ;;  %v9779_v4 = vld [vmem:[#allocation11 + $0x524] ss:$16 sps:$4 sm:$0xff]  }
 0x4a4   : > { %7023 = vmatmul.mubr.bf16.vlgmr.msra.gmra.mxu0 %v11496_v1 }
 0x4a5   : > { %7064 = vmatmul.mubr.bf16.vlgmr.msra.gmra.mxu1 %v11503_v6  ;;  %7073 = vmatpush1.bf16.msra.mxu0 %v9693_v7  ;;  %v9782_v7 = vld [vmem:[#allocation11 + $0x724] ss:$16 sps:$4 sm:$0xff]  }
 0x4a6   : > { %7114 = vmatpush1.bf16.msra.mxu1 %v9696_v8  ;;  %7074 = vmatprep.subr.bf16.mxu0 %v9701_v10  ;;  %v9777_v8 = vld [vmem:[#allocation11 + $0x520] ss:$16 sps:$4 sm:$0xff]  }
 0x4a7   : > { %7115 = vmatprep.subr.bf16.mxu1 %v9704_v11  ;;  %7104 = vmatprep.mubr.bf16.mxu0 %v11499_v5  ;;  %v9780_v10 = vld [vmem:[#allocation11 + $0x720] ss:$16 sps:$4 sm:$0xff]   ;;  %v9785_v11 = vld [vmem:[#allocation11 + $0x504] ss:$16 sps:$4 sm:$0xff]  }
 0x4a8   : > { %7145 = vmatprep.mubr.bf16.mxu1 %v11507_v14 }
 0x4a9   : > { %7075 = vmatpush1.bf16.msra.mxu0 %v9699_v15  ;;  %v9788_v15 = vld [vmem:[#allocation11 + $0x704] ss:$16 sps:$4 sm:$0xff]  }
 0x4aa   : > { %7116 = vmatpush1.bf16.msra.mxu1 %v9702_v16  ;;  %7076 = vmatprep.subr.bf16.mxu0 %v9707_v19  ;;  %v9783_v16 = vld [vmem:[#allocation11 + $0x500] ss:$16 sps:$4 sm:$0xff]   ;;  %v11515_v19 = vrot.slane %v11491_v61, %v11478_v60  ;;  %v9798_v61 = vld [vmem:[#allocation11 + $0x8c4] ss:$16 sps:$4 sm:$0xff]  }
 0x4ab   : > { %7117 = vmatprep.subr.bf16.mxu1 %v9710_v20  ;;  %v9786_v20 = vld [vmem:[#allocation11 + $0x700] ss:$16 sps:$4 sm:$0xff]  }
 0x4ad   : > { %7077 = vmatpush1.bf16.msra.mxu0 %v9705_v21  ;;  %v9792_v21 = vld [vmem:[#allocation11 + $0x8e4] ss:$16 sps:$4 sm:$0xff]  }
 0x4ae   : > { %7118 = vmatpush1.bf16.msra.mxu1 %v9708_v22  ;;  %7078 = vmatprep.subr.bf16.mxu0 %v9713_v24  ;;  %v9795_v22 = vld [vmem:[#allocation11 + $0xae4] ss:$16 sps:$4 sm:$0xff]   ;;  %v11519_v24 = vcombine.high %v11515_v19, %v11515_v19 }
 0x4af   : > { %7119 = vmatprep.subr.bf16.mxu1 %v9716_v25  ;;  %v9790_v25 = vld [vmem:[#allocation11 + $0x8e0] ss:$16 sps:$4 sm:$0xff]  }
 0x4b1   : > { %7079 = vmatpush1.bf16.msra.mxu0 %v9711_v26  ;;  %v9793_v26 = vld [vmem:[#allocation11 + $0xae0] ss:$16 sps:$4 sm:$0xff]  }
 0x4b2   : > { %7120 = vmatpush1.bf16.msra.mxu1 %v9714_v27  ;;  %7080 = vmatprep.subr.bf16.mxu0 %v9719_v28  ;;  %v11521_v27 = vld [vmem:[#allocation3 + $0x8] sm:$0xff]  ;;  %v9801_v28 = vld [vmem:[#allocation11 + $0xac4] ss:$16 sps:$4 sm:$0xff]  }
 0x4b3   : > { %7121 = vmatprep.subr.bf16.mxu1 %v9722_v30  ;;  %v11525_v30 = vrot.slane %v11521_v27, %v11478_v60 }
 0x4b5   : > { %7081 = vmatpush1.bf16.msra.mxu0 %v9717_v9  ;;  %v4380_v9 = vcombine.high %v11525_v30, %v11525_v30 }
 0x4b6   : > { %7122 = vmatpush1.bf16.msra.mxu1 %v9720_v31  ;;  %7082 = vmatprep.subr.bf16.mxu0 %v9725_v13  ;;  %v9796_v31 = vld [vmem:[#allocation11 + $0x8c0] ss:$16 sps:$4 sm:$0xff]  }
 0x4b7   : > { %7123 = vmatprep.subr.bf16.mxu1 %v9728_v32  ;;  %v9799_v13 = vld [vmem:[#allocation11 + $0xac0] ss:$16 sps:$4 sm:$0xff]   ;;  %v9804_v32 = vld [vmem:[#allocation11 + $0x8a4] ss:$16 sps:$4 sm:$0xff]  }
 0x4b9   : > { %7083 = vmatpush1.bf16.msra.mxu0 %v9723_v33  ;;  %v9807_v33 = vld [vmem:[#allocation11 + $0xaa4] ss:$16 sps:$4 sm:$0xff]  }
 0x4ba   : > { %7124 = vmatpush1.bf16.msra.mxu1 %v9726_v34  ;;  %7084 = vmatprep.subr.bf16.mxu0 %v9731_v39  ;;  %v11532_v34 = vrot.slane %v4380_v9, %v11478_v60  ;;  %v9868_v9 = vld [vmem:[#allocation11 + $0x940] ss:$16 sps:$4 sm:$0xff]  }
 0x4bb   : > { %7125 = vmatprep.subr.bf16.mxu1 %v9734_v36  ;;  %v9802_v36 = vld [vmem:[#allocation11 + $0x8a0] ss:$16 sps:$4 sm:$0xff]  }
 0x4bc   : > { %v11537_v39 = vcombine.high %v11532_v34, %v11532_v34 }
 0x4bd   : > { %7085 = vmatpush1.bf16.msra.mxu0 %v9729_v37  ;;  %v9805_v37 = vld [vmem:[#allocation11 + $0xaa0] ss:$16 sps:$4 sm:$0xff]  }
 0x4be   : > { %7126 = vmatpush1.bf16.msra.mxu1 %v9732_v38  ;;  %7086 = vmatprep.subr.bf16.mxu0 %v9737_v40  ;;  %v9810_v38 = vld [vmem:[#allocation11 + $0x884] ss:$16 sps:$4 sm:$0xff]  }
 0x4bf   : > { %7127 = vmatprep.subr.bf16.mxu1 %v9740_v41  ;;  %v9813_v40 = vld [vmem:[#allocation11 + $0xa84] ss:$16 sps:$4 sm:$0xff]   ;;  %v9808_v41 = vld [vmem:[#allocation11 + $0x880] ss:$16 sps:$4 sm:$0xff]  }
 0x4c1   : > { %7087 = vmatpush1.bf16.msra.mxu0 %v9735_v0  ;;  %v9811_v0 = vld [vmem:[#allocation11 + $0xa80] ss:$16 sps:$4 sm:$0xff]  }
 0x4c2   : > { %7128 = vmatpush1.bf16.msra.mxu1 %v9738_v42  ;;  %7088 = vmatprep.subr.bf16.mxu0 %v9743_v12  ;;  %v9816_v42 = vld [vmem:[#allocation11 + $0x864] ss:$16 sps:$4 sm:$0xff]  }
 0x4c3   : > { %7129 = vmatprep.subr.bf16.mxu1 %v9746_v18  ;;  %v9819_v12 = vld [vmem:[#allocation11 + $0xa64] ss:$16 sps:$4 sm:$0xff]   ;;  %v9814_v18 = vld [vmem:[#allocation11 + $0x860] ss:$16 sps:$4 sm:$0xff]  }
 0x4c5   : > { %7089 = vmatpush2.bf16.msra.mxu0 %v9741_v43  ;;  %v9817_v43 = vld [vmem:[#allocation11 + $0xa60] ss:$16 sps:$4 sm:$0xff]  }
 0x4c6   : > { %7130 = vmatpush2.bf16.msra.mxu1 %v9744_v44  ;;  %7090 = vmatprep.subr.bf16.mxu0 %v9749_v46  ;;  %v9822_v44 = vld [vmem:[#allocation11 + $0x844] ss:$16 sps:$4 sm:$0xff]  }
 0x4c7   : > { %7131 = vmatprep.subr.bf16.mxu1 %v9752_v17  ;;  %v9825_v46 = vld [vmem:[#allocation11 + $0xa44] ss:$16 sps:$4 sm:$0xff]   ;;  %v9820_v17 = vld [vmem:[#allocation11 + $0x840] ss:$16 sps:$4 sm:$0xff]  }
 0x4c9   : > { %7091 = vmatpush2.bf16.msra.mxu0 %v9747_v23  ;;  %v9823_v23 = vld [vmem:[#allocation11 + $0xa40] ss:$16 sps:$4 sm:$0xff]  }
 0x4ca   : > { %7132 = vmatpush2.bf16.msra.mxu1 %v9750_v48  ;;  %7092 = vmatprep.subr.bf16.mxu0 %v9755_v50  ;;  %v9828_v48 = vld [vmem:[#allocation11 + $0x824] ss:$16 sps:$4 sm:$0xff]  }
 0x4cb   : > { %7133 = vmatprep.subr.bf16.mxu1 %v9758_v52  ;;  %v9831_v50 = vld [vmem:[#allocation11 + $0xa24] ss:$16 sps:$4 sm:$0xff]   ;;  %v9826_v52 = vld [vmem:[#allocation11 + $0x820] ss:$16 sps:$4 sm:$0xff]  }
 0x4cd   : > { %7093 = vmatpush2.bf16.msra.mxu0 %v9753_v45  ;;  %v9829_v45 = vld [vmem:[#allocation11 + $0xa20] ss:$16 sps:$4 sm:$0xff]  }
 0x4ce   : > { %7134 = vmatpush2.bf16.msra.mxu1 %v9756_v54  ;;  %7094 = vmatprep.subr.bf16.mxu0 %v9761_v55  ;;  %v9834_v54 = vld [vmem:[#allocation11 + $0x804] ss:$16 sps:$4 sm:$0xff]  }
 0x4cf   : > { %7135 = vmatprep.subr.bf16.mxu1 %v9764_v56  ;;  %v9837_v55 = vld [vmem:[#allocation11 + $0xa04] ss:$16 sps:$4 sm:$0xff]   ;;  %v9832_v56 = vld [vmem:[#allocation11 + $0x800] ss:$16 sps:$4 sm:$0xff]  }
 0x4d1   : > { %7095 = vmatpush2.bf16.msra.mxu0 %v9759_v57  ;;  %v9835_v57 = vld [vmem:[#allocation11 + $0xa00] ss:$16 sps:$4 sm:$0xff]  }
 0x4d2   : > { %7136 = vmatpush2.bf16.msra.mxu1 %v9762_v58  ;;  %7096 = vmatprep.subr.bf16.mxu0 %v9767_v47  ;;  %v9840_v58 = vld [vmem:[#allocation11 + $0x9e4] ss:$16 sps:$4 sm:$0xff]  }
 0x4d3   : > { %7137 = vmatprep.subr.bf16.mxu1 %v9770_v59  ;;  %v9843_v47 = vld [vmem:[#allocation11 + $0xbe4] ss:$16 sps:$4 sm:$0xff]   ;;  %v9838_v59 = vld [vmem:[#allocation11 + $0x9e0] ss:$16 sps:$4 sm:$0xff]  }
 0x4d5   : > { %7097 = vmatpush2.bf16.msra.mxu0 %v9765_v29  ;;  %v9841_v29 = vld [vmem:[#allocation11 + $0xbe0] ss:$16 sps:$4 sm:$0xff]  }
 0x4d6   : > { %7138 = vmatpush2.bf16.msra.mxu1 %v9768_v51  ;;  %7098 = vmatprep.subr.bf16.mxu0 %v9773_v62  ;;  %v9846_v51 = vld [vmem:[#allocation11 + $0x9c4] ss:$16 sps:$4 sm:$0xff]  }
 0x4d7   : > { %7139 = vmatprep.subr.bf16.mxu1 %v9776_v63  ;;  %v9849_v62 = vld [vmem:[#allocation11 + $0xbc4] ss:$16 sps:$4 sm:$0xff]   ;;  %v9844_v63 = vld [vmem:[#allocation11 + $0x9c0] ss:$16 sps:$4 sm:$0xff]  }
 0x4d9   : > { %7099 = vmatpush2.bf16.msra.mxu0 %v9771_v2  ;;  %v9847_v2 = vld [vmem:[#allocation11 + $0xbc0] ss:$16 sps:$4 sm:$0xff]  }
 0x4da   : > { %7140 = vmatpush2.bf16.msra.mxu1 %v9774_v3  ;;  %7100 = vmatprep.subr.bf16.mxu0 %v9779_v4  ;;  %v9852_v3 = vld [vmem:[#allocation11 + $0x9a4] ss:$16 sps:$4 sm:$0xff]  }
 0x4db   : > { %7141 = vmatprep.subr.bf16.mxu1 %v9782_v7  ;;  %v9855_v4 = vld [vmem:[#allocation11 + $0xba4] ss:$16 sps:$4 sm:$0xff]   ;;  %v9850_v7 = vld [vmem:[#allocation11 + $0x9a0] ss:$16 sps:$4 sm:$0xff]  }
 0x4dd   : > { %7101 = vmatpush2.bf16.msra.mxu0 %v9777_v8  ;;  %v9853_v8 = vld [vmem:[#allocation11 + $0xba0] ss:$16 sps:$4 sm:$0xff]  }
 0x4de   : > { %7142 = vmatpush2.bf16.msra.mxu1 %v9780_v10  ;;  %7102 = vmatprep.subr.bf16.mxu0 %v9785_v11  ;;  %v9858_v10 = vld [vmem:[#allocation11 + $0x984] ss:$16 sps:$4 sm:$0xff]  }
 0x4df   : > { %7143 = vmatprep.subr.bf16.mxu1 %v9788_v15  ;;  %v9861_v11 = vld [vmem:[#allocation11 + $0xb84] ss:$16 sps:$4 sm:$0xff]   ;;  %v9856_v15 = vld [vmem:[#allocation11 + $0x980] ss:$16 sps:$4 sm:$0xff]  }
 0x4e1   : > { %7103 = vmatpush2.bf16.msra.mxu0 %v9783_v16  ;;  %v9859_v16 = vld [vmem:[#allocation11 + $0xb80] ss:$16 sps:$4 sm:$0xff]  }
 0x4e2   : > { %7144 = vmatpush2.bf16.msra.mxu1 %v9786_v20  ;;  %7154 = vmatprep.subr.bf16.mxu0 %v9792_v21  ;;  %v9864_v20 = vld [vmem:[#allocation11 + $0x964] ss:$16 sps:$4 sm:$0xff]  }
 0x4e3   : > { %7195 = vmatprep.subr.bf16.mxu1 %v9795_v22  ;;  %v9867_v21 = vld [vmem:[#allocation11 + $0xb64] ss:$16 sps:$4 sm:$0xff]   ;;  %v9862_v22 = vld [vmem:[#allocation11 + $0x960] ss:$16 sps:$4 sm:$0xff]  }
 0x4e4   : > { %7105 = vmatmul.mubr.bf16.vlgmr.msra.gmra.mxu0 %v11515_v19 }
 0x4e5   : > { %7146 = vmatmul.mubr.bf16.vlgmr.msra.gmra.mxu1 %v11519_v24  ;;  %7155 = vmatpush1.bf16.msra.mxu0 %v9790_v25  ;;  %v9865_v25 = vld [vmem:[#allocation11 + $0xb60] ss:$16 sps:$4 sm:$0xff]  }
 0x4e6   : > { %7196 = vmatpush1.bf16.msra.mxu1 %v9793_v26  ;;  %7156 = vmatprep.subr.bf16.mxu0 %v9798_v61  ;;  %v9870_v26 = vld [vmem:[#allocation11 + $0x944] ss:$16 sps:$4 sm:$0xff]  }
 0x4e7   : > { %7197 = vmatprep.subr.bf16.mxu1 %v9801_v28  ;;  %7186 = vmatprep.mubr.bf16.mxu0 %v11532_v34  ;;  %v9873_v61 = vld [vmem:[#allocation11 + $0xb44] ss:$16 sps:$4 sm:$0xff]   ;;  %v4365_v28 = vcombine.high %v11521_v27, %v11521_v27 }
 0x4e8   : > { %7227 = vmatprep.mubr.bf16.mxu1 %v11537_v39 }
 0x4e9   : > { %7157 = vmatpush1.bf16.msra.mxu0 %v9796_v31  ;;  %v9871_v31 = vld [vmem:[#allocation11 + $0xb40] ss:$16 sps:$4 sm:$0xff]  }
 0x4ea   : > { %7198 = vmatpush1.bf16.msra.mxu1 %v9799_v13  ;;  %7158 = vmatprep.subr.bf16.mxu0 %v9804_v32  ;;  %v9876_v13 = vld [vmem:[#allocation11 + $0x924] ss:$16 sps:$4 sm:$0xff]  }
 0x4eb   : > { %7199 = vmatprep.subr.bf16.mxu1 %v9807_v33  ;;  %v9879_v32 = vld [vmem:[#allocation11 + $0xb24] ss:$16 sps:$4 sm:$0xff]   ;;  %v11543_v33 = vrot.slane %v4365_v28, %v11478_v60  ;;  %v9937_v28 = vld [vmem:[#allocation11 + $0xfe0] ss:$16 sps:$4 sm:$0xff]  }
 0x4ed   : > { %7159 = vmatpush1.bf16.msra.mxu0 %v9802_v36  ;;  %v9874_v36 = vld [vmem:[#allocation11 + $0x920] ss:$16 sps:$4 sm:$0xff]   ;;  %v4381_v27 = vcombine.high %v11543_v33, %v11543_v33 }
 0x4ee   : > { %7200 = vmatpush1.bf16.msra.mxu1 %v9805_v37  ;;  %7160 = vmatprep.subr.bf16.mxu0 %v9810_v38  ;;  %v9877_v37 = vld [vmem:[#allocation11 + $0xb20] ss:$16 sps:$4 sm:$0xff]   ;;  %v9882_v38 = vld [vmem:[#allocation11 + $0x904] ss:$16 sps:$4 sm:$0xff]  }
 0x4ef   : > { %7201 = vmatprep.subr.bf16.mxu1 %v9813_v40  ;;  %v9885_v40 = vld [vmem:[#allocation11 + $0xb04] ss:$16 sps:$4 sm:$0xff]  }
 0x4f1   : > { %7161 = vmatpush1.bf16.msra.mxu0 %v9808_v41  ;;  %v9880_v41 = vld [vmem:[#allocation11 + $0x900] ss:$16 sps:$4 sm:$0xff]  }
 0x4f2   : > { %7202 = vmatpush1.bf16.msra.mxu1 %v9811_v0  ;;  %7162 = vmatprep.subr.bf16.mxu0 %v9816_v42  ;;  %v11549_v0 = vrot.slane %v11525_v30, %v11478_v60  ;;  %v9883_v42 = vld [vmem:[#allocation11 + $0xb00] ss:$16 sps:$4 sm:$0xff]   ;;  %v9894_v30 = vld [vmem:[#allocation11 + $0xcc4] ss:$16 sps:$4 sm:$0xff]  }
 0x4f3   : > { %7203 = vmatprep.subr.bf16.mxu1 %v9819_v12  ;;  %v9888_v12 = vld [vmem:[#allocation11 + $0xce4] ss:$16 sps:$4 sm:$0xff]  }
 0x4f5   : > { %7163 = vmatpush1.bf16.msra.mxu0 %v9814_v18  ;;  %v9891_v18 = vld [vmem:[#allocation11 + $0xee4] ss:$16 sps:$4 sm:$0xff]  }
 0x4f6   : > { %7204 = vmatpush1.bf16.msra.mxu1 %v9817_v43  ;;  %7164 = vmatprep.subr.bf16.mxu0 %v9822_v44  ;;  %v11552_v43 = vrot.slane %v4381_v27, %v11478_v60  ;;  %v11556_v44 = vcombine.high %v11549_v0, %v11549_v0  ;;  %v9954_v27 = vld [vmem:[#allocation11 + $0xd84] ss:$16 sps:$4 sm:$0xff]  }
 0x4f7   : > { %7205 = vmatprep.subr.bf16.mxu1 %v9825_v46  ;;  %v9886_v46 = vld [vmem:[#allocation11 + $0xce0] ss:$16 sps:$4 sm:$0xff]  }
 0x4f9   : > { %7165 = vmatpush1.bf16.msra.mxu0 %v9820_v17  ;;  %v9889_v17 = vld [vmem:[#allocation11 + $0xee0] ss:$16 sps:$4 sm:$0xff]  }
 0x4fa   : > { %7206 = vmatpush1.bf16.msra.mxu1 %v9823_v23  ;;  %7166 = vmatprep.subr.bf16.mxu0 %v9828_v48  ;;  %v9897_v23 = vld [vmem:[#allocation11 + $0xec4] ss:$16 sps:$4 sm:$0xff]   ;;  %v11560_v48 = vcombine.high %v11552_v43, %v11552_v43 }
 0x4fb   : > { %7207 = vmatprep.subr.bf16.mxu1 %v9831_v50  ;;  %v9892_v50 = vld [vmem:[#allocation11 + $0xcc0] ss:$16 sps:$4 sm:$0xff]  }
 0x4fd   : > { %7167 = vmatpush1.bf16.msra.mxu0 %v9826_v52  ;;  %v9895_v52 = vld [vmem:[#allocation11 + $0xec0] ss:$16 sps:$4 sm:$0xff]  }
 0x4fe   : > { %7208 = vmatpush1.bf16.msra.mxu1 %v9829_v45  ;;  %7168 = vmatprep.subr.bf16.mxu0 %v9834_v54  ;;  %v9900_v45 = vld [vmem:[#allocation11 + $0xca4] ss:$16 sps:$4 sm:$0xff]  }
 0x4ff   : > { %7209 = vmatprep.subr.bf16.mxu1 %v9837_v55  ;;  %v9903_v54 = vld [vmem:[#allocation11 + $0xea4] ss:$16 sps:$4 sm:$0xff]   ;;  %v9898_v55 = vld [vmem:[#allocation11 + $0xca0] ss:$16 sps:$4 sm:$0xff]  }
 0x501   : > { %7169 = vmatpush1.bf16.msra.mxu0 %v9832_v56  ;;  %v9901_v56 = vld [vmem:[#allocation11 + $0xea0] ss:$16 sps:$4 sm:$0xff]  }
 0x502   : > { %7210 = vmatpush1.bf16.msra.mxu1 %v9835_v57  ;;  %7170 = vmatprep.subr.bf16.mxu0 %v9840_v58  ;;  %v9906_v57 = vld [vmem:[#allocation11 + $0xc84] ss:$16 sps:$4 sm:$0xff]  }
 0x503   : > { %7211 = vmatprep.subr.bf16.mxu1 %v9843_v47  ;;  %v9909_v58 = vld [vmem:[#allocation11 + $0xe84] ss:$16 sps:$4 sm:$0xff]   ;;  %v9904_v47 = vld [vmem:[#allocation11 + $0xc80] ss:$16 sps:$4 sm:$0xff]  }
 0x505   : > { %7171 = vmatpush2.bf16.msra.mxu0 %v9838_v59  ;;  %v9907_v59 = vld [vmem:[#allocation11 + $0xe80] ss:$16 sps:$4 sm:$0xff]  }
 0x506   : > { %7212 = vmatpush2.bf16.msra.mxu1 %v9841_v29  ;;  %7172 = vmatprep.subr.bf16.mxu0 %v9846_v51  ;;  %v9912_v29 = vld [vmem:[#allocation11 + $0xc64] ss:$16 sps:$4 sm:$0xff]  }
 0x507   : > { %7213 = vmatprep.subr.bf16.mxu1 %v9849_v62  ;;  %v9915_v51 = vld [vmem:[#allocation11 + $0xe64] ss:$16 sps:$4 sm:$0xff]   ;;  %v9910_v62 = vld [vmem:[#allocation11 + $0xc60] ss:$16 sps:$4 sm:$0xff]  }
 0x509   : > { %7173 = vmatpush2.bf16.msra.mxu0 %v9844_v63  ;;  %v9913_v63 = vld [vmem:[#allocation11 + $0xe60] ss:$16 sps:$4 sm:$0xff]  }
 0x50a   : > { %7214 = vmatpush2.bf16.msra.mxu1 %v9847_v2  ;;  %7174 = vmatprep.subr.bf16.mxu0 %v9852_v3  ;;  %v9918_v2 = vld [vmem:[#allocation11 + $0xc44] ss:$16 sps:$4 sm:$0xff]  }
 0x50b   : > { %7215 = vmatprep.subr.bf16.mxu1 %v9855_v4  ;;  %v9921_v3 = vld [vmem:[#allocation11 + $0xe44] ss:$16 sps:$4 sm:$0xff]   ;;  %v9916_v4 = vld [vmem:[#allocation11 + $0xc40] ss:$16 sps:$4 sm:$0xff]  }
 0x50d   : > { %7175 = vmatpush2.bf16.msra.mxu0 %v9850_v7  ;;  %v9919_v7 = vld [vmem:[#allocation11 + $0xe40] ss:$16 sps:$4 sm:$0xff]  }
 0x50e   : > { %7216 = vmatpush2.bf16.msra.mxu1 %v9853_v8  ;;  %7176 = vmatprep.subr.bf16.mxu0 %v9858_v10  ;;  %v9924_v8 = vld [vmem:[#allocation11 + $0xc24] ss:$16 sps:$4 sm:$0xff]  }
 0x50f   : > { %7217 = vmatprep.subr.bf16.mxu1 %v9861_v11  ;;  %v9927_v10 = vld [vmem:[#allocation11 + $0xe24] ss:$16 sps:$4 sm:$0xff]   ;;  %v9922_v11 = vld [vmem:[#allocation11 + $0xc20] ss:$16 sps:$4 sm:$0xff]  }
 0x511   : > { %7177 = vmatpush2.bf16.msra.mxu0 %v9856_v15  ;;  %v9925_v15 = vld [vmem:[#allocation11 + $0xe20] ss:$16 sps:$4 sm:$0xff]  }
 0x512   : > { %7218 = vmatpush2.bf16.msra.mxu1 %v9859_v16  ;;  %7178 = vmatprep.subr.bf16.mxu0 %v9864_v20  ;;  %v9930_v16 = vld [vmem:[#allocation11 + $0xc04] ss:$16 sps:$4 sm:$0xff]  }
 0x513   : > { %7219 = vmatprep.subr.bf16.mxu1 %v9867_v21  ;;  %v9933_v20 = vld [vmem:[#allocation11 + $0xe04] ss:$16 sps:$4 sm:$0xff]   ;;  %v9928_v21 = vld [vmem:[#allocation11 + $0xc00] ss:$16 sps:$4 sm:$0xff]  }
 0x515   : > { %7179 = vmatpush2.bf16.msra.mxu0 %v9862_v22  ;;  %v9931_v22 = vld [vmem:[#allocation11 + $0xe00] ss:$16 sps:$4 sm:$0xff]  }
 0x516   : > { %7220 = vmatpush2.bf16.msra.mxu1 %v9865_v25  ;;  %7180 = vmatprep.subr.bf16.mxu0 %v9870_v26  ;;  %v9936_v25 = vld [vmem:[#allocation11 + $0xde4] ss:$16 sps:$4 sm:$0xff]  }
 0x517   : > { %7221 = vmatprep.subr.bf16.mxu1 %v9873_v61  ;;  %v9939_v26 = vld [vmem:[#allocation11 + $0xfe4] ss:$16 sps:$4 sm:$0xff]   ;;  %v9934_v61 = vld [vmem:[#allocation11 + $0xde0] ss:$16 sps:$4 sm:$0xff]  }
 0x519   : > { %7181 = vmatpush2.bf16.msra.mxu0 %v9868_v9  ;;  %v9942_v9 = vld [vmem:[#allocation11 + $0xdc4] ss:$16 sps:$4 sm:$0xff]  }
 0x51a   : > { %7222 = vmatpush2.bf16.msra.mxu1 %v9871_v31  ;;  %7182 = vmatprep.subr.bf16.mxu0 %v9876_v13  ;;  %v9945_v31 = vld [vmem:[#allocation11 + $0xfc4] ss:$16 sps:$4 sm:$0xff]   ;;  %v9940_v13 = vld [vmem:[#allocation11 + $0xdc0] ss:$16 sps:$4 sm:$0xff]  }
 0x51b   : > { %7223 = vmatprep.subr.bf16.mxu1 %v9879_v32  ;;  %v9943_v32 = vld [vmem:[#allocation11 + $0xfc0] ss:$16 sps:$4 sm:$0xff]  }
 0x51d   : > { %7183 = vmatpush2.bf16.msra.mxu0 %v9874_v36  ;;  %v9948_v36 = vld [vmem:[#allocation11 + $0xda4] ss:$16 sps:$4 sm:$0xff]  }
 0x51e   : > { %7224 = vmatpush2.bf16.msra.mxu1 %v9877_v37  ;;  %7184 = vmatprep.subr.bf16.mxu0 %v9882_v38  ;;  %v9951_v37 = vld [vmem:[#allocation11 + $0xfa4] ss:$16 sps:$4 sm:$0xff]   ;;  %v9946_v38 = vld [vmem:[#allocation11 + $0xda0] ss:$16 sps:$4 sm:$0xff]  }
 0x51f   : > { %7225 = vmatprep.subr.bf16.mxu1 %v9885_v40  ;;  %v9949_v40 = vld [vmem:[#allocation11 + $0xfa0] ss:$16 sps:$4 sm:$0xff]  }
 0x521   : > { %7185 = vmatpush2.bf16.msra.mxu0 %v9880_v41  ;;  %v9957_v41 = vld [vmem:[#allocation11 + $0xf84] ss:$16 sps:$4 sm:$0xff]  }
 0x522   : > { %7226 = vmatpush2.bf16.msra.mxu1 %v9883_v42  ;;  %7236 = vmatprep.subr.bf16.mxu0 %v9888_v12  ;;  %v9952_v42 = vld [vmem:[#allocation11 + $0xd80] ss:$16 sps:$4 sm:$0xff]  }
 0x523   : > { %7277 = vmatprep.subr.bf16.mxu1 %v9891_v18  ;;  %v9955_v12 = vld [vmem:[#allocation11 + $0xf80] ss:$16 sps:$4 sm:$0xff]   ;;  %v9960_v18 = vld [vmem:[#allocation11 + $0xd64] ss:$16 sps:$4 sm:$0xff]  }
 0x524   : > { %7187 = vmatmul.mubr.bf16.vlgmr.msra.gmra.mxu0 %v11549_v0 }
 0x525   : > { %7228 = vmatmul.mubr.bf16.vlgmr.msra.gmra.mxu1 %v11556_v44  ;;  %7237 = vmatpush1.bf16.msra.mxu0 %v9886_v46  ;;  %v9963_v46 = vld [vmem:[#allocation11 + $0xf64] ss:$16 sps:$4 sm:$0xff]  }
 0x526   : > { %7278 = vmatpush1.bf16.msra.mxu1 %v9889_v17  ;;  %7238 = vmatprep.subr.bf16.mxu0 %v9894_v30  ;;  %v9958_v17 = vld [vmem:[#allocation11 + $0xd60] ss:$16 sps:$4 sm:$0xff]  }
 0x527   : > { %7279 = vmatprep.subr.bf16.mxu1 %v9897_v23  ;;  %7268 = vmatprep.mubr.bf16.mxu0 %v11552_v43  ;;  %v9961_v30 = vld [vmem:[#allocation11 + $0xf60] ss:$16 sps:$4 sm:$0xff]   ;;  %v9966_v23 = vld [vmem:[#allocation11 + $0xd44] ss:$16 sps:$4 sm:$0xff]  }
 0x528   : > { %7309 = vmatprep.mubr.bf16.mxu1 %v11560_v48 }
 0x529   : > { %7239 = vmatpush1.bf16.msra.mxu0 %v9892_v50  ;;  %v9969_v50 = vld [vmem:[#allocation11 + $0xf44] ss:$16 sps:$4 sm:$0xff]  }
 0x52a   : > { %7280 = vmatpush1.bf16.msra.mxu1 %v9895_v52  ;;  %7240 = vmatprep.subr.bf16.mxu0 %v9900_v45  ;;  %v9964_v52 = vld [vmem:[#allocation11 + $0xd40] ss:$16 sps:$4 sm:$0xff]  }
 0x52b   : > { %7281 = vmatprep.subr.bf16.mxu1 %v9903_v54  ;;  %v9967_v45 = vld [vmem:[#allocation11 + $0xf40] ss:$16 sps:$4 sm:$0xff]   ;;  %v9972_v54 = vld [vmem:[#allocation11 + $0xd24] ss:$16 sps:$4 sm:$0xff]  }
 0x52d   : > { %7241 = vmatpush1.bf16.msra.mxu0 %v9898_v55  ;;  %v9975_v55 = vld [vmem:[#allocation11 + $0xf24] ss:$16 sps:$4 sm:$0xff]  }
 0x52e   : > { %7282 = vmatpush1.bf16.msra.mxu1 %v9901_v56  ;;  %7242 = vmatprep.subr.bf16.mxu0 %v9906_v57  ;;  %v9970_v56 = vld [vmem:[#allocation11 + $0xd20] ss:$16 sps:$4 sm:$0xff]  }
 0x52f   : > { %7283 = vmatprep.subr.bf16.mxu1 %v9909_v58  ;;  %v9973_v57 = vld [vmem:[#allocation11 + $0xf20] ss:$16 sps:$4 sm:$0xff]   ;;  %v9978_v58 = vld [vmem:[#allocation11 + $0xd04] ss:$16 sps:$4 sm:$0xff]  }
 0x531   : > { %7243 = vmatpush1.bf16.msra.mxu0 %v9904_v47  ;;  %v9981_v47 = vld [vmem:[#allocation11 + $0xf04] ss:$16 sps:$4 sm:$0xff]  }
 0x532   : > { %7284 = vmatpush1.bf16.msra.mxu1 %v9907_v59  ;;  %7244 = vmatprep.subr.bf16.mxu0 %v9912_v29  ;;  %v9976_v59 = vld [vmem:[#allocation11 + $0xd00] ss:$16 sps:$4 sm:$0xff]  }
 0x533   : > { %7285 = vmatprep.subr.bf16.mxu1 %v9915_v51  ;;  %v9979_v29 = vld [vmem:[#allocation11 + $0xf00] ss:$16 sps:$4 sm:$0xff]   ;;  %v11568_v51 = vrot.slane %v11543_v33, %v11478_v60  ;;  %v9986_v33 = vld [vmem:[#allocation11 + $0x2e8] ss:$16 sps:$4 sm:$0xff]  }
 0x535   : > { %7245 = vmatpush1.bf16.msra.mxu0 %v9910_v62  ;;  %v4292_v62 = vld [vmem:[#allocation12] sm:$0xf] }
 0x536   : > { %7286 = vmatpush1.bf16.msra.mxu1 %v9913_v63  ;;  %7246 = vmatprep.subr.bf16.mxu0 %v9918_v2  ;;  %v4296_v63 = vsub.s32 0, %v11475_v35  ;;  %v9985_v2 = vld [vmem:[#allocation11 + $0xec] ss:$16 sps:$4 sm:$0xff]  }
 0x537   : > { %7287 = vmatprep.subr.bf16.mxu1 %v9921_v3  ;;  %v9988_v3 = vld [vmem:[#allocation11 + $0x2ec] ss:$16 sps:$4 sm:$0xff]  }
 0x538   : > { %v4297_v60 = vrot.slane %v4292_v62, %v4296_v63  ;;  %v10036_v63 = vld [vmem:[#allocation11 + $0x3ec] ss:$16 sps:$4 sm:$0xff]  }
 0x539   : > { %7247 = vmatpush1.bf16.msra.mxu0 %v9916_v4  ;;  %v4300_v4 = vsub.s32 1, %v11475_v35 }
 0x53a   : > { %7288 = vmatpush1.bf16.msra.mxu1 %v9919_v7  ;;  %7248 = vmatprep.subr.bf16.mxu0 %v9924_v8  ;;  %v11574_v7 = vcombine.high %v11568_v51, %v11568_v51  ;;  %v9983_v8 = vld [vmem:[#allocation11 + $0xe8] ss:$16 sps:$4 sm:$0xff]  }
 0x53b   : > { %7289 = vmatprep.subr.bf16.mxu1 %v9927_v10  ;;  %v9991_v10 = vld [vmem:[#allocation11 + $0xcc] ss:$16 sps:$4 sm:$0xff]  }
 0x53d   : > { %7249 = vmatpush1.bf16.msra.mxu0 %v9922_v11  ;;  %v9994_v11 = vld [vmem:[#allocation11 + $0x2cc] ss:$16 sps:$4 sm:$0xff]  }
 0x53e   : > { %7290 = vmatpush1.bf16.msra.mxu1 %v9925_v15  ;;  %7250 = vmatprep.subr.bf16.mxu0 %v9930_v16  ;;  %v4301_v15 = vrot.slane %v4292_v62, %v4300_v4  ;;  %v10033_v62 = vld [vmem:[#allocation11 + $0x1ec] ss:$16 sps:$4 sm:$0xff]  }
 0x53f   : > { %7291 = vmatprep.subr.bf16.mxu1 %v9933_v20  ;;  %v10039_v4 = vld [vmem:[#allocation11 + $0x1cc] ss:$16 sps:$4 sm:$0xff]  }
 0x541   : > { %7251 = vmatpush1.bf16.msra.mxu0 %v9928_v21  ;;  %v9989_v21 = vld [vmem:[#allocation11 + $0xc8] ss:$16 sps:$4 sm:$0xff]  }
 0x542   : > { %7292 = vmatpush1.bf16.msra.mxu1 %v9931_v22  ;;  %7252 = vmatprep.subr.bf16.mxu0 %v9936_v25  ;;  %v9992_v22 = vld [vmem:[#allocation11 + $0x2c8] ss:$16 sps:$4 sm:$0xff]  }
 0x543   : > { %7293 = vmatprep.subr.bf16.mxu1 %v9939_v26 }
 0x545   : > { %7253 = vmatpush2.bf16.msra.mxu0 %v9934_v61 }
 0x546   : > { %7294 = vmatpush2.bf16.msra.mxu1 %v9937_v28  ;;  %7254 = vmatprep.subr.bf16.mxu0 %v9942_v9  ;;  %v9997_v28 = vld [vmem:[#allocation11 + $0xac] ss:$16 sps:$4 sm:$0xff]  }
 0x547   : > { %7295 = vmatprep.subr.bf16.mxu1 %v9945_v31  ;;  %v10000_v9 = vld [vmem:[#allocation11 + $0x2ac] ss:$16 sps:$4 sm:$0xff]  }
 0x549   : > { %7255 = vmatpush2.bf16.msra.mxu0 %v9940_v13 }
 0x54a   : > { %7296 = vmatpush2.bf16.msra.mxu1 %v9943_v32  ;;  %7256 = vmatprep.subr.bf16.mxu0 %v9948_v36  ;;  %v9995_v32 = vld [vmem:[#allocation11 + $0xa8] ss:$16 sps:$4 sm:$0xff]  }
 0x54b   : > { %7297 = vmatprep.subr.bf16.mxu1 %v9951_v37  ;;  %v9998_v36 = vld [vmem:[#allocation11 + $0x2a8] ss:$16 sps:$4 sm:$0xff]  }
 0x54d   : > { %7257 = vmatpush2.bf16.msra.mxu0 %v9946_v38 }
 0x54e   : > { %7298 = vmatpush2.bf16.msra.mxu1 %v9949_v40  ;;  %7258 = vmatprep.subr.bf16.mxu0 %v9954_v27 }
 0x54f   : > { %7299 = vmatprep.subr.bf16.mxu1 %v9957_v41 }
 0x551   : > { %7259 = vmatpush2.bf16.msra.mxu0 %v9952_v42  ;;  %v10003_v42 = vld [vmem:[#allocation11 + $0x8c] ss:$16 sps:$4 sm:$0xff]  }
 0x552   : > { %7300 = vmatpush2.bf16.msra.mxu1 %v9955_v12  ;;  %7260 = vmatprep.subr.bf16.mxu0 %v9960_v18  ;;  %v10006_v12 = vld [vmem:[#allocation11 + $0x28c] ss:$16 sps:$4 sm:$0xff]   ;;  %v10001_v18 = vld [vmem:[#allocation11 + $0x88] ss:$16 sps:$4 sm:$0xff]  }
 0x553   : > { %7301 = vmatprep.subr.bf16.mxu1 %v9963_v46  ;;  %v10004_v46 = vld [vmem:[#allocation11 + $0x288] ss:$16 sps:$4 sm:$0xff]  }
 0x555   : > { %7261 = vmatpush2.bf16.msra.mxu0 %v9958_v17  ;;  %v10007_v17 = vld [vmem:[#allocation11 + $0x68] ss:$16 sps:$4 sm:$0xff]  }
 0x556   : > { %7302 = vmatpush2.bf16.msra.mxu1 %v9961_v30  ;;  %7262 = vmatprep.subr.bf16.mxu0 %v9966_v23  ;;  %v10010_v30 = vld [vmem:[#allocation11 + $0x268] ss:$16 sps:$4 sm:$0xff]   ;;  %v10015_v23 = vld [vmem:[#allocation11 + $0x4c] ss:$16 sps:$4 sm:$0xff]  }
 0x557   : > { %7303 = vmatprep.subr.bf16.mxu1 %v9969_v50  ;;  %v10018_v50 = vld [vmem:[#allocation11 + $0x24c] ss:$16 sps:$4 sm:$0xff]  }
 0x559   : > { %7263 = vmatpush2.bf16.msra.mxu0 %v9964_v52  ;;  %v10013_v52 = vld [vmem:[#allocation11 + $0x48] ss:$16 sps:$4 sm:$0xff]  }
 0x55a   : > { %7304 = vmatpush2.bf16.msra.mxu1 %v9967_v45  ;;  %7264 = vmatprep.subr.bf16.mxu0 %v9972_v54  ;;  %v10016_v45 = vld [vmem:[#allocation11 + $0x248] ss:$16 sps:$4 sm:$0xff]   ;;  %v10021_v54 = vld [vmem:[#allocation11 + $0x2c] ss:$16 sps:$4 sm:$0xff]  }
 0x55b   : > { %7305 = vmatprep.subr.bf16.mxu1 %v9975_v55  ;;  %v10024_v55 = vld [vmem:[#allocation11 + $0x22c] ss:$16 sps:$4 sm:$0xff]  }
 0x55d   : > { %7265 = vmatpush2.bf16.msra.mxu0 %v9970_v56  ;;  %v10019_v56 = vld [vmem:[#allocation11 + $0x28] ss:$16 sps:$4 sm:$0xff]  }
 0x55e   : > { %7306 = vmatpush2.bf16.msra.mxu1 %v9973_v57  ;;  %7266 = vmatprep.subr.bf16.mxu0 %v9978_v58  ;;  %v10022_v57 = vld [vmem:[#allocation11 + $0x228] ss:$16 sps:$4 sm:$0xff]   ;;  %v10027_v58 = vld [vmem:[#allocation11 + $0xc] ss:$16 sps:$4 sm:$0xff]  }
 0x55f   : > { %7307 = vmatprep.subr.bf16.mxu1 %v9981_v47  ;;  %v10030_v47 = vld [vmem:[#allocation11 + $0x20c] ss:$16 sps:$4 sm:$0xff]  }
 0x561   : > { %7267 = vmatpush2.bf16.msra.mxu0 %v9976_v59  ;;  %v10025_v59 = vld [vmem:[#allocation11 + $0x8] ss:$16 sps:$4 sm:$0xff]  }
 0x562   : > { %7308 = vmatpush2.bf16.msra.mxu1 %v9979_v29  ;;  %7318 = vmatprep.subr.bf16.mxu0 %v9985_v2  ;;  %v10028_v29 = vld [vmem:[#allocation11 + $0x208] ss:$16 sps:$4 sm:$0xff]  }
 0x563   : > { %7359 = vmatprep.subr.bf16.mxu1 %v9988_v3  ;;  %v10031_v2 = vld [vmem:[#allocation11 + $0x1e8] ss:$16 sps:$4 sm:$0xff]  }
 0x564   : > { %v7024_v16 = vpop.f32.mrf.mxu0  ;;  %7269 = vmatmul.mubr.bf16.vlgmr.msra.gmra.mxu0 %v11568_v51  ;;  %v10034_v3 = vld [vmem:[#allocation11 + $0x3e8] ss:$16 sps:$4 sm:$0xff]  }
 0x565   : > { %v7065_v20 = vpop.f32.mrf.mxu1  ;;  %7310 = vmatmul.mubr.bf16.vlgmr.msra.gmra.mxu1 %v11574_v7  ;;  %v7025_v25 = vadd.f32 %v7024_v16, %v4297_v60  ;;  %7319 = vmatpush1.bf16.msra.mxu0 %v9983_v8  ;;  %v10042_v8 = vld [vmem:[#allocation11 + $0x3cc] ss:$16 sps:$4 sm:$0xff]   ;;  %v10037_v60 = vld [vmem:[#allocation11 + $0x1c8] ss:$16 sps:$4 sm:$0xff]  }
 0x566   : > { %7360 = vmatpush1.bf16.msra.mxu1 %v9986_v33  ;;  %v7026_v26 = vpop.f32.mrf.mxu0  ;;  %7320 = vmatprep.subr.bf16.mxu0 %v9991_v10  ;;  %v10040_v33 = vld [vmem:[#allocation11 + $0x3c8] ss:$16 sps:$4 sm:$0xff]   ;;  %v10045_v10 = vld [vmem:[#allocation11 + $0x1ac] ss:$16 sps:$4 sm:$0xff]  }
 0x567   : > { %v7067_v61 = vpop.f32.mrf.mxu1  ;;  %7361 = vmatprep.subr.bf16.mxu1 %v9994_v11  ;;  %v11578_v31 = vadd.f32 %v7065_v20, %v7025_v25  ;;  %v7027_v13 = vadd.f32 %v7026_v26, %v4301_v15  ;;  %7350 = vmatprep.mubr.bf16.mxu0 %v11482_v49  ;;  %v10009_v49 = vld [vmem:[#allocation11 + $0x6c] ss:$16 sps:$4 sm:$0xff]   ;;  %v10043_v15 = vld [vmem:[#allocation11 + $0x1a8] ss:$16 sps:$4 sm:$0xff]  }
 0x568   : > { %7391 = vmatprep.mubr.bf16.mxu1 %v11486_v53  ;;  %v7028_v37 = vpop.f32.mrf.mxu0  ;;  %v10012_v53 = vld [vmem:[#allocation11 + $0x26c] ss:$16 sps:$4 sm:$0xff]   ;;  %v10046_v16 = vld [vmem:[#allocation11 + $0x3a8] ss:$16 sps:$4 sm:$0xff]  }
 0x569   : > { %v7069_v38 = vpop.f32.mrf.mxu1  ;;  %v11582_v40 = vadd.f32 %v7067_v61, %v7027_v13  ;;  %7321 = vmatpush1.bf16.msra.mxu0 %v9989_v21  ;;  %v10048_v11 = vld [vmem:[#allocation11 + $0x3ac] ss:$16 sps:$4 sm:$0xff]   ;;  %v10052_v25 = vld [vmem:[#allocation11 + $0x388] ss:$16 sps:$4 sm:$0xff]  }
 0x56a   : > { %7362 = vmatpush1.bf16.msra.mxu1 %v9992_v22  ;;  %v7029_v27 = vpop.f32.mrf.mxu0  ;;  %7322 = vmatprep.subr.bf16.mxu0 %v9997_v28  ;;  %v10051_v20 = vld [vmem:[#allocation11 + $0x18c] ss:$16 sps:$4 sm:$0xff]   ;;  %v10049_v22 = vld [vmem:[#allocation11 + $0x188] ss:$16 sps:$4 sm:$0xff]  }
 0x56b   : > { %v7070_v41 = vpop.f32.mrf.mxu1  ;;  %7363 = vmatprep.subr.bf16.mxu1 %v10000_v9  ;;  %v10054_v21 = vld [vmem:[#allocation11 + $0x38c] ss:$16 sps:$4 sm:$0xff]   ;;  %v10055_v28 = vld [vmem:[#allocation11 + $0x168] ss:$16 sps:$4 sm:$0xff]  }
 0x56c   : > { %v10057_v26 = vld [vmem:[#allocation11 + $0x16c] ss:$16 sps:$4 sm:$0xff]   ;;  %v10058_v9 = vld [vmem:[#allocation11 + $0x368] ss:$16 sps:$4 sm:$0xff]  }
 0x56d   : > { %7323 = vmatpush1.bf16.msra.mxu0 %v9995_v32  ;;  %v10060_v61 = vld [vmem:[#allocation11 + $0x36c] ss:$16 sps:$4 sm:$0xff]   ;;  %v10064_v37 = vld [vmem:[#allocation11 + $0x348] ss:$16 sps:$4 sm:$0xff]  }
 0x56e   : > { %7364 = vmatpush1.bf16.msra.mxu1 %v9998_v36  ;;  %7324 = vmatprep.subr.bf16.mxu0 %v10003_v42  ;;  %v10063_v13 = vld [vmem:[#allocation11 + $0x14c] ss:$16 sps:$4 sm:$0xff]   ;;  %v10061_v36 = vld [vmem:[#allocation11 + $0x148] ss:$16 sps:$4 sm:$0xff]  }
 0x56f   : > { %7365 = vmatprep.subr.bf16.mxu1 %v10006_v12  ;;  %v10066_v32 = vld [vmem:[#allocation11 + $0x34c] ss:$16 sps:$4 sm:$0xff]   ;;  %v10067_v41 = vld [vmem:[#allocation11 + $0x128] ss:$16 sps:$4 sm:$0xff]  }
 0x570   : > { %v10069_v38 = vld [vmem:[#allocation11 + $0x12c] ss:$16 sps:$4 sm:$0xff]   ;;  %v10070_v42 = vld [vmem:[#allocation11 + $0x328] ss:$16 sps:$4 sm:$0xff]  }
 0x571   : > { %7325 = vmatpush1.bf16.msra.mxu0 %v10001_v18  ;;  %v10072_v27 = vld [vmem:[#allocation11 + $0x32c] ss:$16 sps:$4 sm:$0xff]  }
 0x572   : > { %7366 = vmatpush1.bf16.msra.mxu1 %v10004_v46  ;;  %7326 = vmatprep.subr.bf16.mxu0 %v10009_v49  ;;  %v10075_v12 = vld [vmem:[#allocation11 + $0x10c] ss:$16 sps:$4 sm:$0xff]   ;;  %v10073_v46 = vld [vmem:[#allocation11 + $0x108] ss:$16 sps:$4 sm:$0xff]  }
 0x573   : > { %7367 = vmatprep.subr.bf16.mxu1 %v10012_v53  ;;  %v10078_v18 = vld [vmem:[#allocation11 + $0x30c] ss:$16 sps:$4 sm:$0xff]   ;;  %v10076_v49 = vld [vmem:[#allocation11 + $0x308] ss:$16 sps:$4 sm:$0xff]  }
 0x574   : > { %v10081_v53 = vld [vmem:[#allocation11 + $0x4ec] ss:$16 sps:$4 sm:$0xff]  }
 0x575   : > { %7327 = vmatpush1.bf16.msra.mxu0 %v10007_v17  ;;  %v10084_v17 = vld [vmem:[#allocation11 + $0x6ec] ss:$16 sps:$4 sm:$0xff]  }
 0x576   : > { %7368 = vmatpush1.bf16.msra.mxu1 %v10010_v30  ;;  %7328 = vmatprep.subr.bf16.mxu0 %v10015_v23  ;;  %v10079_v30 = vld [vmem:[#allocation11 + $0x4e8] ss:$16 sps:$4 sm:$0xff]  }
 0x577   : > { %7369 = vmatprep.subr.bf16.mxu1 %v10018_v50  ;;  %v10082_v23 = vld [vmem:[#allocation11 + $0x6e8] ss:$16 sps:$4 sm:$0xff]   ;;  %v10087_v50 = vld [vmem:[#allocation11 + $0x4cc] ss:$16 sps:$4 sm:$0xff]  }
 0x579   : > { %7329 = vmatpush1.bf16.msra.mxu0 %v10013_v52  ;;  %v10090_v52 = vld [vmem:[#allocation11 + $0x6cc] ss:$16 sps:$4 sm:$0xff]  }
 0x57a   : > { %7370 = vmatpush1.bf16.msra.mxu1 %v10016_v45  ;;  %7330 = vmatprep.subr.bf16.mxu0 %v10021_v54 }
 0x57b   : > { %7371 = vmatprep.subr.bf16.mxu1 %v10024_v55 }
 0x57d   : > { %7331 = vmatpush1.bf16.msra.mxu0 %v10019_v56  ;;  %v10085_v56 = vld [vmem:[#allocation11 + $0x4c8] ss:$16 sps:$4 sm:$0xff]  }
 0x57e   : > { %7372 = vmatpush1.bf16.msra.mxu1 %v10022_v57  ;;  %7332 = vmatprep.subr.bf16.mxu0 %v10027_v58  ;;  %v10088_v57 = vld [vmem:[#allocation11 + $0x6c8] ss:$16 sps:$4 sm:$0xff]  }
 0x57f   : > { %7373 = vmatprep.subr.bf16.mxu1 %v10030_v47 }
 0x581   : > { %7333 = vmatpush1.bf16.msra.mxu0 %v10025_v59  ;;  %v10093_v59 = vld [vmem:[#allocation11 + $0x4ac] ss:$16 sps:$4 sm:$0xff]  }
 0x582   : > { %7374 = vmatpush1.bf16.msra.mxu1 %v10028_v29  ;;  %7334 = vmatprep.subr.bf16.mxu0 %v10033_v62  ;;  %v10096_v29 = vld [vmem:[#allocation11 + $0x6ac] ss:$16 sps:$4 sm:$0xff]  }
 0x583   : > { %7375 = vmatprep.subr.bf16.mxu1 %v10036_v63 }
 0x585   : > { %7335 = vmatpush2.bf16.msra.mxu0 %v10031_v2  ;;  %v10091_v2 = vld [vmem:[#allocation11 + $0x4a8] ss:$16 sps:$4 sm:$0xff]  }
 0x586   : > { %7376 = vmatpush2.bf16.msra.mxu1 %v10034_v3  ;;  %7336 = vmatprep.subr.bf16.mxu0 %v10039_v4  ;;  %v10094_v3 = vld [vmem:[#allocation11 + $0x6a8] ss:$16 sps:$4 sm:$0xff]  }
 0x587   : > { %7377 = vmatprep.subr.bf16.mxu1 %v10042_v8 }
 0x589   : > { %7337 = vmatpush2.bf16.msra.mxu0 %v10037_v60  ;;  %v10099_v60 = vld [vmem:[#allocation11 + $0x48c] ss:$16 sps:$4 sm:$0xff]  }
 0x58a   : > { %7378 = vmatpush2.bf16.msra.mxu1 %v10040_v33  ;;  %7338 = vmatprep.subr.bf16.mxu0 %v10045_v10  ;;  %v10102_v33 = vld [vmem:[#allocation11 + $0x68c] ss:$16 sps:$4 sm:$0xff]  }
 0x58b   : > { %7379 = vmatprep.subr.bf16.mxu1 %v10048_v11  ;;  %v10108_v10 = vld [vmem:[#allocation11 + $0x66c] ss:$16 sps:$4 sm:$0xff]   ;;  %v10103_v11 = vld [vmem:[#allocation11 + $0x468] ss:$16 sps:$4 sm:$0xff]  }
 0x58d   : > { %7339 = vmatpush2.bf16.msra.mxu0 %v10043_v15  ;;  %v10106_v15 = vld [vmem:[#allocation11 + $0x668] ss:$16 sps:$4 sm:$0xff]  }
 0x58e   : > { %7380 = vmatpush2.bf16.msra.mxu1 %v10046_v16  ;;  %7340 = vmatprep.subr.bf16.mxu0 %v10051_v20  ;;  %v10111_v16 = vld [vmem:[#allocation11 + $0x44c] ss:$16 sps:$4 sm:$0xff]  }
 0x58f   : > { %7381 = vmatprep.subr.bf16.mxu1 %v10054_v21  ;;  %v10114_v20 = vld [vmem:[#allocation11 + $0x64c] ss:$16 sps:$4 sm:$0xff]   ;;  %v10109_v21 = vld [vmem:[#allocation11 + $0x448] ss:$16 sps:$4 sm:$0xff]  }
 0x591   : > { %7341 = vmatpush2.bf16.msra.mxu0 %v10049_v22  ;;  %v10112_v22 = vld [vmem:[#allocation11 + $0x648] ss:$16 sps:$4 sm:$0xff]  }
 0x592   : > { %7382 = vmatpush2.bf16.msra.mxu1 %v10052_v25  ;;  %7342 = vmatprep.subr.bf16.mxu0 %v10057_v26  ;;  %v10117_v25 = vld [vmem:[#allocation11 + $0x42c] ss:$16 sps:$4 sm:$0xff]  }
 0x593   : > { %7383 = vmatprep.subr.bf16.mxu1 %v10060_v61  ;;  %v10120_v26 = vld [vmem:[#allocation11 + $0x62c] ss:$16 sps:$4 sm:$0xff]   ;;  %v10115_v61 = vld [vmem:[#allocation11 + $0x428] ss:$16 sps:$4 sm:$0xff]  }
 0x595   : > { %7343 = vmatpush2.bf16.msra.mxu0 %v10055_v28  ;;  %v10118_v28 = vld [vmem:[#allocation11 + $0x628] ss:$16 sps:$4 sm:$0xff]  }
 0x596   : > { %7384 = vmatpush2.bf16.msra.mxu1 %v10058_v9  ;;  %7344 = vmatprep.subr.bf16.mxu0 %v10063_v13  ;;  %v10123_v9 = vld [vmem:[#allocation11 + $0x40c] ss:$16 sps:$4 sm:$0xff]  }
 0x597   : > { %7385 = vmatprep.subr.bf16.mxu1 %v10066_v32  ;;  %v10126_v13 = vld [vmem:[#allocation11 + $0x60c] ss:$16 sps:$4 sm:$0xff]   ;;  %v10121_v32 = vld [vmem:[#allocation11 + $0x408] ss:$16 sps:$4 sm:$0xff]  }
 0x599   : > { %7345 = vmatpush2.bf16.msra.mxu0 %v10061_v36  ;;  %v10124_v36 = vld [vmem:[#allocation11 + $0x608] ss:$16 sps:$4 sm:$0xff]  }
 0x59a   : > { %7386 = vmatpush2.bf16.msra.mxu1 %v10064_v37  ;;  %7346 = vmatprep.subr.bf16.mxu0 %v10069_v38  ;;  %v10129_v37 = vld [vmem:[#allocation11 + $0x5ec] ss:$16 sps:$4 sm:$0xff]  }
 0x59b   : > { %7387 = vmatprep.subr.bf16.mxu1 %v10072_v27  ;;  %v10132_v38 = vld [vmem:[#allocation11 + $0x7ec] ss:$16 sps:$4 sm:$0xff]   ;;  %v10127_v27 = vld [vmem:[#allocation11 + $0x5e8] ss:$16 sps:$4 sm:$0xff]  }
 0x59d   : > { %7347 = vmatpush2.bf16.msra.mxu0 %v10067_v41  ;;  %v10130_v41 = vld [vmem:[#allocation11 + $0x7e8] ss:$16 sps:$4 sm:$0xff]  }
 0x59e   : > { %7388 = vmatpush2.bf16.msra.mxu1 %v10070_v42  ;;  %7348 = vmatprep.subr.bf16.mxu0 %v10075_v12  ;;  %v10135_v42 = vld [vmem:[#allocation11 + $0x5cc] ss:$16 sps:$4 sm:$0xff]  }
 0x59f   : > { %7389 = vmatprep.subr.bf16.mxu1 %v10078_v18  ;;  %v10138_v12 = vld [vmem:[#allocation11 + $0x7cc] ss:$16 sps:$4 sm:$0xff]   ;;  %v10133_v18 = vld [vmem:[#allocation11 + $0x5c8] ss:$16 sps:$4 sm:$0xff]  }
 0x5a1   : > { %7349 = vmatpush2.bf16.msra.mxu0 %v10073_v46  ;;  %v10136_v46 = vld [vmem:[#allocation11 + $0x7c8] ss:$16 sps:$4 sm:$0xff]  }
 0x5a2   : > { %7390 = vmatpush2.bf16.msra.mxu1 %v10076_v49  ;;  %7400 = vmatprep.subr.bf16.mxu0 %v10081_v53  ;;  %v10141_v49 = vld [vmem:[#allocation11 + $0x5ac] ss:$16 sps:$4 sm:$0xff]  }
 0x5a3   : > { %7441 = vmatprep.subr.bf16.mxu1 %v10084_v17  ;;  %v10144_v53 = vld [vmem:[#allocation11 + $0x7ac] ss:$16 sps:$4 sm:$0xff]   ;;  %v10139_v17 = vld [vmem:[#allocation11 + $0x5a8] ss:$16 sps:$4 sm:$0xff]  }
 0x5a4   : > { %v7106_v45 = vpop.f32.mrf.mxu0  ;;  %7351 = vmatmul.mubr.bf16.vlgmr.msra.gmra.mxu0 %v11496_v1 }
 0x5a5   : > { %v7147_v54 = vpop.f32.mrf.mxu1  ;;  %7392 = vmatmul.mubr.bf16.vlgmr.msra.gmra.mxu1 %v11503_v6  ;;  %v7107_v55 = vadd.f32 %v7106_v45, %v11578_v31  ;;  %7401 = vmatpush1.bf16.msra.mxu0 %v10079_v30  ;;  %v10142_v30 = vld [vmem:[#allocation11 + $0x7a8] ss:$16 sps:$4 sm:$0xff]  }
 0x5a6   : > { %7442 = vmatpush1.bf16.msra.mxu1 %v10082_v23  ;;  %v7108_v58 = vpop.f32.mrf.mxu0  ;;  %7402 = vmatprep.subr.bf16.mxu0 %v10087_v50  ;;  %v10147_v23 = vld [vmem:[#allocation11 + $0x58c] ss:$16 sps:$4 sm:$0xff]   ;;  %v10148_v45 = vld [vmem:[#allocation11 + $0x788] ss:$16 sps:$4 sm:$0xff]  }
 0x5a7   : > { %v7149_v47 = vpop.f32.mrf.mxu1  ;;  %7443 = vmatprep.subr.bf16.mxu1 %v10090_v52  ;;  %v11587_v62 = vadd.f32 %v7147_v54, %v7107_v55  ;;  %v7109_v63 = vadd.f32 %v7108_v58, %v11582_v40  ;;  %7432 = vmatprep.mubr.bf16.mxu0 %v11499_v5  ;;  %v10097_v40 = vld [vmem:[#allocation11 + $0x488] ss:$16 sps:$4 sm:$0xff]   ;;  %v10150_v50 = vld [vmem:[#allocation11 + $0x78c] ss:$16 sps:$4 sm:$0xff]  }
 0x5a8   : > { %7473 = vmatprep.mubr.bf16.mxu1 %v11507_v14  ;;  %v7110_v1 = vpop.f32.mrf.mxu0  ;;  %v10100_v5 = vld [vmem:[#allocation11 + $0x688] ss:$16 sps:$4 sm:$0xff]   ;;  %v10105_v14 = vld [vmem:[#allocation11 + $0x46c] ss:$16 sps:$4 sm:$0xff]  }
 0x5a9   : > { %v7151_v6 = vpop.f32.mrf.mxu1  ;;  %v11592_v31 = vadd.f32 %v7149_v47, %v7109_v63  ;;  %7403 = vmatpush1.bf16.msra.mxu0 %v10085_v56  ;;  %v10145_v52 = vld [vmem:[#allocation11 + $0x588] ss:$16 sps:$4 sm:$0xff]   ;;  %v10153_v54 = vld [vmem:[#allocation11 + $0x56c] ss:$16 sps:$4 sm:$0xff]  }
 0x5aa   : > { %7444 = vmatpush1.bf16.msra.mxu1 %v10088_v57  ;;  %v7111_v4 = vpop.f32.mrf.mxu0  ;;  %7404 = vmatprep.subr.bf16.mxu0 %v10093_v59  ;;  %v10156_v55 = vld [vmem:[#allocation11 + $0x76c] ss:$16 sps:$4 sm:$0xff]   ;;  %v10151_v56 = vld [vmem:[#allocation11 + $0x568] ss:$16 sps:$4 sm:$0xff]  }
 0x5ab   : > { %v7152_v8 = vpop.f32.mrf.mxu1  ;;  %7445 = vmatprep.subr.bf16.mxu1 %v10096_v29  ;;  %v10154_v57 = vld [vmem:[#allocation11 + $0x768] ss:$16 sps:$4 sm:$0xff]   ;;  %v10159_v58 = vld [vmem:[#allocation11 + $0x54c] ss:$16 sps:$4 sm:$0xff]  }
 0x5ac   : > { %v10162_v47 = vld [vmem:[#allocation11 + $0x74c] ss:$16 sps:$4 sm:$0xff]   ;;  %v10157_v59 = vld [vmem:[#allocation11 + $0x548] ss:$16 sps:$4 sm:$0xff]  }
 0x5ad   : > { %7405 = vmatpush1.bf16.msra.mxu0 %v10091_v2  ;;  %v10160_v29 = vld [vmem:[#allocation11 + $0x748] ss:$16 sps:$4 sm:$0xff]   ;;  %v10165_v63 = vld [vmem:[#allocation11 + $0x52c] ss:$16 sps:$4 sm:$0xff]  }
 0x5ae   : > { %7446 = vmatpush1.bf16.msra.mxu1 %v10094_v3  ;;  %7406 = vmatprep.subr.bf16.mxu0 %v10099_v60  ;;  %v10168_v1 = vld [vmem:[#allocation11 + $0x72c] ss:$16 sps:$4 sm:$0xff]   ;;  %v10163_v6 = vld [vmem:[#allocation11 + $0x528] ss:$16 sps:$4 sm:$0xff]  }
 0x5af   : > { %7447 = vmatprep.subr.bf16.mxu1 %v10102_v33  ;;  %v10166_v2 = vld [vmem:[#allocation11 + $0x728] ss:$16 sps:$4 sm:$0xff]   ;;  %v10171_v3 = vld [vmem:[#allocation11 + $0x50c] ss:$16 sps:$4 sm:$0xff]  }
 0x5b0   : > { %v10174_v4 = vld [vmem:[#allocation11 + $0x70c] ss:$16 sps:$4 sm:$0xff]   ;;  %v10169_v8 = vld [vmem:[#allocation11 + $0x508] ss:$16 sps:$4 sm:$0xff]  }
 0x5b1   : > { %7407 = vmatpush1.bf16.msra.mxu0 %v10097_v40  ;;  %v10172_v60 = vld [vmem:[#allocation11 + $0x708] ss:$16 sps:$4 sm:$0xff]   ;;  %v10177_v33 = vld [vmem:[#allocation11 + $0x8ec] ss:$16 sps:$4 sm:$0xff]  }
 0x5b2   : > { %7448 = vmatpush1.bf16.msra.mxu1 %v10100_v5  ;;  %7408 = vmatprep.subr.bf16.mxu0 %v10105_v14  ;;  %v10180_v40 = vld [vmem:[#allocation11 + $0xaec] ss:$16 sps:$4 sm:$0xff]   ;;  %v10175_v5 = vld [vmem:[#allocation11 + $0x8e8] ss:$16 sps:$4 sm:$0xff]  }
 0x5b3   : > { %7449 = vmatprep.subr.bf16.mxu1 %v10108_v10  ;;  %v10178_v14 = vld [vmem:[#allocation11 + $0xae8] ss:$16 sps:$4 sm:$0xff]   ;;  %v10183_v10 = vld [vmem:[#allocation11 + $0x8cc] ss:$16 sps:$4 sm:$0xff]  }
 0x5b5   : > { %7409 = vmatpush1.bf16.msra.mxu0 %v10103_v11  ;;  %v10186_v11 = vld [vmem:[#allocation11 + $0xacc] ss:$16 sps:$4 sm:$0xff]  }
 0x5b6   : > { %7450 = vmatpush1.bf16.msra.mxu1 %v10106_v15  ;;  %7410 = vmatprep.subr.bf16.mxu0 %v10111_v16 }
 0x5b7   : > { %7451 = vmatprep.subr.bf16.mxu1 %v10114_v20 }
 0x5b9   : > { %7411 = vmatpush1.bf16.msra.mxu0 %v10109_v21  ;;  %v10181_v21 = vld [vmem:[#allocation11 + $0x8c8] ss:$16 sps:$4 sm:$0xff]  }
 0x5ba   : > { %7452 = vmatpush1.bf16.msra.mxu1 %v10112_v22  ;;  %7412 = vmatprep.subr.bf16.mxu0 %v10117_v25  ;;  %v10184_v22 = vld [vmem:[#allocation11 + $0xac8] ss:$16 sps:$4 sm:$0xff]  }
 0x5bb   : > { %7453 = vmatprep.subr.bf16.mxu1 %v10120_v26 }
 0x5bd   : > { %7413 = vmatpush1.bf16.msra.mxu0 %v10115_v61  ;;  %v10189_v61 = vld [vmem:[#allocation11 + $0x8ac] ss:$16 sps:$4 sm:$0xff]  }
 0x5be   : > { %7454 = vmatpush1.bf16.msra.mxu1 %v10118_v28  ;;  %7414 = vmatprep.subr.bf16.mxu0 %v10123_v9  ;;  %v10192_v28 = vld [vmem:[#allocation11 + $0xaac] ss:$16 sps:$4 sm:$0xff]  }
 0x5bf   : > { %7455 = vmatprep.subr.bf16.mxu1 %v10126_v13 }
 0x5c1   : > { %7415 = vmatpush1.bf16.msra.mxu0 %v10121_v32  ;;  %v10187_v32 = vld [vmem:[#allocation11 + $0x8a8] ss:$16 sps:$4 sm:$0xff]  }
 0x5c2   : > { %7456 = vmatpush1.bf16.msra.mxu1 %v10124_v36  ;;  %7416 = vmatprep.subr.bf16.mxu0 %v10129_v37  ;;  %v10190_v36 = vld [vmem:[#allocation11 + $0xaa8] ss:$16 sps:$4 sm:$0xff]  }
 0x5c3   : > { %7457 = vmatprep.subr.bf16.mxu1 %v10132_v38 }
 0x5c5   : > { %7417 = vmatpush2.bf16.msra.mxu0 %v10127_v27  ;;  %v10195_v27 = vld [vmem:[#allocation11 + $0x88c] ss:$16 sps:$4 sm:$0xff]  }
 0x5c6   : > { %7458 = vmatpush2.bf16.msra.mxu1 %v10130_v41  ;;  %7418 = vmatprep.subr.bf16.mxu0 %v10135_v42  ;;  %v10198_v41 = vld [vmem:[#allocation11 + $0xa8c] ss:$16 sps:$4 sm:$0xff]  }
 0x5c7   : > { %7459 = vmatprep.subr.bf16.mxu1 %v10138_v12  ;;  %v10204_v42 = vld [vmem:[#allocation11 + $0xa6c] ss:$16 sps:$4 sm:$0xff]   ;;  %v10199_v12 = vld [vmem:[#allocation11 + $0x868] ss:$16 sps:$4 sm:$0xff]  }
 0x5c9   : > { %7419 = vmatpush2.bf16.msra.mxu0 %v10133_v18  ;;  %v10202_v18 = vld [vmem:[#allocation11 + $0xa68] ss:$16 sps:$4 sm:$0xff]  }
 0x5ca   : > { %7460 = vmatpush2.bf16.msra.mxu1 %v10136_v46  ;;  %7420 = vmatprep.subr.bf16.mxu0 %v10141_v49  ;;  %v10207_v46 = vld [vmem:[#allocation11 + $0x84c] ss:$16 sps:$4 sm:$0xff]  }
 0x5cb   : > { %7461 = vmatprep.subr.bf16.mxu1 %v10144_v53  ;;  %v10210_v49 = vld [vmem:[#allocation11 + $0xa4c] ss:$16 sps:$4 sm:$0xff]   ;;  %v10205_v53 = vld [vmem:[#allocation11 + $0x848] ss:$16 sps:$4 sm:$0xff]  }
 0x5cd   : > { %7421 = vmatpush2.bf16.msra.mxu0 %v10139_v17  ;;  %v10208_v17 = vld [vmem:[#allocation11 + $0xa48] ss:$16 sps:$4 sm:$0xff]  }
 0x5ce   : > { %7462 = vmatpush2.bf16.msra.mxu1 %v10142_v30  ;;  %7422 = vmatprep.subr.bf16.mxu0 %v10147_v23  ;;  %v10213_v30 = vld [vmem:[#allocation11 + $0x82c] ss:$16 sps:$4 sm:$0xff]  }
 0x5cf   : > { %7463 = vmatprep.subr.bf16.mxu1 %v10150_v50  ;;  %v10216_v23 = vld [vmem:[#allocation11 + $0xa2c] ss:$16 sps:$4 sm:$0xff]   ;;  %v10211_v50 = vld [vmem:[#allocation11 + $0x828] ss:$16 sps:$4 sm:$0xff]  }
 0x5d1   : > { %7423 = vmatpush2.bf16.msra.mxu0 %v10145_v52  ;;  %v10214_v52 = vld [vmem:[#allocation11 + $0xa28] ss:$16 sps:$4 sm:$0xff]  }
 0x5d2   : > { %7464 = vmatpush2.bf16.msra.mxu1 %v10148_v45  ;;  %7424 = vmatprep.subr.bf16.mxu0 %v10153_v54  ;;  %v10219_v45 = vld [vmem:[#allocation11 + $0x80c] ss:$16 sps:$4 sm:$0xff]  }
 0x5d3   : > { %7465 = vmatprep.subr.bf16.mxu1 %v10156_v55  ;;  %v10222_v54 = vld [vmem:[#allocation11 + $0xa0c] ss:$16 sps:$4 sm:$0xff]   ;;  %v10217_v55 = vld [vmem:[#allocation11 + $0x808] ss:$16 sps:$4 sm:$0xff]  }
 0x5d5   : > { %7425 = vmatpush2.bf16.msra.mxu0 %v10151_v56  ;;  %v10220_v56 = vld [vmem:[#allocation11 + $0xa08] ss:$16 sps:$4 sm:$0xff]  }
 0x5d6   : > { %7466 = vmatpush2.bf16.msra.mxu1 %v10154_v57  ;;  %7426 = vmatprep.subr.bf16.mxu0 %v10159_v58  ;;  %v10225_v57 = vld [vmem:[#allocation11 + $0x9ec] ss:$16 sps:$4 sm:$0xff]  }
 0x5d7   : > { %7467 = vmatprep.subr.bf16.mxu1 %v10162_v47  ;;  %v10228_v58 = vld [vmem:[#allocation11 + $0xbec] ss:$16 sps:$4 sm:$0xff]   ;;  %v10223_v47 = vld [vmem:[#allocation11 + $0x9e8] ss:$16 sps:$4 sm:$0xff]  }
 0x5d9   : > { %7427 = vmatpush2.bf16.msra.mxu0 %v10157_v59  ;;  %v10226_v59 = vld [vmem:[#allocation11 + $0xbe8] ss:$16 sps:$4 sm:$0xff]  }
 0x5da   : > { %7468 = vmatpush2.bf16.msra.mxu1 %v10160_v29  ;;  %7428 = vmatprep.subr.bf16.mxu0 %v10165_v63  ;;  %v10231_v29 = vld [vmem:[#allocation11 + $0x9cc] ss:$16 sps:$4 sm:$0xff]  }
 0x5db   : > { %7469 = vmatprep.subr.bf16.mxu1 %v10168_v1  ;;  %v10234_v63 = vld [vmem:[#allocation11 + $0xbcc] ss:$16 sps:$4 sm:$0xff]   ;;  %v10229_v1 = vld [vmem:[#allocation11 + $0x9c8] ss:$16 sps:$4 sm:$0xff]  }
 0x5dd   : > { %7429 = vmatpush2.bf16.msra.mxu0 %v10163_v6  ;;  %v10232_v6 = vld [vmem:[#allocation11 + $0xbc8] ss:$16 sps:$4 sm:$0xff]  }
 0x5de   : > { %7470 = vmatpush2.bf16.msra.mxu1 %v10166_v2  ;;  %7430 = vmatprep.subr.bf16.mxu0 %v10171_v3  ;;  %v10237_v2 = vld [vmem:[#allocation11 + $0x9ac] ss:$16 sps:$4 sm:$0xff]  }
 0x5df   : > { %7471 = vmatprep.subr.bf16.mxu1 %v10174_v4  ;;  %v10240_v3 = vld [vmem:[#allocation11 + $0xbac] ss:$16 sps:$4 sm:$0xff]   ;;  %v10235_v4 = vld [vmem:[#allocation11 + $0x9a8] ss:$16 sps:$4 sm:$0xff]  }
 0x5e1   : > { %7431 = vmatpush2.bf16.msra.mxu0 %v10169_v8  ;;  %v10238_v8 = vld [vmem:[#allocation11 + $0xba8] ss:$16 sps:$4 sm:$0xff]  }
 0x5e2   : > { %7472 = vmatpush2.bf16.msra.mxu1 %v10172_v60  ;;  %7482 = vmatprep.subr.bf16.mxu0 %v10177_v33  ;;  %v10243_v60 = vld [vmem:[#allocation11 + $0x98c] ss:$16 sps:$4 sm:$0xff]  }
 0x5e3   : > { %7523 = vmatprep.subr.bf16.mxu1 %v10180_v40  ;;  %v10246_v33 = vld [vmem:[#allocation11 + $0xb8c] ss:$16 sps:$4 sm:$0xff]   ;;  %v10241_v40 = vld [vmem:[#allocation11 + $0x988] ss:$16 sps:$4 sm:$0xff]  }
 0x5e4   : > { %v7188_v15 = vpop.f32.mrf.mxu0  ;;  %7433 = vmatmul.mubr.bf16.vlgmr.msra.gmra.mxu0 %v11515_v19 }
 0x5e5   : > { %v7229_v16 = vpop.f32.mrf.mxu1  ;;  %7474 = vmatmul.mubr.bf16.vlgmr.msra.gmra.mxu1 %v11519_v24  ;;  %v7189_v20 = vadd.f32 %v7188_v15, %v11587_v62  ;;  %7483 = vmatpush1.bf16.msra.mxu0 %v10175_v5  ;;  %v10244_v5 = vld [vmem:[#allocation11 + $0xb88] ss:$16 sps:$4 sm:$0xff]  }
 0x5e6   : > { %7524 = vmatpush1.bf16.msra.mxu1 %v10178_v14  ;;  %v7190_v25 = vpop.f32.mrf.mxu0  ;;  %7484 = vmatprep.subr.bf16.mxu0 %v10183_v10  ;;  %v10249_v14 = vld [vmem:[#allocation11 + $0x96c] ss:$16 sps:$4 sm:$0xff]   ;;  %v10250_v15 = vld [vmem:[#allocation11 + $0xb68] ss:$16 sps:$4 sm:$0xff]  }
 0x5e7   : > { %v7231_v26 = vpop.f32.mrf.mxu1  ;;  %7525 = vmatprep.subr.bf16.mxu1 %v10186_v11  ;;  %v11597_v9 = vadd.f32 %v7229_v16, %v7189_v20  ;;  %v7191_v13 = vadd.f32 %v7190_v25, %v11592_v31  ;;  %7514 = vmatprep.mubr.bf16.mxu0 %v11532_v34  ;;  %v10193_v31 = vld [vmem:[#allocation11 + $0x888] ss:$16 sps:$4 sm:$0xff]   ;;  %v10252_v10 = vld [vmem:[#allocation11 + $0xb6c] ss:$16 sps:$4 sm:$0xff]  }
 0x5e8   : > { %7555 = vmatprep.mubr.bf16.mxu1 %v11537_v39  ;;  %v7192_v19 = vpop.f32.mrf.mxu0  ;;  %v10196_v34 = vld [vmem:[#allocation11 + $0xa88] ss:$16 sps:$4 sm:$0xff]   ;;  %v10201_v39 = vld [vmem:[#allocation11 + $0x86c] ss:$16 sps:$4 sm:$0xff]  }
 0x5e9   : > { %v7233_v24 = vpop.f32.mrf.mxu1  ;;  %v11602_v62 = vadd.f32 %v7231_v26, %v7191_v13  ;;  %7485 = vmatpush1.bf16.msra.mxu0 %v10181_v21  ;;  %v10247_v11 = vld [vmem:[#allocation11 + $0x968] ss:$16 sps:$4 sm:$0xff]   ;;  %v10255_v16 = vld [vmem:[#allocation11 + $0x94c] ss:$16 sps:$4 sm:$0xff]  }
 0x5ea   : > { %7526 = vmatpush1.bf16.msra.mxu1 %v10184_v22  ;;  %v7193_v37 = vpop.f32.mrf.mxu0  ;;  %7486 = vmatprep.subr.bf16.mxu0 %v10189_v61  ;;  %v10258_v20 = vld [vmem:[#allocation11 + $0xb4c] ss:$16 sps:$4 sm:$0xff]   ;;  %v10253_v21 = vld [vmem:[#allocation11 + $0x948] ss:$16 sps:$4 sm:$0xff]  }
 0x5eb   : > { %v7234_v38 = vpop.f32.mrf.mxu1  ;;  %7527 = vmatprep.subr.bf16.mxu1 %v10192_v28  ;;  %v10256_v22 = vld [vmem:[#allocation11 + $0xb48] ss:$16 sps:$4 sm:$0xff]   ;;  %v10261_v25 = vld [vmem:[#allocation11 + $0x92c] ss:$16 sps:$4 sm:$0xff]  }
 0x5ec   : > { %v10264_v26 = vld [vmem:[#allocation11 + $0xb2c] ss:$16 sps:$4 sm:$0xff]   ;;  %v10259_v61 = vld [vmem:[#allocation11 + $0x928] ss:$16 sps:$4 sm:$0xff]  }
 0x5ed   : > { %7487 = vmatpush1.bf16.msra.mxu0 %v10187_v32  ;;  %v10262_v28 = vld [vmem:[#allocation11 + $0xb28] ss:$16 sps:$4 sm:$0xff]   ;;  %v10267_v13 = vld [vmem:[#allocation11 + $0x90c] ss:$16 sps:$4 sm:$0xff]  }
 0x5ee   : > { %7528 = vmatpush1.bf16.msra.mxu1 %v10190_v36  ;;  %7488 = vmatprep.subr.bf16.mxu0 %v10195_v27  ;;  %v10270_v19 = vld [vmem:[#allocation11 + $0xb0c] ss:$16 sps:$4 sm:$0xff]   ;;  %v10265_v24 = vld [vmem:[#allocation11 + $0x908] ss:$16 sps:$4 sm:$0xff]  }
 0x5ef   : > { %7529 = vmatprep.subr.bf16.mxu1 %v10198_v41  ;;  %v10268_v32 = vld [vmem:[#allocation11 + $0xb08] ss:$16 sps:$4 sm:$0xff]   ;;  %v10273_v36 = vld [vmem:[#allocation11 + $0xcec] ss:$16 sps:$4 sm:$0xff]  }
 0x5f0   : > { %v10276_v37 = vld [vmem:[#allocation11 + $0xeec] ss:$16 sps:$4 sm:$0xff]   ;;  %v10271_v38 = vld [vmem:[#allocation11 + $0xce8] ss:$16 sps:$4 sm:$0xff]  }
 0x5f1   : > { %7489 = vmatpush1.bf16.msra.mxu0 %v10193_v31  ;;  %v10274_v27 = vld [vmem:[#allocation11 + $0xee8] ss:$16 sps:$4 sm:$0xff]   ;;  %v10279_v41 = vld [vmem:[#allocation11 + $0xccc] ss:$16 sps:$4 sm:$0xff]  }
 0x5f2   : > { %7530 = vmatpush1.bf16.msra.mxu1 %v10196_v34  ;;  %7490 = vmatprep.subr.bf16.mxu0 %v10201_v39  ;;  %v10282_v31 = vld [vmem:[#allocation11 + $0xecc] ss:$16 sps:$4 sm:$0xff]  }
 0x5f3   : > { %7531 = vmatprep.subr.bf16.mxu1 %v10204_v42 }
 0x5f5   : > { %7491 = vmatpush1.bf16.msra.mxu0 %v10199_v12  ;;  %v10277_v12 = vld [vmem:[#allocation11 + $0xcc8] ss:$16 sps:$4 sm:$0xff]  }
 0x5f6   : > { %7532 = vmatpush1.bf16.msra.mxu1 %v10202_v18  ;;  %7492 = vmatprep.subr.bf16.mxu0 %v10207_v46  ;;  %v10280_v18 = vld [vmem:[#allocation11 + $0xec8] ss:$16 sps:$4 sm:$0xff]  }
 0x5f7   : > { %7533 = vmatprep.subr.bf16.mxu1 %v10210_v49 }
 0x5f9   : > { %7493 = vmatpush1.bf16.msra.mxu0 %v10205_v53  ;;  %v10285_v53 = vld [vmem:[#allocation11 + $0xcac] ss:$16 sps:$4 sm:$0xff]  }
 0x5fa   : > { %7534 = vmatpush1.bf16.msra.mxu1 %v10208_v17  ;;  %7494 = vmatprep.subr.bf16.mxu0 %v10213_v30  ;;  %v10288_v17 = vld [vmem:[#allocation11 + $0xeac] ss:$16 sps:$4 sm:$0xff]  }
 0x5fb   : > { %7535 = vmatprep.subr.bf16.mxu1 %v10216_v23 }
 0x5fd   : > { %7495 = vmatpush1.bf16.msra.mxu0 %v10211_v50  ;;  %v10283_v50 = vld [vmem:[#allocation11 + $0xca8] ss:$16 sps:$4 sm:$0xff]  }
 0x5fe   : > { %7536 = vmatpush1.bf16.msra.mxu1 %v10214_v52  ;;  %7496 = vmatprep.subr.bf16.mxu0 %v10219_v45  ;;  %v10286_v52 = vld [vmem:[#allocation11 + $0xea8] ss:$16 sps:$4 sm:$0xff]  }
 0x5ff   : > { %7537 = vmatprep.subr.bf16.mxu1 %v10222_v54 }
 0x601   : > { %7497 = vmatpush1.bf16.msra.mxu0 %v10217_v55  ;;  %v10291_v55 = vld [vmem:[#allocation11 + $0xc8c] ss:$16 sps:$4 sm:$0xff]  }
 0x602   : > { %7538 = vmatpush1.bf16.msra.mxu1 %v10220_v56  ;;  %7498 = vmatprep.subr.bf16.mxu0 %v10225_v57  ;;  %v10294_v56 = vld [vmem:[#allocation11 + $0xe8c] ss:$16 sps:$4 sm:$0xff]  }
 0x603   : > { %7539 = vmatprep.subr.bf16.mxu1 %v10228_v58  ;;  %v10297_v57 = vld [vmem:[#allocation11 + $0xc6c] ss:$16 sps:$4 sm:$0xff]  }
 0x604   : > { %v10300_v58 = vld [vmem:[#allocation11 + $0xe6c] ss:$16 sps:$4 sm:$0xff]  }
 0x605   : > { %7499 = vmatpush2.bf16.msra.mxu0 %v10223_v47  ;;  %v10295_v47 = vld [vmem:[#allocation11 + $0xc68] ss:$16 sps:$4 sm:$0xff]  }
 0x606   : > { %7540 = vmatpush2.bf16.msra.mxu1 %v10226_v59  ;;  %7500 = vmatprep.subr.bf16.mxu0 %v10231_v29  ;;  %v10298_v59 = vld [vmem:[#allocation11 + $0xe68] ss:$16 sps:$4 sm:$0xff]   ;;  %v10303_v29 = vld [vmem:[#allocation11 + $0xc4c] ss:$16 sps:$4 sm:$0xff]  }
 0x607   : > { %7541 = vmatprep.subr.bf16.mxu1 %v10234_v63  ;;  %v10306_v63 = vld [vmem:[#allocation11 + $0xe4c] ss:$16 sps:$4 sm:$0xff]  }
 0x609   : > { %7501 = vmatpush2.bf16.msra.mxu0 %v10229_v1  ;;  %v10301_v1 = vld [vmem:[#allocation11 + $0xc48] ss:$16 sps:$4 sm:$0xff]  }
 0x60a   : > { %7542 = vmatpush2.bf16.msra.mxu1 %v10232_v6  ;;  %7502 = vmatprep.subr.bf16.mxu0 %v10237_v2  ;;  %v10304_v6 = vld [vmem:[#allocation11 + $0xe48] ss:$16 sps:$4 sm:$0xff]   ;;  %v10309_v2 = vld [vmem:[#allocation11 + $0xc2c] ss:$16 sps:$4 sm:$0xff]  }
 0x60b   : > { %7543 = vmatprep.subr.bf16.mxu1 %v10240_v3  ;;  %v10312_v3 = vld [vmem:[#allocation11 + $0xe2c] ss:$16 sps:$4 sm:$0xff]  }
 0x60d   : > { %7503 = vmatpush2.bf16.msra.mxu0 %v10235_v4  ;;  %v10307_v4 = vld [vmem:[#allocation11 + $0xc28] ss:$16 sps:$4 sm:$0xff]  }
 0x60e   : > { %7544 = vmatpush2.bf16.msra.mxu1 %v10238_v8  ;;  %7504 = vmatprep.subr.bf16.mxu0 %v10243_v60  ;;  %v10310_v8 = vld [vmem:[#allocation11 + $0xe28] ss:$16 sps:$4 sm:$0xff]   ;;  %v10315_v60 = vld [vmem:[#allocation11 + $0xc0c] ss:$16 sps:$4 sm:$0xff]  }
 0x60f   : > { %7545 = vmatprep.subr.bf16.mxu1 %v10246_v33  ;;  %v10318_v33 = vld [vmem:[#allocation11 + $0xe0c] ss:$16 sps:$4 sm:$0xff]  }
 0x611   : > { %7505 = vmatpush2.bf16.msra.mxu0 %v10241_v40  ;;  %v10313_v40 = vld [vmem:[#allocation11 + $0xc08] ss:$16 sps:$4 sm:$0xff]  }
 0x612   : > { %7546 = vmatpush2.bf16.msra.mxu1 %v10244_v5  ;;  %7506 = vmatprep.subr.bf16.mxu0 %v10249_v14  ;;  %v10316_v5 = vld [vmem:[#allocation11 + $0xe08] ss:$16 sps:$4 sm:$0xff]   ;;  %v10321_v14 = vld [vmem:[#allocation11 + $0xdec] ss:$16 sps:$4 sm:$0xff]  }
 0x613   : > { %7547 = vmatprep.subr.bf16.mxu1 %v10252_v10  ;;  %v10324_v10 = vld [vmem:[#allocation11 + $0xfec] ss:$16 sps:$4 sm:$0xff]  }
 0x615   : > { %7507 = vmatpush2.bf16.msra.mxu0 %v10247_v11  ;;  %v10319_v11 = vld [vmem:[#allocation11 + $0xde8] ss:$16 sps:$4 sm:$0xff]  }
 0x616   : > { %7548 = vmatpush2.bf16.msra.mxu1 %v10250_v15  ;;  %7508 = vmatprep.subr.bf16.mxu0 %v10255_v16  ;;  %v10322_v15 = vld [vmem:[#allocation11 + $0xfe8] ss:$16 sps:$4 sm:$0xff]   ;;  %v10327_v16 = vld [vmem:[#allocation11 + $0xdcc] ss:$16 sps:$4 sm:$0xff]  }
 0x617   : > { %7549 = vmatprep.subr.bf16.mxu1 %v10258_v20  ;;  %v10330_v20 = vld [vmem:[#allocation11 + $0xfcc] ss:$16 sps:$4 sm:$0xff]  }
 0x619   : > { %7509 = vmatpush2.bf16.msra.mxu0 %v10253_v21  ;;  %v10325_v21 = vld [vmem:[#allocation11 + $0xdc8] ss:$16 sps:$4 sm:$0xff]  }
 0x61a   : > { %7550 = vmatpush2.bf16.msra.mxu1 %v10256_v22  ;;  %7510 = vmatprep.subr.bf16.mxu0 %v10261_v25  ;;  %v10328_v22 = vld [vmem:[#allocation11 + $0xfc8] ss:$16 sps:$4 sm:$0xff]   ;;  %v10333_v25 = vld [vmem:[#allocation11 + $0xdac] ss:$16 sps:$4 sm:$0xff]  }
 0x61b   : > { %7551 = vmatprep.subr.bf16.mxu1 %v10264_v26  ;;  %v10336_v26 = vld [vmem:[#allocation11 + $0xfac] ss:$16 sps:$4 sm:$0xff]  }
 0x61d   : > { %7511 = vmatpush2.bf16.msra.mxu0 %v10259_v61  ;;  %v10331_v61 = vld [vmem:[#allocation11 + $0xda8] ss:$16 sps:$4 sm:$0xff]  }
 0x61e   : > { %7552 = vmatpush2.bf16.msra.mxu1 %v10262_v28  ;;  %7512 = vmatprep.subr.bf16.mxu0 %v10267_v13  ;;  %v10334_v28 = vld [vmem:[#allocation11 + $0xfa8] ss:$16 sps:$4 sm:$0xff]   ;;  %v10339_v13 = vld [vmem:[#allocation11 + $0xd8c] ss:$16 sps:$4 sm:$0xff]  }
 0x61f   : > { %7553 = vmatprep.subr.bf16.mxu1 %v10270_v19  ;;  %v10342_v19 = vld [vmem:[#allocation11 + $0xf8c] ss:$16 sps:$4 sm:$0xff]  }
 0x621   : > { %7513 = vmatpush2.bf16.msra.mxu0 %v10265_v24  ;;  %v10337_v24 = vld [vmem:[#allocation11 + $0xd88] ss:$16 sps:$4 sm:$0xff]  }
 0x622   : > { %7554 = vmatpush2.bf16.msra.mxu1 %v10268_v32  ;;  %7564 = vmatprep.subr.bf16.mxu0 %v10273_v36  ;;  %v10340_v32 = vld [vmem:[#allocation11 + $0xf88] ss:$16 sps:$4 sm:$0xff]   ;;  %v10345_v36 = vld [vmem:[#allocation11 + $0xd6c] ss:$16 sps:$4 sm:$0xff]  }
 0x623   : > { %7605 = vmatprep.subr.bf16.mxu1 %v10276_v37  ;;  %v10348_v37 = vld [vmem:[#allocation11 + $0xf6c] ss:$16 sps:$4 sm:$0xff]  }
 0x624   : > { %v7270_v34 = vpop.f32.mrf.mxu0  ;;  %7515 = vmatmul.mubr.bf16.vlgmr.msra.gmra.mxu0 %v11549_v0 }
 0x625   : > { %v7311_v39 = vpop.f32.mrf.mxu1  ;;  %7556 = vmatmul.mubr.bf16.vlgmr.msra.gmra.mxu1 %v11556_v44  ;;  %v7271_v42 = vadd.f32 %v7270_v34, %v11597_v9  ;;  %7565 = vmatpush1.bf16.msra.mxu0 %v10271_v38  ;;  %v10343_v38 = vld [vmem:[#allocation11 + $0xd68] ss:$16 sps:$4 sm:$0xff]  }
 0x626   : > { %7606 = vmatpush1.bf16.msra.mxu1 %v10274_v27  ;;  %v7272_v46 = vpop.f32.mrf.mxu0  ;;  %7566 = vmatprep.subr.bf16.mxu0 %v10279_v41  ;;  %v10346_v27 = vld [vmem:[#allocation11 + $0xf68] ss:$16 sps:$4 sm:$0xff]   ;;  %v10351_v41 = vld [vmem:[#allocation11 + $0xd4c] ss:$16 sps:$4 sm:$0xff]  }
 0x627   : > { %v7313_v49 = vpop.f32.mrf.mxu1  ;;  %7607 = vmatprep.subr.bf16.mxu1 %v10282_v31  ;;  %v11607_v30 = vadd.f32 %v7311_v39, %v7271_v42  ;;  %v7273_v23 = vadd.f32 %v7272_v46, %v11602_v62  ;;  %7596 = vmatprep.mubr.bf16.mxu0 %v11552_v43  ;;  %v10289_v43 = vld [vmem:[#allocation11 + $0xc88] ss:$16 sps:$4 sm:$0xff]   ;;  %v10354_v31 = vld [vmem:[#allocation11 + $0xf4c] ss:$16 sps:$4 sm:$0xff]  }
 0x628   : > { %7637 = vmatprep.mubr.bf16.mxu1 %v11560_v48  ;;  %v7274_v0 = vpop.f32.mrf.mxu0  ;;  %v10292_v48 = vld [vmem:[#allocation11 + $0xe88] ss:$16 sps:$4 sm:$0xff]   ;;  %v10357_v42 = vld [vmem:[#allocation11 + $0xd2c] ss:$16 sps:$4 sm:$0xff]  }
 0x629   : > { %v7315_v44 = vpop.f32.mrf.mxu1  ;;  %v11612_v9 = vadd.f32 %v7313_v49, %v7273_v23  ;;  %7567 = vmatpush1.bf16.msra.mxu0 %v10277_v12  ;;  %v10349_v34 = vld [vmem:[#allocation11 + $0xd48] ss:$16 sps:$4 sm:$0xff]   ;;  %v10360_v12 = vld [vmem:[#allocation11 + $0xf2c] ss:$16 sps:$4 sm:$0xff]   ;;  %v4304_v0 = vsub.s32 2, %v11475_v35 }
 0x62a   : > { %7608 = vmatpush1.bf16.msra.mxu1 %v10280_v18  ;;  %v7275_v45 = vpop.f32.mrf.mxu0  ;;  %7568 = vmatprep.subr.bf16.mxu0 %v10285_v53  ;;  %v10352_v39 = vld [vmem:[#allocation11 + $0xf48] ss:$16 sps:$4 sm:$0xff]   ;;  %v10363_v49 = vld [vmem:[#allocation11 + $0xd0c] ss:$16 sps:$4 sm:$0xff]   ;;  %v4308_v44 = vsub.s32 3, %v11475_v35 }
 0x62b   : > { %v7316_v54 = vpop.f32.mrf.mxu1  ;;  %7609 = vmatprep.subr.bf16.mxu1 %v10288_v17  ;;  %v7650_v62 = vcombine.low %v11607_v30, %v11612_v9  ;;  %v10355_v18 = vld [vmem:[#allocation11 + $0xd28] ss:$16 sps:$4 sm:$0xff]   ;;  %v10366_v53 = vld [vmem:[#allocation11 + $0xf0c] ss:$16 sps:$4 sm:$0xff]  }
 0x62c   : > { %v10358_v46 = vld [vmem:[#allocation11 + $0xf28] ss:$16 sps:$4 sm:$0xff]  }
 0x62d   : > { %7569 = vmatpush1.bf16.msra.mxu0 %v10283_v50  ;;  %v10361_v17 = vld [vmem:[#allocation11 + $0xd08] ss:$16 sps:$4 sm:$0xff]   ;;  %v10367_v50 = vld [vmem:[#allocation12] sm:$0xf] }
 0x62e   : > { %7610 = vmatpush1.bf16.msra.mxu1 %v10286_v52  ;;  %7570 = vmatprep.subr.bf16.mxu0 %v10291_v55  ;;  %v10364_v23 = vld [vmem:[#allocation11 + $0xf08] ss:$16 sps:$4 sm:$0xff]   ;;  %v4305_v52 = vrot.slane %v10367_v50, %v4304_v0  ;;  %v4309_v45 = vrot.slane %v10367_v50, %v4308_v44 }
 0x62f   : > { %7611 = vmatprep.subr.bf16.mxu1 %v10294_v56 }
 0x631   : > { %7571 = vmatpush1.bf16.msra.mxu0 %v10289_v43 }
 0x632   : > { %7612 = vmatpush1.bf16.msra.mxu1 %v10292_v48  ;;  %7572 = vmatprep.subr.bf16.mxu0 %v10297_v57 }
 0x633   : > { %7613 = vmatprep.subr.bf16.mxu1 %v10300_v58 }
 0x635   : > { %7573 = vmatpush1.bf16.msra.mxu0 %v10295_v47 }
 0x636   : > { %7614 = vmatpush1.bf16.msra.mxu1 %v10298_v59  ;;  %7574 = vmatprep.subr.bf16.mxu0 %v10303_v29 }
 0x637   : > { %7615 = vmatprep.subr.bf16.mxu1 %v10306_v63 }
 0x639   : > { %7575 = vmatpush1.bf16.msra.mxu0 %v10301_v1 }
 0x63a   : > { %7616 = vmatpush1.bf16.msra.mxu1 %v10304_v6  ;;  %7576 = vmatprep.subr.bf16.mxu0 %v10309_v2 }
 0x63b   : > { %7617 = vmatprep.subr.bf16.mxu1 %v10312_v3 }
 0x63d   : > { %7577 = vmatpush1.bf16.msra.mxu0 %v10307_v4 }
 0x63e   : > { %7618 = vmatpush1.bf16.msra.mxu1 %v10310_v8  ;;  %7578 = vmatprep.subr.bf16.mxu0 %v10315_v60 }
 0x63f   : > { %7619 = vmatprep.subr.bf16.mxu1 %v10318_v33 }
 0x641   : > { %7579 = vmatpush1.bf16.msra.mxu0 %v10313_v40 }
 0x642   : > { %7620 = vmatpush1.bf16.msra.mxu1 %v10316_v5  ;;  %7580 = vmatprep.subr.bf16.mxu0 %v10321_v14 }
 0x643   : > { %7621 = vmatprep.subr.bf16.mxu1 %v10324_v10 }
 0x645   : > { %7581 = vmatpush2.bf16.msra.mxu0 %v10319_v11 }
 0x646   : > { %7622 = vmatpush2.bf16.msra.mxu1 %v10322_v15  ;;  %7582 = vmatprep.subr.bf16.mxu0 %v10327_v16 }
 0x647   : > { %7623 = vmatprep.subr.bf16.mxu1 %v10330_v20 }
 0x649   : > { %7583 = vmatpush2.bf16.msra.mxu0 %v10325_v21 }
 0x64a   : > { %7624 = vmatpush2.bf16.msra.mxu1 %v10328_v22  ;;  %7584 = vmatprep.subr.bf16.mxu0 %v10333_v25 }
 0x64b   : > { %7625 = vmatprep.subr.bf16.mxu1 %v10336_v26 }
 0x64d   : > { %7585 = vmatpush2.bf16.msra.mxu0 %v10331_v61 }
 0x64e   : > { %7626 = vmatpush2.bf16.msra.mxu1 %v10334_v28  ;;  %7586 = vmatprep.subr.bf16.mxu0 %v10339_v13  ;;  %v10625_v28 = vmov 1983009808  }
 0x64f   : > { %7627 = vmatprep.subr.bf16.mxu1 %v10342_v19  ;;  %v7653_v13 = vunpack.c.l.s4 %v10625_v28 }
 0x651   : > { %7587 = vmatpush2.bf16.msra.mxu0 %v10337_v24 }
 0x652   : > { %7628 = vmatpush2.bf16.msra.mxu1 %v10340_v32  ;;  %7588 = vmatprep.subr.bf16.mxu0 %v10345_v36  ;;  %v7654_v36 = vunpack.c.0.s8 %v7653_v13 }
 0x653   : > { %7629 = vmatprep.subr.bf16.mxu1 %v10348_v37 }
 0x655   : > { %7589 = vmatpush2.bf16.msra.mxu0 %v10343_v38 }
 0x656   : > { %7630 = vmatpush2.bf16.msra.mxu1 %v10346_v27  ;;  %7590 = vmatprep.subr.bf16.mxu0 %v10351_v41 }
 0x657   : > { %7631 = vmatprep.subr.bf16.mxu1 %v10354_v31 }
 0x659   : > { %7591 = vmatpush2.bf16.msra.mxu0 %v10349_v34 }
 0x65a   : > { %7632 = vmatpush2.bf16.msra.mxu1 %v10352_v39  ;;  %7592 = vmatprep.subr.bf16.mxu0 %v10357_v42  ;;  %v7657_v42 = vsub.s32 %v7654_v36, %v11475_v35 }
 0x65b   : > { %7633 = vmatprep.subr.bf16.mxu1 %v10360_v12 }
 0x65d   : > { %7593 = vmatpush2.bf16.msra.mxu0 %v10355_v18 }
 0x65e   : > { %7634 = vmatpush2.bf16.msra.mxu1 %v10358_v46  ;;  %7594 = vmatprep.subr.bf16.mxu0 %v10363_v49 }
 0x65f   : > { %7635 = vmatprep.subr.bf16.mxu1 %v10366_v53 }
 0x661   : > { %7595 = vmatpush2.bf16.msra.mxu0 %v10361_v17  ;;  %v7658_v17 = vrot.slane %v7650_v62, %v7657_v42 }
 0x662   : > { %7636 = vmatpush2.bf16.msra.mxu1 %v10364_v23 }
 0x664   : > { %v7352_v54 = vpop.f32.mrf.mxu0  ;;  %7597 = vmatmul.mubr.bf16.vlgmr.msra.gmra.mxu0 %v11568_v51 }
 0x665   : > { %v7393_v55 = vpop.f32.mrf.mxu1  ;;  %7638 = vmatmul.mubr.bf16.vlgmr.msra.gmra.mxu1 %v11574_v7  ;;  %v7353_v56 = vadd.f32 %v7352_v54, %v4305_v52 }
 0x666   : > { %v7354_v43 = vpop.f32.mrf.mxu0 }
 0x667   : > { %v7395_v48 = vpop.f32.mrf.mxu1  ;;  %v7394_v57 = vadd.f32 %v7393_v55, %v7353_v56  ;;  %v7355_v58 = vadd.f32 %v7354_v43, %v4309_v45 }
 0x668   : > { %v7356_v47 = vpop.f32.mrf.mxu0 }
 0x669   : > { %v7397_v59 = vpop.f32.mrf.mxu1  ;;  %v7396_v29 = vadd.f32 %v7395_v48, %v7355_v58 }
 0x66a   : > { %v7357_v63 = vpop.f32.mrf.mxu0 }
 0x66b   : > { %v7398_v1 = vpop.f32.mrf.mxu1 }
 0x6a4   : > { %v7434_v6 = vpop.f32.mrf.mxu0 }
 0x6a5   : > { %v7475_v2 = vpop.f32.mrf.mxu1  ;;  %v7435_v3 = vadd.f32 %v7434_v6, %v7394_v57 }
 0x6a6   : > { %v7436_v4 = vpop.f32.mrf.mxu0 }
 0x6a7   : > { %v7477_v8 = vpop.f32.mrf.mxu1  ;;  %v7476_v60 = vadd.f32 %v7475_v2, %v7435_v3  ;;  %v7437_v33 = vadd.f32 %v7436_v4, %v7396_v29 }
 0x6a8   : > { %v7438_v51 = vpop.f32.mrf.mxu0 }
 0x6a9   : > { %v7479_v40 = vpop.f32.mrf.mxu1  ;;  %v7478_v7 = vadd.f32 %v7477_v8, %v7437_v33 }
 0x6aa   : > { %v7439_v5 = vpop.f32.mrf.mxu0 }
 0x6ab   : > { %v7480_v14 = vpop.f32.mrf.mxu1 }
 0x6e4   : > { %v7516_v10 = vpop.f32.mrf.mxu0 }
 0x6e5   : > { %v7557_v11 = vpop.f32.mrf.mxu1  ;;  %v7517_v15 = vadd.f32 %v7516_v10, %v7476_v60 }
 0x6e6   : > { %v7518_v16 = vpop.f32.mrf.mxu0 }
 0x6e7   : > { %v7559_v20 = vpop.f32.mrf.mxu1  ;;  %v7558_v21 = vadd.f32 %v7557_v11, %v7517_v15  ;;  %v7519_v19 = vadd.f32 %v7518_v16, %v7478_v7 }
 0x6e8   : > { %v7520_v22 = vpop.f32.mrf.mxu0 }
 0x6e9   : > { %v7561_v25 = vpop.f32.mrf.mxu1  ;;  %v7560_v37 = vadd.f32 %v7559_v20, %v7519_v19 }
 0x6ea   : > { %v7521_v26 = vpop.f32.mrf.mxu0 }
 0x6eb   : > { %v7562_v61 = vpop.f32.mrf.mxu1 }
 0x724   : > { %v7598_v24 = vpop.f32.mrf.mxu0 }
 0x725   : > { %v7639_v32 = vpop.f32.mrf.mxu1  ;;  %v7599_v38 = vadd.f32 %v7598_v24, %v7558_v21 }
 0x726   : > { %v7600_v27 = vpop.f32.mrf.mxu0 }
 0x727   : > { %v7641_v41 = vpop.f32.mrf.mxu1  ;;  %v7601_v31 = vadd.f32 %v7600_v27, %v7560_v37  ;;  %v7640_v12 = vadd.f32 %v7639_v32, %v7599_v38 }
 0x728   : > { %v7602_v34 = vpop.f32.mrf.mxu0 }
 0x729   : > { %v7643_v39 = vpop.f32.mrf.mxu1  ;;  %v7642_v18 = vadd.f32 %v7641_v41, %v7601_v31 }
 0x72a   : > { %v7603_v46 = vpop.f32.mrf.mxu0 }
 0x72b   : > { %v7644_v49 = vpop.f32.mrf.mxu1  ;;  %v7651_v53 = vcombine.low %v7640_v12, %v7642_v18 }
 0x72d   : > { %v7665_v23 = vrot.slane %v7651_v53, %v7657_v42 }
 0x72f   : > { %v7666_v0 = vcombine.low %v7658_v17, %v7665_v23 }
 0x731   : > { %7668 = vst [vmem:[%s11725_s13] sm:$0xff] %v7666_v0 }
 0x732 PF: > { %s11726_s30 = sld [smem:[#allocation24_spill]]  ;;  %s11732_s27 = smov %s10602_s28 }
 0x733   : > { %s11727_s24 = sld [smem:[#allocation20_spill]] }
 0x734   : > { %s11728_s25 = sld [smem:[#allocation21_spill]] }
 0x735   : > { %s11729_s26 = sld [smem:[#allocation27_spill]] }
 0x736   : > { %s11730_s16 = sld [smem:[#allocation22_spill]] }
 0x737   : > { %s11731_s29 = sld [smem:[#allocation25_spill]] }
 0x738   : > { %p26_p0 = scmp.ge.s32.totalorder %s11726_s30, 9  }
 0x73a   :  { %28 = sbr.rel (!%p26_p0) target bundleno = 15 (0xf), region = 185 }
 0x73c   : > { %s11733_s28 = smov %s11730_s16 }
 0x73f   :  { %7706 = vsyncpa [#allocation5], 1 }
 0x740   :  { %7708 = vsyncpa [#allocation5 + $0x1], 1 }
 0x741   :  { %7709 = vsyncpa [#allocation7], 1 }
 0x742   :  { %7711 = vsyncpa [#allocation7 + $0x1], 1 }
 0x743   :  { %7712 = vsyncpa [#allocation10], 1 }
 0x744   :  { %7714 = vsyncpa [#allocation10 + $0x1], 1 }
 0x745   :  { %7715 = vsyncpa [#allocation13], 1 }
 0x746   :  { %7717 = vsyncpa [#allocation13 + $0x1], 1 }

</bundles_post_ra>
